<compile_context>
chip_gen: v5e
topology: v5e:2x2
jax: 0.10.0
libtpu: 0.0.40
codegen_flags: <defaults>
</compile_context>

<pallas_src>
import numpy as np
import jax
import jax.numpy as jnp
from jax import lax
from jax.experimental import pallas as pl
from jax.experimental.pallas import tpu as pltpu

C = 1280                      # backbone output channels
HIDDEN = int(C * (1.0 / 16))  # CBAM reduction -> 80
N_AGE = 9
N_SUB = 5
N_GENDER = 2
KS = 7                        # CBAM spatial conv kernel size


def _sigmoid(v):
    return 1.0 / (1.0 + jnp.exp(-v))


def _softmax(v):
    m = jnp.max(v, axis=-1, keepdims=True)
    e = jnp.exp(v - m)
    return e / jnp.sum(e, axis=-1, keepdims=True)


def _linear(v, w, b):
    # v: (M, in), w: (out, in) torch layout, b: (1, out) -> (M, out).
    return lax.dot_general(v, w, (((1,), (1,)), ((), ())),
                           preferred_element_type=jnp.float32) + b


def agnet_head_kernel(x_ref, w1_ref, b1_ref, w2_ref, b2_ref,
                      mmean_ref, mmax_ref,
                      wage_ref, bage_ref, wgen_ref, bgen_ref,
                      wsub_ref, bsub_ref,
                      age_super_ref, age_subs_ref, gender_ref,
                      d_ref, feat_ref):
    BG = x_ref.shape[0]                       # batch elements in this grid step

    # ---------- pass 1: per-sample channel descriptors (avg & max over HW) ---
    # Stacked into a (2*BG, C) scratch so the shared MLP runs as ONE matmul.
    for b in range(BG):                       # static unroll, BG <= 8
        xb = x_ref[b].astype(jnp.float32)     # (HW, C) bf16 -> f32 once
        d_ref[pl.ds(b, 1), :] = jnp.mean(xb, axis=0, keepdims=True)
        d_ref[pl.ds(BG + b, 1), :] = jnp.max(xb, axis=0, keepdims=True)

    # ---------- CBAM channel attention: shared MLP, single batched matmul ----
    d = d_ref[...]                                             # (2*BG, C)
    h = jnp.maximum(_linear(d, w1_ref[...], b1_ref[...]), 0.0)  # (2*BG, HIDDEN)
    o = _linear(h, w2_ref[...], b2_ref[...])                    # (2*BG, C)
    ca = _sigmoid(o[:BG] + o[BG:])                              # (BG, C)

    mmean = mmean_ref[...]                                      # (HW, HW)
    mmax = mmax_ref[...]                                        # (HW, HW)

    # ---------- pass 2: apply gates, spatial attention, global avg pool ------
    for b in range(BG):
        xb = x_ref[b].astype(jnp.float32) * ca[b:b + 1, :]      # (HW, C)
        mean_s = jnp.mean(xb, axis=1, keepdims=True)            # (HW, 1)
        max_s = jnp.max(xb, axis=1, keepdims=True)              # (HW, 1)
        conv = (jnp.dot(mmean, mean_s, preferred_element_type=jnp.float32)
                + jnp.dot(mmax, max_s, preferred_element_type=jnp.float32))
        xb = xb * _sigmoid(conv)                                # spatial gate
        # AdaptiveAvgPool2d((1,1)) for this sample -> row of (BG, C) scratch.
        feat_ref[pl.ds(b, 1), :] = jnp.mean(xb, axis=0, keepdims=True)

    feat = feat_ref[...]                                        # (BG, C)

    # ---------- classifier heads (batched, MXU rows = BG) --------------------
    age_logits = _linear(feat, wage_ref[...], bage_ref[...])    # (BG, 9)
    gen_logits = _linear(feat, wgen_ref[...], bgen_ref[...])    # (BG, 2)

    age_super_ref[...] = _softmax(age_logits)
    gender_ref[...] = _softmax(gen_logits)

    # 9 independent Linear(1, 5) sub-heads on PRE-softmax age logits.
    # wsub/bsub packed as (N_SUB, N_AGE): row j holds output-j weight/bias of
    # every age head i.  Softmax is over the N_SUB axis, done across the 5
    # (BG, N_AGE) planes elementwise (no transposes / relayouts needed).
    subs = []
    for j in range(N_SUB):
        w_row = wsub_ref[pl.ds(j, 1), :]                        # (1, 9)
        b_row = bsub_ref[pl.ds(j, 1), :]                        # (1, 9)
        subs.append(age_logits * w_row + b_row)                 # (BG, 9)
    m = subs[0]
    for j in range(1, N_SUB):
        m = jnp.maximum(m, subs[j])
    es = [jnp.exp(s - m) for s in subs]
    tot = es[0]
    for j in range(1, N_SUB):
        tot = tot + es[j]
    inv = 1.0 / tot
    for j in range(N_SUB):
        age_subs_ref[j] = es[j] * inv                           # (BG, 9)


def conv7x7_as_matmul(w_spatial, H, W):
    """Build (HW, HW) matrices so that the padded 7x7 conv over the
    [mean, max] spatial maps becomes dense matmuls.  Pure parameter
    re-packing (static index structure), no compute hoisted."""
    w = np.asarray(w_spatial, dtype=np.float32)    # (2, 7, 7): ch0=mean, ch1=max
    HW = H * W
    m_mean = np.zeros((HW, HW), np.float32)
    m_max = np.zeros((HW, HW), np.float32)
    pad = KS // 2
    for y in range(H):
        for x in range(W):
            p = y * W + x
            for ky in range(KS):
                for kx in range(KS):
                    yy, xx = y + ky - pad, x + kx - pad
                    if 0 <= yy < H and 0 <= xx < W:
                        q = yy * W + xx
                        m_mean[p, q] += w[0, ky, kx]
                        m_max[p, q] += w[1, ky, kx]
    return jnp.asarray(m_mean), jnp.asarray(m_max)


def init_params(key):
    ks = jax.random.split(key, 12)

    def kaiming_uniform(k, shape, fan_in):
        bound = float(np.sqrt(6.0 / fan_in))
        return jax.random.uniform(k, shape, jnp.float32, -bound, bound)

    def bias(k, shape, fan_in):
        bound = float(1.0 / np.sqrt(fan_in))
        return jax.random.uniform(k, shape, jnp.float32, -bound, bound)

    return {
        # CBAM channel MLP (shared): Linear(C, C//16) -> ReLU -> Linear(C//16, C)
        "w_mlp1": kaiming_uniform(ks[0], (HIDDEN, C), C),
        "b_mlp1": bias(ks[1], (1, HIDDEN), C),
        "w_mlp2": kaiming_uniform(ks[2], (C, HIDDEN), HIDDEN),
        "b_mlp2": bias(ks[3], (1, C), HIDDEN),
        # CBAM spatial gate: Conv2d(2, 1, 7, padding=3, bias=False)
        "w_spatial": kaiming_uniform(ks[4], (2, KS, KS), 2 * KS * KS),
        # heads
        "w_age": kaiming_uniform(ks[5], (N_AGE, C), C),
        "b_age": bias(ks[6], (1, N_AGE), C),
        "w_gen": kaiming_uniform(ks[7], (N_GENDER, C), C),
        "b_gen": bias(ks[8], (1, N_GENDER), C),
        # 9 x Linear(1, 5): w_sub[j, i] == torch out_age_subs[i].weight[j, 0]
        "w_sub": kaiming_uniform(ks[9], (N_SUB, N_AGE), 1),
        "b_sub": bias(ks[10], (N_SUB, N_AGE), 1),
    }


def agnet_cbam_super_sub(x_nhwc, params, *, block_batch=8):
    """x_nhwc: (B, H, W, 1280) channels-last feature map (bf16 recommended)."""
    B, H, W, Cc = x_nhwc.shape
    assert Cc == C
    HW = H * W
    x = x_nhwc.reshape(B, HW, C)               # free reshape, no HBM transpose

    BG = int(min(B, block_batch))
    B_pad = int(pl.cdiv(B, BG)) * BG
    if B_pad != B:
        x = jnp.pad(x, ((0, B_pad - B), (0, 0), (0, 0)))

    m_mean, m_max = conv7x7_as_matmul(params["w_spatial"], H, W)

    const2d = lambda g: (0, 0)
    kernel = pl.pallas_call(
        agnet_head_kernel,
        out_shape=(
            jax.ShapeDtypeStruct((B_pad, N_AGE), jnp.float32),
            jax.ShapeDtypeStruct((N_SUB, B_pad, N_AGE), jnp.float32),
            jax.ShapeDtypeStruct((B_pad, N_GENDER), jnp.float32),
        ),
        grid=(B_pad // BG,),
        in_specs=[
            pl.BlockSpec((BG, HW, C), lambda g: (g, 0, 0)),     # x (bf16)
            pl.BlockSpec((HIDDEN, C), const2d),                 # w_mlp1
            pl.BlockSpec((1, HIDDEN), const2d),                 # b_mlp1
            pl.BlockSpec((C, HIDDEN), const2d),                 # w_mlp2
            pl.BlockSpec((1, C), const2d),                      # b_mlp2
            pl.BlockSpec((HW, HW), const2d),                    # m_mean
            pl.BlockSpec((HW, HW), const2d),                    # m_max
            pl.BlockSpec((N_AGE, C), const2d),                  # w_age
            pl.BlockSpec((1, N_AGE), const2d),                  # b_age
            pl.BlockSpec((N_GENDER, C), const2d),               # w_gen
            pl.BlockSpec((1, N_GENDER), const2d),               # b_gen
            pl.BlockSpec((N_SUB, N_AGE), const2d),              # w_sub
            pl.BlockSpec((N_SUB, N_AGE), const2d),              # b_sub
        ],
        out_specs=[
            pl.BlockSpec((BG, N_AGE), lambda g: (g, 0)),
            pl.BlockSpec((N_SUB, BG, N_AGE), lambda g: (0, g, 0)),
            pl.BlockSpec((BG, N_GENDER), lambda g: (g, 0)),
        ],
        scratch_shapes=[
            pltpu.VMEM((2 * BG, C), jnp.float32),   # stacked avg/max descriptors
            pltpu.VMEM((BG, C), jnp.float32),       # pooled features
        ],
        compiler_params=pltpu.CompilerParams(
            dimension_semantics=("parallel",)),     # batch groups independent
    )

    age_super, age_subs_raw, gender = kernel(
        x,
        params["w_mlp1"], params["b_mlp1"], params["w_mlp2"], params["b_mlp2"],
        m_mean, m_max,
        params["w_age"], params["b_age"], params["w_gen"], params["b_gen"],
        params["w_sub"], params["b_sub"])

    age_super = age_super[:B]
    gender = gender[:B]
    # age_subs_raw: (N_SUB, B_pad, N_AGE) -> list of 9 (B, N_SUB) arrays.
    age_subs_list = [jnp.transpose(age_subs_raw[:, :B, i]) for i in range(N_AGE)]
    return age_super, age_subs_list, gender


def reference_forward(x_nhwc, params):
    """Pure-JAX reference of the same math (for a correctness check)."""
    B, H, W, _ = x_nhwc.shape
    HW = H * W
    x = x_nhwc.reshape(B, HW, C).astype(jnp.float32)
    m_mean, m_max = conv7x7_as_matmul(params["w_spatial"], H, W)

    def mlp(v):
        h = jnp.maximum(v @ params["w_mlp1"].T + params["b_mlp1"], 0.0)
        return h @ params["w_mlp2"].T + params["b_mlp2"]

    ca = jax.nn.sigmoid(mlp(jnp.mean(x, 1)) + mlp(jnp.max(x, 1)))   # (B, C)
    x = x * ca[:, None, :]
    mean_s = jnp.mean(x, 2)                                          # (B, HW)
    max_s = jnp.max(x, 2)                                            # (B, HW)
    sa = jax.nn.sigmoid(mean_s @ m_mean.T + max_s @ m_max.T)         # (B, HW)
    x = x * sa[:, :, None]
    feat = jnp.mean(x, 1)                                            # (B, C)
    age_logits = feat @ params["w_age"].T + params["b_age"]
    gen_logits = feat @ params["w_gen"].T + params["b_gen"]
    subs_logits = (age_logits[:, None, :] * params["w_sub"][None]
                   + params["b_sub"][None])                          # (B, 5, 9)
    subs_sm = jax.nn.softmax(subs_logits, axis=1)
    return (jax.nn.softmax(age_logits, -1),
            [subs_sm[:, :, i] for i in range(N_AGE)],
            jax.nn.softmax(gen_logits, -1))


if __name__ == "__main__":
    key = jax.random.PRNGKey(0)
    kx, kp = jax.random.split(key)
    B, H, W = 4, 4, 4
    # Backbone feature map: channels-last, bf16 (halves HBM traffic of the head).
    x = jax.random.normal(kx, (B, H, W, C), jnp.float32).astype(jnp.bfloat16)
    params = init_params(kp)

    out = agnet_cbam_super_sub(x, params)
    jax.block_until_ready(out)

    ref = reference_forward(x, params)
    np.testing.assert_allclose(np.asarray(out[0]), np.asarray(ref[0]),
                               rtol=2e-3, atol=2e-3)
    np.testing.assert_allclose(np.asarray(out[2]), np.asarray(ref[2]),
                               rtol=2e-3, atol=2e-3)
    for a, b in zip(out[1], ref[1]):
        np.testing.assert_allclose(np.asarray(a), np.asarray(b),
                                   rtol=2e-3, atol=2e-3)

    print("KERNEL_OK")
</pallas_src>

<mosaic_0001>
module attributes {stable_mosaic.version = 11 : i64} {
  func.func @agnet_head_kernel(%arg0: i32, %arg1: memref<4x16x1280xbf16, #tpu.memory_space<vmem>>, %arg2: memref<80x1280xf32, #tpu.memory_space<vmem>>, %arg3: memref<1x80xf32, #tpu.memory_space<vmem>>, %arg4: memref<1280x80xf32, #tpu.memory_space<vmem>>, %arg5: memref<1x1280xf32, #tpu.memory_space<vmem>>, %arg6: memref<16x16xf32, #tpu.memory_space<vmem>>, %arg7: memref<16x16xf32, #tpu.memory_space<vmem>>, %arg8: memref<9x1280xf32, #tpu.memory_space<vmem>>, %arg9: memref<1x9xf32, #tpu.memory_space<vmem>>, %arg10: memref<2x1280xf32, #tpu.memory_space<vmem>>, %arg11: memref<1x2xf32, #tpu.memory_space<vmem>>, %arg12: memref<5x9xf32, #tpu.memory_space<vmem>>, %arg13: memref<5x9xf32, #tpu.memory_space<vmem>>, %arg14: memref<4x9xf32, #tpu.memory_space<vmem>>, %arg15: memref<5x4x9xf32, #tpu.memory_space<vmem>>, %arg16: memref<4x2xf32, #tpu.memory_space<vmem>>, %arg17: memref<8x1280xf32, #tpu.memory_space<vmem>>, %arg18: memref<4x1280xf32, #tpu.memory_space<vmem>>) attributes {dimension_semantics = [#tpu.dimension_semantics<parallel>], iteration_bounds = array<i64: 1>, scalar_prefetch = 0 : i64, scratch_operands = 2 : i64, tpu.core_type = #tpu.core_type<tc>, window_params = [{transform_indices = @transform_0, window_bounds = array<i64: 4, 16, 1280>}, {pipeline_mode = #tpu.pipeline_mode<synchronous>, transform_indices = @transform_1, window_bounds = array<i64: 80, 1280>}, {pipeline_mode = #tpu.pipeline_mode<synchronous>, transform_indices = @transform_2, window_bounds = array<i64: 1, 80>}, {pipeline_mode = #tpu.pipeline_mode<synchronous>, transform_indices = @transform_3, window_bounds = array<i64: 1280, 80>}, {pipeline_mode = #tpu.pipeline_mode<synchronous>, transform_indices = @transform_4, window_bounds = array<i64: 1, 1280>}, {pipeline_mode = #tpu.pipeline_mode<synchronous>, transform_indices = @transform_5, window_bounds = array<i64: 16, 16>}, {pipeline_mode = #tpu.pipeline_mode<synchronous>, transform_indices = @transform_6, window_bounds = array<i64: 16, 16>}, {pipeline_mode = #tpu.pipeline_mode<synchronous>, transform_indices = @transform_7, window_bounds = array<i64: 9, 1280>}, {pipeline_mode = #tpu.pipeline_mode<synchronous>, transform_indices = @transform_8, window_bounds = array<i64: 1, 9>}, {pipeline_mode = #tpu.pipeline_mode<synchronous>, transform_indices = @transform_9, window_bounds = array<i64: 2, 1280>}, {pipeline_mode = #tpu.pipeline_mode<synchronous>, transform_indices = @transform_10, window_bounds = array<i64: 1, 2>}, {pipeline_mode = #tpu.pipeline_mode<synchronous>, transform_indices = @transform_11, window_bounds = array<i64: 5, 9>}, {pipeline_mode = #tpu.pipeline_mode<synchronous>, transform_indices = @transform_12, window_bounds = array<i64: 5, 9>}, {transform_indices = @transform_13, window_bounds = array<i64: 4, 9>}, {transform_indices = @transform_14, window_bounds = array<i64: 5, 4, 9>}, {transform_indices = @transform_15, window_bounds = array<i64: 4, 2>}]} {
    %c0 = arith.constant 0 : index
    %c0_0 = arith.constant 0 : index
    %c0_1 = arith.constant 0 : index
    %0 = vector.load %arg1[%c0, %c0_0, %c0_1] : memref<4x16x1280xbf16, #tpu.memory_space<vmem>>, vector<1x16x1280xbf16>
    %1 = vector.shape_cast %0 : vector<1x16x1280xbf16> to vector<16x1280xbf16>
    %2 = arith.extf %1 : vector<16x1280xbf16> to vector<16x1280xf32>
    %cst = arith.constant dense<0.000000e+00> : vector<1280xf32>
    %3 = vector.multi_reduction <add>, %2, %cst [0] : vector<16x1280xf32> to vector<1280xf32>
    %4 = vector.shape_cast %3 : vector<1280xf32> to vector<1x1280xf32>
    %cst_2 = arith.constant 1.600000e+01 : f32
    %5 = vector.broadcast %cst_2 : f32 to vector<1x1280xf32>
    %6 = arith.divf %4, %5 : vector<1x1280xf32>
    %c0_3 = arith.constant 0 : index
    %c0_4 = arith.constant 0 : index
    %7 = vector.load %arg17[%c0_3, %c0_4] : memref<8x1280xf32, #tpu.memory_space<vmem>>, vector<1x1280xf32>
    tpu.vector_store %arg17[%c0_3, %c0_4], %6 {strides = array<i32>} : memref<8x1280xf32, #tpu.memory_space<vmem>>, vector<1x1280xf32>,
    %cst_5 = arith.constant dense<0xFF800000> : vector<1280xf32>
    %8 = vector.multi_reduction <maximumf>, %2, %cst_5 [0] : vector<16x1280xf32> to vector<1280xf32>
    %9 = vector.shape_cast %8 : vector<1280xf32> to vector<1x1280xf32>
    %c4 = arith.constant 4 : index
    %c0_6 = arith.constant 0 : index
    %10 = vector.load %arg17[%c4, %c0_6] : memref<8x1280xf32, #tpu.memory_space<vmem>>, vector<1x1280xf32>
    tpu.vector_store %arg17[%c4, %c0_6], %9 {strides = array<i32>} : memref<8x1280xf32, #tpu.memory_space<vmem>>, vector<1x1280xf32>,
    %c1 = arith.constant 1 : index
    %c0_7 = arith.constant 0 : index
    %c0_8 = arith.constant 0 : index
    %11 = vector.load %arg1[%c1, %c0_7, %c0_8] : memref<4x16x1280xbf16, #tpu.memory_space<vmem>>, vector<1x16x1280xbf16>
    %12 = vector.shape_cast %11 : vector<1x16x1280xbf16> to vector<16x1280xbf16>
    %13 = arith.extf %12 : vector<16x1280xbf16> to vector<16x1280xf32>
    %cst_9 = arith.constant dense<0.000000e+00> : vector<1280xf32>
    %14 = vector.multi_reduction <add>, %13, %cst_9 [0] : vector<16x1280xf32> to vector<1280xf32>
    %15 = vector.shape_cast %14 : vector<1280xf32> to vector<1x1280xf32>
    %cst_10 = arith.constant 1.600000e+01 : f32
    %16 = vector.broadcast %cst_10 : f32 to vector<1x1280xf32>
    %17 = arith.divf %15, %16 : vector<1x1280xf32>
    %c1_11 = arith.constant 1 : index
    %c0_12 = arith.constant 0 : index
    %18 = vector.load %arg17[%c1_11, %c0_12] : memref<8x1280xf32, #tpu.memory_space<vmem>>, vector<1x1280xf32>
    tpu.vector_store %arg17[%c1_11, %c0_12], %17 {strides = array<i32>} : memref<8x1280xf32, #tpu.memory_space<vmem>>, vector<1x1280xf32>,
    %cst_13 = arith.constant dense<0xFF800000> : vector<1280xf32>
    %19 = vector.multi_reduction <maximumf>, %13, %cst_13 [0] : vector<16x1280xf32> to vector<1280xf32>
    %20 = vector.shape_cast %19 : vector<1280xf32> to vector<1x1280xf32>
    %c5 = arith.constant 5 : index
    %c0_14 = arith.constant 0 : index
    %21 = vector.load %arg17[%c5, %c0_14] : memref<8x1280xf32, #tpu.memory_space<vmem>>, vector<1x1280xf32>
    tpu.vector_store %arg17[%c5, %c0_14], %20 {strides = array<i32>} : memref<8x1280xf32, #tpu.memory_space<vmem>>, vector<1x1280xf32>,
    %c2 = arith.constant 2 : index
    %c0_15 = arith.constant 0 : index
    %c0_16 = arith.constant 0 : index
    %22 = vector.load %arg1[%c2, %c0_15, %c0_16] : memref<4x16x1280xbf16, #tpu.memory_space<vmem>>, vector<1x16x1280xbf16>
    %23 = vector.shape_cast %22 : vector<1x16x1280xbf16> to vector<16x1280xbf16>
    %24 = arith.extf %23 : vector<16x1280xbf16> to vector<16x1280xf32>
    %cst_17 = arith.constant dense<0.000000e+00> : vector<1280xf32>
    %25 = vector.multi_reduction <add>, %24, %cst_17 [0] : vector<16x1280xf32> to vector<1280xf32>
    %26 = vector.shape_cast %25 : vector<1280xf32> to vector<1x1280xf32>
    %cst_18 = arith.constant 1.600000e+01 : f32
    %27 = vector.broadcast %cst_18 : f32 to vector<1x1280xf32>
    %28 = arith.divf %26, %27 : vector<1x1280xf32>
    %c2_19 = arith.constant 2 : index
    %c0_20 = arith.constant 0 : index
    %29 = vector.load %arg17[%c2_19, %c0_20] : memref<8x1280xf32, #tpu.memory_space<vmem>>, vector<1x1280xf32>
    tpu.vector_store %arg17[%c2_19, %c0_20], %28 {strides = array<i32>} : memref<8x1280xf32, #tpu.memory_space<vmem>>, vector<1x1280xf32>,
    %cst_21 = arith.constant dense<0xFF800000> : vector<1280xf32>
    %30 = vector.multi_reduction <maximumf>, %24, %cst_21 [0] : vector<16x1280xf32> to vector<1280xf32>
    %31 = vector.shape_cast %30 : vector<1280xf32> to vector<1x1280xf32>
    %c6 = arith.constant 6 : index
    %c0_22 = arith.constant 0 : index
    %32 = vector.load %arg17[%c6, %c0_22] : memref<8x1280xf32, #tpu.memory_space<vmem>>, vector<1x1280xf32>
    tpu.vector_store %arg17[%c6, %c0_22], %31 {strides = array<i32>} : memref<8x1280xf32, #tpu.memory_space<vmem>>, vector<1x1280xf32>,
    %c3 = arith.constant 3 : index
    %c0_23 = arith.constant 0 : index
    %c0_24 = arith.constant 0 : index
    %33 = vector.load %arg1[%c3, %c0_23, %c0_24] : memref<4x16x1280xbf16, #tpu.memory_space<vmem>>, vector<1x16x1280xbf16>
    %34 = vector.shape_cast %33 : vector<1x16x1280xbf16> to vector<16x1280xbf16>
    %35 = arith.extf %34 : vector<16x1280xbf16> to vector<16x1280xf32>
    %cst_25 = arith.constant dense<0.000000e+00> : vector<1280xf32>
    %36 = vector.multi_reduction <add>, %35, %cst_25 [0] : vector<16x1280xf32> to vector<1280xf32>
    %37 = vector.shape_cast %36 : vector<1280xf32> to vector<1x1280xf32>
    %cst_26 = arith.constant 1.600000e+01 : f32
    %38 = vector.broadcast %cst_26 : f32 to vector<1x1280xf32>
    %39 = arith.divf %37, %38 : vector<1x1280xf32>
    %c3_27 = arith.constant 3 : index
    %c0_28 = arith.constant 0 : index
    %40 = vector.load %arg17[%c3_27, %c0_28] : memref<8x1280xf32, #tpu.memory_space<vmem>>, vector<1x1280xf32>
    tpu.vector_store %arg17[%c3_27, %c0_28], %39 {strides = array<i32>} : memref<8x1280xf32, #tpu.memory_space<vmem>>, vector<1x1280xf32>,
    %cst_29 = arith.constant dense<0xFF800000> : vector<1280xf32>
    %41 = vector.multi_reduction <maximumf>, %35, %cst_29 [0] : vector<16x1280xf32> to vector<1280xf32>
    %42 = vector.shape_cast %41 : vector<1280xf32> to vector<1x1280xf32>
    %c7 = arith.constant 7 : index
    %c0_30 = arith.constant 0 : index
    %43 = vector.load %arg17[%c7, %c0_30] : memref<8x1280xf32, #tpu.memory_space<vmem>>, vector<1x1280xf32>
    tpu.vector_store %arg17[%c7, %c0_30], %42 {strides = array<i32>} : memref<8x1280xf32, #tpu.memory_space<vmem>>, vector<1x1280xf32>,
    %c0_31 = arith.constant 0 : index
    %c0_32 = arith.constant 0 : index
    %44 = vector.load %arg17[%c0_31, %c0_32] : memref<8x1280xf32, #tpu.memory_space<vmem>>, vector<8x1280xf32>
    %c0_33 = arith.constant 0 : index
    %c0_34 = arith.constant 0 : index
    %45 = vector.load %arg2[%c0_33, %c0_34] : memref<80x1280xf32, #tpu.memory_space<vmem>>, vector<80x1280xf32>
    %c0_35 = arith.constant 0 : index
    %c0_36 = arith.constant 0 : index
    %46 = vector.load %arg3[%c0_35, %c0_36] : memref<1x80xf32, #tpu.memory_space<vmem>>, vector<1x80xf32>
    %cst_37 = arith.constant dense<0.000000e+00> : vector<8x80xf32>
    %47 = tpu.matmul %44, %45, %cst_37 {dimension_numbers = #tpu.dot_dimension_numbers<[1], [1], [0], [0], [0, 0, 1, 0], [], []>} : vector<8x1280xf32>, vector<80x1280xf32>, vector<8x80xf32> -> vector<8x80xf32>
    %48 = vector.broadcast %46 : vector<1x80xf32> to vector<8x80xf32>
    %49 = arith.addf %47, %48 : vector<8x80xf32>
    %cst_38 = arith.constant 0.000000e+00 : f32
    %50 = vector.broadcast %cst_38 : f32 to vector<8x80xf32>
    %51 = arith.maximumf %49, %50 : vector<8x80xf32>
    %c0_39 = arith.constant 0 : index
    %c0_40 = arith.constant 0 : index
    %52 = vector.load %arg4[%c0_39, %c0_40] : memref<1280x80xf32, #tpu.memory_space<vmem>>, vector<1280x80xf32>
    %c0_41 = arith.constant 0 : index
    %c0_42 = arith.constant 0 : index
    %53 = vector.load %arg5[%c0_41, %c0_42] : memref<1x1280xf32, #tpu.memory_space<vmem>>, vector<1x1280xf32>
    %cst_43 = arith.constant dense<0.000000e+00> : vector<8x1280xf32>
    %54 = tpu.matmul %51, %52, %cst_43 {dimension_numbers = #tpu.dot_dimension_numbers<[1], [1], [0], [0], [0, 0, 1, 0], [], []>} : vector<8x80xf32>, vector<1280x80xf32>, vector<8x1280xf32> -> vector<8x1280xf32>
    %55 = vector.broadcast %53 : vector<1x1280xf32> to vector<8x1280xf32>
    %56 = arith.addf %54, %55 : vector<8x1280xf32>
    %57 = vector.extract_strided_slice %56 {offsets = [0, 0], sizes = [4, 1280], strides = [1, 1]} : vector<8x1280xf32> to vector<4x1280xf32>
    %58 = vector.extract_strided_slice %56 {offsets = [4, 0], sizes = [4, 1280], strides = [1, 1]} : vector<8x1280xf32> to vector<4x1280xf32>
    %59 = arith.addf %57, %58 : vector<4x1280xf32>
    %cst_44 = arith.constant 0.000000e+00 : f32
    %60 = vector.broadcast %cst_44 : f32 to vector<4x1280xf32>
    %61 = arith.subf %60, %59 : vector<4x1280xf32>
    %62 = math.exp %61 : vector<4x1280xf32>
    %cst_45 = arith.constant 1.000000e+00 : f32
    %63 = vector.broadcast %cst_45 : f32 to vector<4x1280xf32>
    %64 = arith.addf %63, %62 : vector<4x1280xf32>
    %cst_46 = arith.constant 1.000000e+00 : f32
    %65 = vector.broadcast %cst_46 : f32 to vector<4x1280xf32>
    %66 = arith.divf %65, %64 : vector<4x1280xf32>
    %c0_47 = arith.constant 0 : index
    %c0_48 = arith.constant 0 : index
    %67 = vector.load %arg6[%c0_47, %c0_48] : memref<16x16xf32, #tpu.memory_space<vmem>>, vector<16x16xf32>
    %c0_49 = arith.constant 0 : index
    %c0_50 = arith.constant 0 : index
    %68 = vector.load %arg7[%c0_49, %c0_50] : memref<16x16xf32, #tpu.memory_space<vmem>>, vector<16x16xf32>
    %c0_51 = arith.constant 0 : index
    %c0_52 = arith.constant 0 : index
    %c0_53 = arith.constant 0 : index
    %69 = vector.load %arg1[%c0_51, %c0_52, %c0_53] : memref<4x16x1280xbf16, #tpu.memory_space<vmem>>, vector<1x16x1280xbf16>
    %70 = vector.shape_cast %69 : vector<1x16x1280xbf16> to vector<16x1280xbf16>
    %71 = arith.extf %70 : vector<16x1280xbf16> to vector<16x1280xf32>
    %72 = vector.extract_strided_slice %66 {offsets = [0, 0], sizes = [1, 1280], strides = [1, 1]} : vector<4x1280xf32> to vector<1x1280xf32>
    %73 = vector.broadcast %72 : vector<1x1280xf32> to vector<16x1280xf32>
    %74 = arith.mulf %71, %73 : vector<16x1280xf32>
    %cst_54 = arith.constant dense<0.000000e+00> : vector<16xf32>
    %75 = vector.multi_reduction <add>, %74, %cst_54 [1] : vector<16x1280xf32> to vector<16xf32>
    %76 = vector.shape_cast %75 : vector<16xf32> to vector<16x1xf32>
    %cst_55 = arith.constant 1.280000e+03 : f32
    %77 = vector.broadcast %cst_55 : f32 to vector<16x1xf32>
    %78 = arith.divf %76, %77 : vector<16x1xf32>
    %cst_56 = arith.constant dense<0xFF800000> : vector<16xf32>
    %79 = vector.multi_reduction <maximumf>, %74, %cst_56 [1] : vector<16x1280xf32> to vector<16xf32>
    %80 = vector.shape_cast %79 : vector<16xf32> to vector<16x1xf32>
    %cst_57 = arith.constant dense<0.000000e+00> : vector<16x1xf32>
    %81 = tpu.matmul %67, %78, %cst_57 {dimension_numbers = #tpu.dot_dimension_numbers<[1], [0], [0], [1], [0, 0, 1, 1], [], []>} : vector<16x16xf32>, vector<16x1xf32>, vector<16x1xf32> -> vector<16x1xf32>
    %cst_58 = arith.constant dense<0.000000e+00> : vector<16x1xf32>
    %82 = tpu.matmul %68, %80, %cst_58 {dimension_numbers = #tpu.dot_dimension_numbers<[1], [0], [0], [1], [0, 0, 1, 1], [], []>} : vector<16x16xf32>, vector<16x1xf32>, vector<16x1xf32> -> vector<16x1xf32>
    %83 = arith.addf %81, %82 : vector<16x1xf32>
    %cst_59 = arith.constant 0.000000e+00 : f32
    %84 = vector.broadcast %cst_59 : f32 to vector<16x1xf32>
    %85 = arith.subf %84, %83 : vector<16x1xf32>
    %86 = math.exp %85 : vector<16x1xf32>
    %cst_60 = arith.constant 1.000000e+00 : f32
    %87 = vector.broadcast %cst_60 : f32 to vector<16x1xf32>
    %88 = arith.addf %87, %86 : vector<16x1xf32>
    %cst_61 = arith.constant 1.000000e+00 : f32
    %89 = vector.broadcast %cst_61 : f32 to vector<16x1xf32>
    %90 = arith.divf %89, %88 : vector<16x1xf32>
    %91 = vector.broadcast %90 : vector<16x1xf32> to vector<16x1280xf32>
    %92 = arith.mulf %74, %91 : vector<16x1280xf32>
    %cst_62 = arith.constant dense<0.000000e+00> : vector<1280xf32>
    %93 = vector.multi_reduction <add>, %92, %cst_62 [0] : vector<16x1280xf32> to vector<1280xf32>
    %94 = vector.shape_cast %93 : vector<1280xf32> to vector<1x1280xf32>
    %cst_63 = arith.constant 1.600000e+01 : f32
    %95 = vector.broadcast %cst_63 : f32 to vector<1x1280xf32>
    %96 = arith.divf %94, %95 : vector<1x1280xf32>
    %c0_64 = arith.constant 0 : index
    %c0_65 = arith.constant 0 : index
    %97 = vector.load %arg18[%c0_64, %c0_65] : memref<4x1280xf32, #tpu.memory_space<vmem>>, vector<1x1280xf32>
    tpu.vector_store %arg18[%c0_64, %c0_65], %96 {strides = array<i32>} : memref<4x1280xf32, #tpu.memory_space<vmem>>, vector<1x1280xf32>,
    %c1_66 = arith.constant 1 : index
    %c0_67 = arith.constant 0 : index
    %c0_68 = arith.constant 0 : index
    %98 = vector.load %arg1[%c1_66, %c0_67, %c0_68] : memref<4x16x1280xbf16, #tpu.memory_space<vmem>>, vector<1x16x1280xbf16>
    %99 = vector.shape_cast %98 : vector<1x16x1280xbf16> to vector<16x1280xbf16>
    %100 = arith.extf %99 : vector<16x1280xbf16> to vector<16x1280xf32>
    %101 = vector.extract_strided_slice %66 {offsets = [1, 0], sizes = [1, 1280], strides = [1, 1]} : vector<4x1280xf32> to vector<1x1280xf32>
    %102 = vector.broadcast %101 : vector<1x1280xf32> to vector<16x1280xf32>
    %103 = arith.mulf %100, %102 : vector<16x1280xf32>
    %cst_69 = arith.constant dense<0.000000e+00> : vector<16xf32>
    %104 = vector.multi_reduction <add>, %103, %cst_69 [1] : vector<16x1280xf32> to vector<16xf32>
    %105 = vector.shape_cast %104 : vector<16xf32> to vector<16x1xf32>
    %cst_70 = arith.constant 1.280000e+03 : f32
    %106 = vector.broadcast %cst_70 : f32 to vector<16x1xf32>
    %107 = arith.divf %105, %106 : vector<16x1xf32>
    %cst_71 = arith.constant dense<0xFF800000> : vector<16xf32>
    %108 = vector.multi_reduction <maximumf>, %103, %cst_71 [1] : vector<16x1280xf32> to vector<16xf32>
    %109 = vector.shape_cast %108 : vector<16xf32> to vector<16x1xf32>
    %cst_72 = arith.constant dense<0.000000e+00> : vector<16x1xf32>
    %110 = tpu.matmul %67, %107, %cst_72 {dimension_numbers = #tpu.dot_dimension_numbers<[1], [0], [0], [1], [0, 0, 1, 1], [], []>} : vector<16x16xf32>, vector<16x1xf32>, vector<16x1xf32> -> vector<16x1xf32>
    %cst_73 = arith.constant dense<0.000000e+00> : vector<16x1xf32>
    %111 = tpu.matmul %68, %109, %cst_73 {dimension_numbers = #tpu.dot_dimension_numbers<[1], [0], [0], [1], [0, 0, 1, 1], [], []>} : vector<16x16xf32>, vector<16x1xf32>, vector<16x1xf32> -> vector<16x1xf32>
    %112 = arith.addf %110, %111 : vector<16x1xf32>
    %cst_74 = arith.constant 0.000000e+00 : f32
    %113 = vector.broadcast %cst_74 : f32 to vector<16x1xf32>
    %114 = arith.subf %113, %112 : vector<16x1xf32>
    %115 = math.exp %114 : vector<16x1xf32>
    %cst_75 = arith.constant 1.000000e+00 : f32
    %116 = vector.broadcast %cst_75 : f32 to vector<16x1xf32>
    %117 = arith.addf %116, %115 : vector<16x1xf32>
    %cst_76 = arith.constant 1.000000e+00 : f32
    %118 = vector.broadcast %cst_76 : f32 to vector<16x1xf32>
    %119 = arith.divf %118, %117 : vector<16x1xf32>
    %120 = vector.broadcast %119 : vector<16x1xf32> to vector<16x1280xf32>
    %121 = arith.mulf %103, %120 : vector<16x1280xf32>
    %cst_77 = arith.constant dense<0.000000e+00> : vector<1280xf32>
    %122 = vector.multi_reduction <add>, %121, %cst_77 [0] : vector<16x1280xf32> to vector<1280xf32>
    %123 = vector.shape_cast %122 : vector<1280xf32> to vector<1x1280xf32>
    %cst_78 = arith.constant 1.600000e+01 : f32
    %124 = vector.broadcast %cst_78 : f32 to vector<1x1280xf32>
    %125 = arith.divf %123, %124 : vector<1x1280xf32>
    %c1_79 = arith.constant 1 : index
    %c0_80 = arith.constant 0 : index
    %126 = vector.load %arg18[%c1_79, %c0_80] : memref<4x1280xf32, #tpu.memory_space<vmem>>, vector<1x1280xf32>
    tpu.vector_store %arg18[%c1_79, %c0_80], %125 {strides = array<i32>} : memref<4x1280xf32, #tpu.memory_space<vmem>>, vector<1x1280xf32>,
    %c2_81 = arith.constant 2 : index
    %c0_82 = arith.constant 0 : index
    %c0_83 = arith.constant 0 : index
    %127 = vector.load %arg1[%c2_81, %c0_82, %c0_83] : memref<4x16x1280xbf16, #tpu.memory_space<vmem>>, vector<1x16x1280xbf16>
    %128 = vector.shape_cast %127 : vector<1x16x1280xbf16> to vector<16x1280xbf16>
    %129 = arith.extf %128 : vector<16x1280xbf16> to vector<16x1280xf32>
    %130 = vector.extract_strided_slice %66 {offsets = [2, 0], sizes = [1, 1280], strides = [1, 1]} : vector<4x1280xf32> to vector<1x1280xf32>
    %131 = vector.broadcast %130 : vector<1x1280xf32> to vector<16x1280xf32>
    %132 = arith.mulf %129, %131 : vector<16x1280xf32>
    %cst_84 = arith.constant dense<0.000000e+00> : vector<16xf32>
    %133 = vector.multi_reduction <add>, %132, %cst_84 [1] : vector<16x1280xf32> to vector<16xf32>
    %134 = vector.shape_cast %133 : vector<16xf32> to vector<16x1xf32>
    %cst_85 = arith.constant 1.280000e+03 : f32
    %135 = vector.broadcast %cst_85 : f32 to vector<16x1xf32>
    %136 = arith.divf %134, %135 : vector<16x1xf32>
    %cst_86 = arith.constant dense<0xFF800000> : vector<16xf32>
    %137 = vector.multi_reduction <maximumf>, %132, %cst_86 [1] : vector<16x1280xf32> to vector<16xf32>
    %138 = vector.shape_cast %137 : vector<16xf32> to vector<16x1xf32>
    %cst_87 = arith.constant dense<0.000000e+00> : vector<16x1xf32>
    %139 = tpu.matmul %67, %136, %cst_87 {dimension_numbers = #tpu.dot_dimension_numbers<[1], [0], [0], [1], [0, 0, 1, 1], [], []>} : vector<16x16xf32>, vector<16x1xf32>, vector<16x1xf32> -> vector<16x1xf32>
    %cst_88 = arith.constant dense<0.000000e+00> : vector<16x1xf32>
    %140 = tpu.matmul %68, %138, %cst_88 {dimension_numbers = #tpu.dot_dimension_numbers<[1], [0], [0], [1], [0, 0, 1, 1], [], []>} : vector<16x16xf32>, vector<16x1xf32>, vector<16x1xf32> -> vector<16x1xf32>
    %141 = arith.addf %139, %140 : vector<16x1xf32>
    %cst_89 = arith.constant 0.000000e+00 : f32
    %142 = vector.broadcast %cst_89 : f32 to vector<16x1xf32>
    %143 = arith.subf %142, %141 : vector<16x1xf32>
    %144 = math.exp %143 : vector<16x1xf32>
    %cst_90 = arith.constant 1.000000e+00 : f32
    %145 = vector.broadcast %cst_90 : f32 to vector<16x1xf32>
    %146 = arith.addf %145, %144 : vector<16x1xf32>
    %cst_91 = arith.constant 1.000000e+00 : f32
    %147 = vector.broadcast %cst_91 : f32 to vector<16x1xf32>
    %148 = arith.divf %147, %146 : vector<16x1xf32>
    %149 = vector.broadcast %148 : vector<16x1xf32> to vector<16x1280xf32>
    %150 = arith.mulf %132, %149 : vector<16x1280xf32>
    %cst_92 = arith.constant dense<0.000000e+00> : vector<1280xf32>
    %151 = vector.multi_reduction <add>, %150, %cst_92 [0] : vector<16x1280xf32> to vector<1280xf32>
    %152 = vector.shape_cast %151 : vector<1280xf32> to vector<1x1280xf32>
    %cst_93 = arith.constant 1.600000e+01 : f32
    %153 = vector.broadcast %cst_93 : f32 to vector<1x1280xf32>
    %154 = arith.divf %152, %153 : vector<1x1280xf32>
    %c2_94 = arith.constant 2 : index
    %c0_95 = arith.constant 0 : index
    %155 = vector.load %arg18[%c2_94, %c0_95] : memref<4x1280xf32, #tpu.memory_space<vmem>>, vector<1x1280xf32>
    tpu.vector_store %arg18[%c2_94, %c0_95], %154 {strides = array<i32>} : memref<4x1280xf32, #tpu.memory_space<vmem>>, vector<1x1280xf32>,
    %c3_96 = arith.constant 3 : index
    %c0_97 = arith.constant 0 : index
    %c0_98 = arith.constant 0 : index
    %156 = vector.load %arg1[%c3_96, %c0_97, %c0_98] : memref<4x16x1280xbf16, #tpu.memory_space<vmem>>, vector<1x16x1280xbf16>
    %157 = vector.shape_cast %156 : vector<1x16x1280xbf16> to vector<16x1280xbf16>
    %158 = arith.extf %157 : vector<16x1280xbf16> to vector<16x1280xf32>
    %159 = vector.extract_strided_slice %66 {offsets = [3, 0], sizes = [1, 1280], strides = [1, 1]} : vector<4x1280xf32> to vector<1x1280xf32>
    %160 = vector.broadcast %159 : vector<1x1280xf32> to vector<16x1280xf32>
    %161 = arith.mulf %158, %160 : vector<16x1280xf32>
    %cst_99 = arith.constant dense<0.000000e+00> : vector<16xf32>
    %162 = vector.multi_reduction <add>, %161, %cst_99 [1] : vector<16x1280xf32> to vector<16xf32>
    %163 = vector.shape_cast %162 : vector<16xf32> to vector<16x1xf32>
    %cst_100 = arith.constant 1.280000e+03 : f32
    %164 = vector.broadcast %cst_100 : f32 to vector<16x1xf32>
    %165 = arith.divf %163, %164 : vector<16x1xf32>
    %cst_101 = arith.constant dense<0xFF800000> : vector<16xf32>
    %166 = vector.multi_reduction <maximumf>, %161, %cst_101 [1] : vector<16x1280xf32> to vector<16xf32>
    %167 = vector.shape_cast %166 : vector<16xf32> to vector<16x1xf32>
    %cst_102 = arith.constant dense<0.000000e+00> : vector<16x1xf32>
    %168 = tpu.matmul %67, %165, %cst_102 {dimension_numbers = #tpu.dot_dimension_numbers<[1], [0], [0], [1], [0, 0, 1, 1], [], []>} : vector<16x16xf32>, vector<16x1xf32>, vector<16x1xf32> -> vector<16x1xf32>
    %cst_103 = arith.constant dense<0.000000e+00> : vector<16x1xf32>
    %169 = tpu.matmul %68, %167, %cst_103 {dimension_numbers = #tpu.dot_dimension_numbers<[1], [0], [0], [1], [0, 0, 1, 1], [], []>} : vector<16x16xf32>, vector<16x1xf32>, vector<16x1xf32> -> vector<16x1xf32>
    %170 = arith.addf %168, %169 : vector<16x1xf32>
    %cst_104 = arith.constant 0.000000e+00 : f32
    %171 = vector.broadcast %cst_104 : f32 to vector<16x1xf32>
    %172 = arith.subf %171, %170 : vector<16x1xf32>
    %173 = math.exp %172 : vector<16x1xf32>
    %cst_105 = arith.constant 1.000000e+00 : f32
    %174 = vector.broadcast %cst_105 : f32 to vector<16x1xf32>
    %175 = arith.addf %174, %173 : vector<16x1xf32>
    %cst_106 = arith.constant 1.000000e+00 : f32
    %176 = vector.broadcast %cst_106 : f32 to vector<16x1xf32>
    %177 = arith.divf %176, %175 : vector<16x1xf32>
    %178 = vector.broadcast %177 : vector<16x1xf32> to vector<16x1280xf32>
    %179 = arith.mulf %161, %178 : vector<16x1280xf32>
    %cst_107 = arith.constant dense<0.000000e+00> : vector<1280xf32>
    %180 = vector.multi_reduction <add>, %179, %cst_107 [0] : vector<16x1280xf32> to vector<1280xf32>
    %181 = vector.shape_cast %180 : vector<1280xf32> to vector<1x1280xf32>
    %cst_108 = arith.constant 1.600000e+01 : f32
    %182 = vector.broadcast %cst_108 : f32 to vector<1x1280xf32>
    %183 = arith.divf %181, %182 : vector<1x1280xf32>
    %c3_109 = arith.constant 3 : index
    %c0_110 = arith.constant 0 : index
    %184 = vector.load %arg18[%c3_109, %c0_110] : memref<4x1280xf32, #tpu.memory_space<vmem>>, vector<1x1280xf32>
    tpu.vector_store %arg18[%c3_109, %c0_110], %183 {strides = array<i32>} : memref<4x1280xf32, #tpu.memory_space<vmem>>, vector<1x1280xf32>,
    %c0_111 = arith.constant 0 : index
    %c0_112 = arith.constant 0 : index
    %185 = vector.load %arg18[%c0_111, %c0_112] : memref<4x1280xf32, #tpu.memory_space<vmem>>, vector<4x1280xf32>
    %c0_113 = arith.constant 0 : index
    %c0_114 = arith.constant 0 : index
    %186 = vector.load %arg8[%c0_113, %c0_114] : memref<9x1280xf32, #tpu.memory_space<vmem>>, vector<9x1280xf32>
    %c0_115 = arith.constant 0 : index
    %c0_116 = arith.constant 0 : index
    %187 = vector.load %arg9[%c0_115, %c0_116] : memref<1x9xf32, #tpu.memory_space<vmem>>, vector<1x9xf32>
    %cst_117 = arith.constant dense<0.000000e+00> : vector<4x9xf32>
    %188 = tpu.matmul %185, %186, %cst_117 {dimension_numbers = #tpu.dot_dimension_numbers<[1], [1], [0], [0], [0, 0, 1, 0], [], []>} : vector<4x1280xf32>, vector<9x1280xf32>, vector<4x9xf32> -> vector<4x9xf32>
    %189 = vector.broadcast %187 : vector<1x9xf32> to vector<4x9xf32>
    %190 = arith.addf %188, %189 : vector<4x9xf32>
    %c0_118 = arith.constant 0 : index
    %c0_119 = arith.constant 0 : index
    %191 = vector.load %arg10[%c0_118, %c0_119] : memref<2x1280xf32, #tpu.memory_space<vmem>>, vector<2x1280xf32>
    %c0_120 = arith.constant 0 : index
    %c0_121 = arith.constant 0 : index
    %192 = vector.load %arg11[%c0_120, %c0_121] : memref<1x2xf32, #tpu.memory_space<vmem>>, vector<1x2xf32>
    %cst_122 = arith.constant dense<0.000000e+00> : vector<4x2xf32>
    %193 = tpu.matmul %185, %191, %cst_122 {dimension_numbers = #tpu.dot_dimension_numbers<[1], [1], [0], [0], [0, 0, 1, 0], [], []>} : vector<4x1280xf32>, vector<2x1280xf32>, vector<4x2xf32> -> vector<4x2xf32>
    %194 = vector.broadcast %192 : vector<1x2xf32> to vector<4x2xf32>
    %195 = arith.addf %193, %194 : vector<4x2xf32>
    %cst_123 = arith.constant dense<0xFF800000> : vector<4xf32>
    %196 = vector.multi_reduction <maximumf>, %190, %cst_123 [1] : vector<4x9xf32> to vector<4xf32>
    %197 = vector.shape_cast %196 : vector<4xf32> to vector<4x1xf32>
    %198 = vector.broadcast %197 : vector<4x1xf32> to vector<4x9xf32>
    %199 = arith.subf %190, %198 : vector<4x9xf32>
    %200 = math.exp %199 : vector<4x9xf32>
    %cst_124 = arith.constant dense<0.000000e+00> : vector<4xf32>
    %201 = vector.multi_reduction <add>, %200, %cst_124 [1] : vector<4x9xf32> to vector<4xf32>
    %202 = vector.shape_cast %201 : vector<4xf32> to vector<4x1xf32>
    %203 = vector.broadcast %202 : vector<4x1xf32> to vector<4x9xf32>
    %204 = arith.divf %200, %203 : vector<4x9xf32>
    %c0_125 = arith.constant 0 : index
    %c0_126 = arith.constant 0 : index
    %205 = vector.load %arg14[%c0_125, %c0_126] : memref<4x9xf32, #tpu.memory_space<vmem>>, vector<4x9xf32>
    tpu.vector_store %arg14[%c0_125, %c0_126], %204 {strides = array<i32>} : memref<4x9xf32, #tpu.memory_space<vmem>>, vector<4x9xf32>,
    %cst_127 = arith.constant dense<0xFF800000> : vector<4xf32>
    %206 = vector.multi_reduction <maximumf>, %195, %cst_127 [1] : vector<4x2xf32> to vector<4xf32>
    %207 = vector.shape_cast %206 : vector<4xf32> to vector<4x1xf32>
    %208 = vector.broadcast %207 : vector<4x1xf32> to vector<4x2xf32>
    %209 = arith.subf %195, %208 : vector<4x2xf32>
    %210 = math.exp %209 : vector<4x2xf32>
    %cst_128 = arith.constant dense<0.000000e+00> : vector<4xf32>
    %211 = vector.multi_reduction <add>, %210, %cst_128 [1] : vector<4x2xf32> to vector<4xf32>
    %212 = vector.shape_cast %211 : vector<4xf32> to vector<4x1xf32>
    %213 = vector.broadcast %212 : vector<4x1xf32> to vector<4x2xf32>
    %214 = arith.divf %210, %213 : vector<4x2xf32>
    %c0_129 = arith.constant 0 : index
    %c0_130 = arith.constant 0 : index
    %215 = vector.load %arg16[%c0_129, %c0_130] : memref<4x2xf32, #tpu.memory_space<vmem>>, vector<4x2xf32>
    tpu.vector_store %arg16[%c0_129, %c0_130], %214 {strides = array<i32>} : memref<4x2xf32, #tpu.memory_space<vmem>>, vector<4x2xf32>,
    %c0_131 = arith.constant 0 : index
    %c0_132 = arith.constant 0 : index
    %216 = vector.load %arg12[%c0_131, %c0_132] : memref<5x9xf32, #tpu.memory_space<vmem>>, vector<1x9xf32>
    %c0_133 = arith.constant 0 : index
    %c0_134 = arith.constant 0 : index
    %217 = vector.load %arg13[%c0_133, %c0_134] : memref<5x9xf32, #tpu.memory_space<vmem>>, vector<1x9xf32>
    %218 = vector.broadcast %216 : vector<1x9xf32> to vector<4x9xf32>
    %219 = arith.mulf %190, %218 : vector<4x9xf32>
    %220 = vector.broadcast %217 : vector<1x9xf32> to vector<4x9xf32>
    %221 = arith.addf %219, %220 : vector<4x9xf32>
    %c1_135 = arith.constant 1 : index
    %c0_136 = arith.constant 0 : index
    %222 = vector.load %arg12[%c1_135, %c0_136] : memref<5x9xf32, #tpu.memory_space<vmem>>, vector<1x9xf32>
    %c1_137 = arith.constant 1 : index
    %c0_138 = arith.constant 0 : index
    %223 = vector.load %arg13[%c1_137, %c0_138] : memref<5x9xf32, #tpu.memory_space<vmem>>, vector<1x9xf32>
    %224 = vector.broadcast %222 : vector<1x9xf32> to vector<4x9xf32>
    %225 = arith.mulf %190, %224 : vector<4x9xf32>
    %226 = vector.broadcast %223 : vector<1x9xf32> to vector<4x9xf32>
    %227 = arith.addf %225, %226 : vector<4x9xf32>
    %c2_139 = arith.constant 2 : index
    %c0_140 = arith.constant 0 : index
    %228 = vector.load %arg12[%c2_139, %c0_140] : memref<5x9xf32, #tpu.memory_space<vmem>>, vector<1x9xf32>
    %c2_141 = arith.constant 2 : index
    %c0_142 = arith.constant 0 : index
    %229 = vector.load %arg13[%c2_141, %c0_142] : memref<5x9xf32, #tpu.memory_space<vmem>>, vector<1x9xf32>
    %230 = vector.broadcast %228 : vector<1x9xf32> to vector<4x9xf32>
    %231 = arith.mulf %190, %230 : vector<4x9xf32>
    %232 = vector.broadcast %229 : vector<1x9xf32> to vector<4x9xf32>
    %233 = arith.addf %231, %232 : vector<4x9xf32>
    %c3_143 = arith.constant 3 : index
    %c0_144 = arith.constant 0 : index
    %234 = vector.load %arg12[%c3_143, %c0_144] : memref<5x9xf32, #tpu.memory_space<vmem>>, vector<1x9xf32>
    %c3_145 = arith.constant 3 : index
    %c0_146 = arith.constant 0 : index
    %235 = vector.load %arg13[%c3_145, %c0_146] : memref<5x9xf32, #tpu.memory_space<vmem>>, vector<1x9xf32>
    %236 = vector.broadcast %234 : vector<1x9xf32> to vector<4x9xf32>
    %237 = arith.mulf %190, %236 : vector<4x9xf32>
    %238 = vector.broadcast %235 : vector<1x9xf32> to vector<4x9xf32>
    %239 = arith.addf %237, %238 : vector<4x9xf32>
    %c4_147 = arith.constant 4 : index
    %c0_148 = arith.constant 0 : index
    %240 = vector.load %arg12[%c4_147, %c0_148] : memref<5x9xf32, #tpu.memory_space<vmem>>, vector<1x9xf32>
    %c4_149 = arith.constant 4 : index
    %c0_150 = arith.constant 0 : index
    %241 = vector.load %arg13[%c4_149, %c0_150] : memref<5x9xf32, #tpu.memory_space<vmem>>, vector<1x9xf32>
    %242 = vector.broadcast %240 : vector<1x9xf32> to vector<4x9xf32>
    %243 = arith.mulf %190, %242 : vector<4x9xf32>
    %244 = vector.broadcast %241 : vector<1x9xf32> to vector<4x9xf32>
    %245 = arith.addf %243, %244 : vector<4x9xf32>
    %246 = arith.maximumf %221, %227 : vector<4x9xf32>
    %247 = arith.maximumf %246, %233 : vector<4x9xf32>
    %248 = arith.maximumf %247, %239 : vector<4x9xf32>
    %249 = arith.maximumf %248, %245 : vector<4x9xf32>
    %250 = arith.subf %221, %249 : vector<4x9xf32>
    %251 = math.exp %250 : vector<4x9xf32>
    %252 = arith.subf %227, %249 : vector<4x9xf32>
    %253 = math.exp %252 : vector<4x9xf32>
    %254 = arith.subf %233, %249 : vector<4x9xf32>
    %255 = math.exp %254 : vector<4x9xf32>
    %256 = arith.subf %239, %249 : vector<4x9xf32>
    %257 = math.exp %256 : vector<4x9xf32>
    %258 = arith.subf %245, %249 : vector<4x9xf32>
    %259 = math.exp %258 : vector<4x9xf32>
    %260 = arith.addf %251, %253 : vector<4x9xf32>
    %261 = arith.addf %260, %255 : vector<4x9xf32>
    %262 = arith.addf %261, %257 : vector<4x9xf32>
    %263 = arith.addf %262, %259 : vector<4x9xf32>
    %cst_151 = arith.constant 1.000000e+00 : f32
    %264 = vector.broadcast %cst_151 : f32 to vector<4x9xf32>
    %265 = arith.divf %264, %263 : vector<4x9xf32>
    %266 = arith.mulf %251, %265 : vector<4x9xf32>
    %c0_152 = arith.constant 0 : index
    %c0_153 = arith.constant 0 : index
    %c0_154 = arith.constant 0 : index
    %267 = vector.load %arg15[%c0_152, %c0_153, %c0_154] : memref<5x4x9xf32, #tpu.memory_space<vmem>>, vector<1x4x9xf32>
    %268 = vector.shape_cast %267 : vector<1x4x9xf32> to vector<4x9xf32>
    %269 = vector.shape_cast %266 : vector<4x9xf32> to vector<1x4x9xf32>
    tpu.vector_store %arg15[%c0_152, %c0_153, %c0_154], %269 {strides = array<i32>} : memref<5x4x9xf32, #tpu.memory_space<vmem>>, vector<1x4x9xf32>,
    %270 = arith.mulf %253, %265 : vector<4x9xf32>
    %c1_155 = arith.constant 1 : index
    %c0_156 = arith.constant 0 : index
    %c0_157 = arith.constant 0 : index
    %271 = vector.load %arg15[%c1_155, %c0_156, %c0_157] : memref<5x4x9xf32, #tpu.memory_space<vmem>>, vector<1x4x9xf32>
    %272 = vector.shape_cast %271 : vector<1x4x9xf32> to vector<4x9xf32>
    %273 = vector.shape_cast %270 : vector<4x9xf32> to vector<1x4x9xf32>
    tpu.vector_store %arg15[%c1_155, %c0_156, %c0_157], %273 {strides = array<i32>} : memref<5x4x9xf32, #tpu.memory_space<vmem>>, vector<1x4x9xf32>,
    %274 = arith.mulf %255, %265 : vector<4x9xf32>
    %c2_158 = arith.constant 2 : index
    %c0_159 = arith.constant 0 : index
    %c0_160 = arith.constant 0 : index
    %275 = vector.load %arg15[%c2_158, %c0_159, %c0_160] : memref<5x4x9xf32, #tpu.memory_space<vmem>>, vector<1x4x9xf32>
    %276 = vector.shape_cast %275 : vector<1x4x9xf32> to vector<4x9xf32>
    %277 = vector.shape_cast %274 : vector<4x9xf32> to vector<1x4x9xf32>
    tpu.vector_store %arg15[%c2_158, %c0_159, %c0_160], %277 {strides = array<i32>} : memref<5x4x9xf32, #tpu.memory_space<vmem>>, vector<1x4x9xf32>,
    %278 = arith.mulf %257, %265 : vector<4x9xf32>
    %c3_161 = arith.constant 3 : index
    %c0_162 = arith.constant 0 : index
    %c0_163 = arith.constant 0 : index
    %279 = vector.load %arg15[%c3_161, %c0_162, %c0_163] : memref<5x4x9xf32, #tpu.memory_space<vmem>>, vector<1x4x9xf32>
    %280 = vector.shape_cast %279 : vector<1x4x9xf32> to vector<4x9xf32>
    %281 = vector.shape_cast %278 : vector<4x9xf32> to vector<1x4x9xf32>
    tpu.vector_store %arg15[%c3_161, %c0_162, %c0_163], %281 {strides = array<i32>} : memref<5x4x9xf32, #tpu.memory_space<vmem>>, vector<1x4x9xf32>,
    %282 = arith.mulf %259, %265 : vector<4x9xf32>
    %c4_164 = arith.constant 4 : index
    %c0_165 = arith.constant 0 : index
    %c0_166 = arith.constant 0 : index
    %283 = vector.load %arg15[%c4_164, %c0_165, %c0_166] : memref<5x4x9xf32, #tpu.memory_space<vmem>>, vector<1x4x9xf32>
    %284 = vector.shape_cast %283 : vector<1x4x9xf32> to vector<4x9xf32>
    %285 = vector.shape_cast %282 : vector<4x9xf32> to vector<1x4x9xf32>
    tpu.vector_store %arg15[%c4_164, %c0_165, %c0_166], %285 {strides = array<i32>} : memref<5x4x9xf32, #tpu.memory_space<vmem>>, vector<1x4x9xf32>,
    return
  }
  func.func @transform_0(%arg0: i32) -> (i32, i32, i32) {
    %c0_i32 = arith.constant 0 : i32
    %c0_i32_0 = arith.constant 0 : i32
    %c0_i32_1 = arith.constant 0 : i32
    return %arg0, %c0_i32, %c0_i32_0 : i32, i32, i32
  }
  func.func @transform_1(%arg0: i32) -> (i32, i32) {
    %c0_i32 = arith.constant 0 : i32
    %c0_i32_0 = arith.constant 0 : i32
    %c0_i32_1 = arith.constant 0 : i32
    return %c0_i32, %c0_i32_0 : i32, i32
  }
  func.func @transform_2(%arg0: i32) -> (i32, i32) {
    %c0_i32 = arith.constant 0 : i32
    %c0_i32_0 = arith.constant 0 : i32
    %c0_i32_1 = arith.constant 0 : i32
    return %c0_i32, %c0_i32_0 : i32, i32
  }
  func.func @transform_3(%arg0: i32) -> (i32, i32) {
    %c0_i32 = arith.constant 0 : i32
    %c0_i32_0 = arith.constant 0 : i32
    %c0_i32_1 = arith.constant 0 : i32
    return %c0_i32, %c0_i32_0 : i32, i32
  }
  func.func @transform_4(%arg0: i32) -> (i32, i32) {
    %c0_i32 = arith.constant 0 : i32
    %c0_i32_0 = arith.constant 0 : i32
    %c0_i32_1 = arith.constant 0 : i32
    return %c0_i32, %c0_i32_0 : i32, i32
  }
  func.func @transform_5(%arg0: i32) -> (i32, i32) {
    %c0_i32 = arith.constant 0 : i32
    %c0_i32_0 = arith.constant 0 : i32
    %c0_i32_1 = arith.constant 0 : i32
    return %c0_i32, %c0_i32_0 : i32, i32
  }
  func.func @transform_6(%arg0: i32) -> (i32, i32) {
    %c0_i32 = arith.constant 0 : i32
    %c0_i32_0 = arith.constant 0 : i32
    %c0_i32_1 = arith.constant 0 : i32
    return %c0_i32, %c0_i32_0 : i32, i32
  }
  func.func @transform_7(%arg0: i32) -> (i32, i32) {
    %c0_i32 = arith.constant 0 : i32
    %c0_i32_0 = arith.constant 0 : i32
    %c0_i32_1 = arith.constant 0 : i32
    return %c0_i32, %c0_i32_0 : i32, i32
  }
  func.func @transform_8(%arg0: i32) -> (i32, i32) {
    %c0_i32 = arith.constant 0 : i32
    %c0_i32_0 = arith.constant 0 : i32
    %c0_i32_1 = arith.constant 0 : i32
    return %c0_i32, %c0_i32_0 : i32, i32
  }
  func.func @transform_9(%arg0: i32) -> (i32, i32) {
    %c0_i32 = arith.constant 0 : i32
    %c0_i32_0 = arith.constant 0 : i32
    %c0_i32_1 = arith.constant 0 : i32
    return %c0_i32, %c0_i32_0 : i32, i32
  }
  func.func @transform_10(%arg0: i32) -> (i32, i32) {
    %c0_i32 = arith.constant 0 : i32
    %c0_i32_0 = arith.constant 0 : i32
    %c0_i32_1 = arith.constant 0 : i32
    return %c0_i32, %c0_i32_0 : i32, i32
  }
  func.func @transform_11(%arg0: i32) -> (i32, i32) {
    %c0_i32 = arith.constant 0 : i32
    %c0_i32_0 = arith.constant 0 : i32
    %c0_i32_1 = arith.constant 0 : i32
    return %c0_i32, %c0_i32_0 : i32, i32
  }
  func.func @transform_12(%arg0: i32) -> (i32, i32) {
    %c0_i32 = arith.constant 0 : i32
    %c0_i32_0 = arith.constant 0 : i32
    %c0_i32_1 = arith.constant 0 : i32
    return %c0_i32, %c0_i32_0 : i32, i32
  }
  func.func @transform_13(%arg0: i32) -> (i32, i32) {
    %c0_i32 = arith.constant 0 : i32
    %c0_i32_0 = arith.constant 0 : i32
    return %arg0, %c0_i32 : i32, i32
  }
  func.func @transform_14(%arg0: i32) -> (i32, i32, i32) {
    %c0_i32 = arith.constant 0 : i32
    %c0_i32_0 = arith.constant 0 : i32
    %c0_i32_1 = arith.constant 0 : i32
    return %c0_i32, %arg0, %c0_i32_0 : i32, i32, i32
  }
  func.func @transform_15(%arg0: i32) -> (i32, i32) {
    %c0_i32 = arith.constant 0 : i32
    %c0_i32_0 = arith.constant 0 : i32
    return %arg0, %c0_i32 : i32, i32
  }
}

</mosaic_0001>

<bundles_post_ra>
// kernel: tpu_custom_call.1
= control target key start
LH: loop header
LB: loop body
LE: loop exit
PB: predicated region body
PF: predicated region fallthrough
CT: control target
= control target key end

     0   :  { %21 = vsyncpa [#allocation5], 0  ;;  %v4938_v14 = vmov 16.0   ;;  %s8033_s0 = inlined_call_operand.vmem [shape: bf16[4,16,1280], index: 0, kind: input, shape index: {}]   ;;  %s8034_s1 = inlined_call_operand.vmem [shape: f32[80,1280], index: 1, kind: input, shape index: {}]   ;;  %s8035_s2 = inlined_call_operand.vmem [shape: f32[1,80], index: 2, kind: input, shape index: {}]   ;;  %s8036_s3 = inlined_call_operand.vmem [shape: f32[1280,80], index: 3, kind: input, shape index: {}]   ;;  %s8037_s4 = inlined_call_operand.vmem [shape: f32[1,1280], index: 4, kind: input, shape index: {}]   ;;  %s8038_s5 = inlined_call_operand.vmem [shape: f32[16,16], index: 5, kind: input, shape index: {}]   ;;  %s8039_s6 = inlined_call_operand.vmem [shape: f32[16,16], index: 6, kind: input, shape index: {}]   ;;  %s8040_s7 = inlined_call_operand.vmem [shape: f32[9,1280], index: 7, kind: input, shape index: {}]   ;;  %s8041_s8 = inlined_call_operand.vmem [shape: f32[1,9], index: 8, kind: input, shape index: {}]   ;;  %s8042_s9 = inlined_call_operand.vmem [shape: f32[2,1280], index: 9, kind: input, shape index: {}]   ;;  %s8043_s10 = inlined_call_operand.vmem [shape: f32[1,2], index: 10, kind: input, shape index: {}]   ;;  %s8044_s11 = inlined_call_operand.vmem [shape: f32[5,9], index: 11, kind: input, shape index: {}]   ;;  %s8045_s12 = inlined_call_operand.vmem [shape: f32[5,9], index: 12, kind: input, shape index: {}]   ;;  %s8046_s13 = inlined_call_operand.hbm [shape: f32[4,9], index: 13, kind: output, shape index: {0}]   ;;  %s8047_s14 = inlined_call_operand.hbm [shape: f32[5,4,9], index: 14, kind: output, shape index: {1}]   ;;  %s8048_s15 = inlined_call_operand.vmem [shape: f32[4,2], index: 15, kind: output, shape index: {2}]  }
   0x1   :  { %v1161_v0 = vld [vmem:[%s8034_s1 + $0x2d0] sm:$0xff]  ;;  %v1162_v1 = vld [vmem:[%s8034_s1 + $0x2d8] sm:$0xff]  ;;  %v1163_v2 = vld [vmem:[%s8034_s1 + $0x2e0] sm:$0xff]  ;;  %4790 = vrcp.f32 %v4938_v14 }
   0x2   :  { %1181 = vmatpush.xpose.msra.mxu0 %v1161_v0  ;;  %1201 = vmatpush.xpose.msra.mxu1 %v1162_v1  ;;  %v1164_v3 = vld [vmem:[%s8034_s1 + $0x2e8] sm:$0xff]  ;;  %v1151_v4 = vld [vmem:[%s8034_s1 + $0x280] sm:$0xff]  ;;  %v1153_v6 = vld [vmem:[%s8034_s1 + $0x290] sm:$0xff] }
   0x3   :  { %1221 = vmatpush.xpose.msra.mxu2 %v1163_v2  ;;  %v1152_v5 = vld [vmem:[%s8034_s1 + $0x288] sm:$0xff]  ;;  %1241 = vmatpush.xpose.msra.mxu3 %v1164_v3  ;;  %v1154_v7 = vld [vmem:[%s8034_s1 + $0x298] sm:$0xff]  ;;  %v1141_v8 = vld [vmem:[%s8034_s1 + $0x230] sm:$0xff] }
   0x4   :  { %v1142_v9 = vld [vmem:[%s8034_s1 + $0x238] sm:$0xff]  ;;  %v1143_v10 = vld [vmem:[%s8034_s1 + $0x240] sm:$0xff]  ;;  %v1144_v11 = vld [vmem:[%s8034_s1 + $0x248] sm:$0xff] }
   0x5   :  { %v1131_v12 = vld [vmem:[%s8034_s1 + $0x1e0] sm:$0xff]  ;;  %v1132_v13 = vld [vmem:[%s8034_s1 + $0x1e8] sm:$0xff]  ;;  %v1133_v15 = vld [vmem:[%s8034_s1 + $0x1f0] sm:$0xff] }
   0x6   :  { %1182 = vmatpush.xpose.msra.mxu0 %v1151_v4  ;;  %1202 = vmatpush.xpose.msra.mxu1 %v1152_v5  ;;  %v1134_v16 = vld [vmem:[%s8034_s1 + $0x1f8] sm:$0xff]  ;;  %v1121_v17 = vld [vmem:[%s8034_s1 + $0x190] sm:$0xff]  ;;  %v1123_v19 = vld [vmem:[%s8034_s1 + $0x1a0] sm:$0xff] }
   0x7   :  { %1222 = vmatpush.xpose.msra.mxu2 %v1153_v6  ;;  %1242 = vmatpush.xpose.msra.mxu3 %v1154_v7  ;;  %v1122_v18 = vld [vmem:[%s8034_s1 + $0x198] sm:$0xff]  ;;  %v1124_v20 = vld [vmem:[%s8034_s1 + $0x1a8] sm:$0xff]  ;;  %v5085_v21 = vpop.eup %4790  ;;  %v1111_v22 = vld [vmem:[%s8034_s1 + $0x140] sm:$0xff] }
   0x8   :  { %v5093_v23 = vld [vmem:[%s8033_s0] sm:$0xff]  ;;  %v5098_v24 = vld [vmem:[%s8033_s0 + $0x8] sm:$0xff]  ;;  %v150_v25 = vmul.f32 16.0, %v5085_v21  ;;  %v1113_v27 = vld [vmem:[%s8034_s1 + $0x150] sm:$0xff] }
   0x9   :  { %v1112_v26 = vld [vmem:[%s8034_s1 + $0x148] sm:$0xff]  ;;  %v1114_v28 = vld [vmem:[%s8034_s1 + $0x158] sm:$0xff]  ;;  %v59_v29 = vunpack.c.l.bf16 %v5093_v23  ;;  %v5114_v30 = vld [vmem:[%s8033_s0 + $0x10] sm:$0xff]  ;;  %v60_v33 = vunpack.c.h.bf16 %v5093_v23  ;;  %v61_v34 = vunpack.c.l.bf16 %v5098_v24  ;;  %v62_v35 = vunpack.c.h.bf16 %v5098_v24 }
   0xa   :  { %1183 = vmatpush.xpose.msra.mxu0 %v1141_v8  ;;  %1203 = vmatpush.xpose.msra.mxu1 %v1142_v9  ;;  %v5119_v31 = vld [vmem:[%s8033_s0 + $0x18] sm:$0xff]  ;;  %v5124_v32 = vld [vmem:[%s8033_s0 + $0x28] sm:$0xff]  ;;  %v151_v36 = vsub.f32 1.0, %v150_v25  ;;  %v5132_v37 = vld [vmem:[%s8033_s0 + $0x30] sm:$0xff]  ;;  %v63_v40 = vunpack.c.l.bf16 %v5114_v30  ;;  %v64_v41 = vunpack.c.h.bf16 %v5114_v30 }
   0xb   :  { %1223 = vmatpush.xpose.msra.mxu2 %v1143_v10  ;;  %1243 = vmatpush.xpose.msra.mxu3 %v1144_v11  ;;  %v5137_v38 = vld [vmem:[%s8033_s0 + $0x38] sm:$0xff]  ;;  %v5142_v39 = vld [vmem:[%s8033_s0 + $0x40] sm:$0xff]  ;;  %v65_v42 = vunpack.c.l.bf16 %v5119_v31  ;;  %v66_v43 = vunpack.c.h.bf16 %v5119_v31  ;;  %v69_v44 = vunpack.c.l.bf16 %v5124_v32  ;;  %v70_v45 = vunpack.c.h.bf16 %v5124_v32  ;;  %v1101_v48 = vld [vmem:[%s8034_s1 + $0xf0] sm:$0xff] }
   0xc   :  { %v71_v46 = vunpack.c.l.bf16 %v5132_v37  ;;  %v72_v47 = vunpack.c.h.bf16 %v5132_v37  ;;  %v1102_v49 = vld [vmem:[%s8034_s1 + $0xf8] sm:$0xff]  ;;  %v73_v50 = vunpack.c.l.bf16 %v5137_v38  ;;  %v74_v51 = vunpack.c.h.bf16 %v5137_v38  ;;  %v1103_v54 = vld [vmem:[%s8034_s1 + $0x100] sm:$0xff]  ;;  %v1104_v55 = vld [vmem:[%s8034_s1 + $0x108] sm:$0xff] }
   0xd   :  { %v75_v52 = vunpack.c.l.bf16 %v5142_v39  ;;  %v76_v53 = vunpack.c.h.bf16 %v5142_v39  ;;  %v79_v56 = vadd.f32 %v69_v44, %v59_v29  ;;  %v86_v57 = vadd.f32 %v70_v45, %v60_v33  ;;  %v1091_v0 = vld [vmem:[%s8034_s1 + $0xa0] sm:$0xff]  ;;  %v1092_v5 = vld [vmem:[%s8034_s1 + $0xa8] sm:$0xff]  ;;  %v1093_v6 = vld [vmem:[%s8034_s1 + $0xb0] sm:$0xff] }
   0xe   :  { %1184 = vmatpush.xpose.msra.mxu0 %v1131_v12  ;;  %1204 = vmatpush.xpose.msra.mxu1 %v1132_v13  ;;  %v93_v58 = vadd.f32 %v71_v46, %v61_v34  ;;  %v100_v59 = vadd.f32 %v72_v47, %v62_v35  ;;  %v107_v60 = vadd.f32 %v73_v50, %v63_v40  ;;  %v1094_v7 = vld [vmem:[%s8034_s1 + $0xb8] sm:$0xff] }
   0xf   :  { %1224 = vmatpush.xpose.msra.mxu2 %v1133_v15  ;;  %1244 = vmatpush.xpose.msra.mxu3 %v1134_v16  ;;  %v114_v61 = vadd.f32 %v74_v51, %v64_v41  ;;  %v121_v62 = vadd.f32 %v75_v52, %v65_v42  ;;  %v128_v63 = vadd.f32 %v76_v53, %v66_v43  ;;  %v80_v1 = vrot.slane %v79_v56, 4 }
  0x10   :  { %v87_v2 = vrot.slane %v86_v57, 4  ;;  %v94_v3 = vrot.slane %v93_v58, 4  ;;  %v101_v4 = vrot.slane %v100_v59, 4  ;;  %v108_v8 = vrot.slane %v107_v60, 4 }
  0x11   :  { %v115_v9 = vrot.slane %v114_v61, 4  ;;  %v122_v10 = vrot.slane %v121_v62, 4  ;;  %v5213_v11 = vmul.f32 %v5085_v21, %v151_v36  ;;  %v81_v12 = vadd.f32 %v80_v1, %v79_v56  ;;  %v1083_v36 = vld [vmem:[%s8034_s1 + $0x60] sm:$0xff] }
  0x12   :  { %1185 = vmatpush.xpose.msra.mxu0 %v1121_v17  ;;  %1205 = vmatpush.xpose.msra.mxu1 %v1122_v18  ;;  %v88_v13 = vadd.f32 %v87_v2, %v86_v57  ;;  %v95_v14 = vadd.f32 %v94_v3, %v93_v58  ;;  %v102_v15 = vadd.f32 %v101_v4, %v100_v59  ;;  %v1071_v2 = vld [vmem:[%s8034_s1] sm:$0xff] }
  0x13   :  { %1225 = vmatpush.xpose.msra.mxu2 %v1123_v19  ;;  %1245 = vmatpush.xpose.msra.mxu3 %v1124_v20  ;;  %v109_v16 = vadd.f32 %v108_v8, %v107_v60  ;;  %v116_v17 = vadd.f32 %v115_v9, %v114_v61  ;;  %v123_v18 = vadd.f32 %v122_v10, %v121_v62  ;;  %v129_v19 = vrot.slane %v128_v63, 4  ;;  %v1081_v20 = vld [vmem:[%s8034_s1 + $0x50] sm:$0xff]  ;;  %v1166_v8 = vld [vmem:[%s8034_s1 + $0x2f8] sm:$0xff] }
  0x14   :  { %v89_v25 = vrot.slane %v88_v13, 2 }
  0x15   :  { %v130_v56 = vadd.f32 %v129_v19, %v128_v63  ;;  %v1165_v63 = vld [vmem:[%s8034_s1 + $0x2f0] sm:$0xff]  ;;  %v1074_v19 = vld [vmem:[%s8034_s1 + $0x18] sm:$0xff] }
  0x16   :  { %1186 = vmatpush.xpose.msra.mxu0 %v1111_v22  ;;  %1206 = vmatpush.xpose.msra.mxu1 %v1112_v26  ;;  %v82_v22 = vrot.slane %v81_v12, 2  ;;  %v96_v26 = vrot.slane %v95_v14, 2  ;;  %v90_v58 = vadd.f32 %v89_v25, %v88_v13 }
  0x17   :  { %1226 = vmatpush.xpose.msra.mxu2 %v1113_v27  ;;  %1246 = vmatpush.xpose.msra.mxu3 %v1114_v28  ;;  %v103_v27 = vrot.slane %v102_v15, 2  ;;  %v1082_v28 = vld [vmem:[%s8034_s1 + $0x58] sm:$0xff]  ;;  %v131_v1 = vrot.slane %v130_v56, 2 }
  0x18   :  { %v83_v57 = vadd.f32 %v82_v22, %v81_v12  ;;  %v97_v59 = vadd.f32 %v96_v26, %v95_v14  ;;  %v91_v4 = vrot.slane %v90_v58, 1 }
  0x19   :  { %v104_v60 = vadd.f32 %v103_v27, %v102_v15  ;;  %v132_v13 = vadd.f32 %v131_v1, %v130_v56 }
  0x1a   :  { %1187 = vmatpush.xpose.msra.mxu0 %v1101_v48  ;;  %1207 = vmatpush.xpose.msra.mxu1 %v1102_v49  ;;  %v1084_v48 = vld [vmem:[%s8034_s1 + $0x68] sm:$0xff]  ;;  %v110_v49 = vrot.slane %v109_v16, 2  ;;  %v84_v3 = vrot.slane %v83_v57, 1  ;;  %v92_v15 = vadd.f32 %v91_v4, %v90_v58 }
  0x1b   :  { %1227 = vmatpush.xpose.msra.mxu2 %v1103_v54  ;;  %1247 = vmatpush.xpose.msra.mxu3 %v1104_v55  ;;  %v117_v54 = vrot.slane %v116_v17, 2  ;;  %v124_v55 = vrot.slane %v123_v18, 2  ;;  %v133_v26 = vrot.slane %v132_v13, 1 }
  0x1c   :  { %v111_v61 = vadd.f32 %v110_v49, %v109_v16  ;;  %v85_v14 = vadd.f32 %v84_v3, %v83_v57 }
  0x1d   :  { %v118_v62 = vadd.f32 %v117_v54, %v116_v17 }
  0x1e   :  { %1188 = vmatpush.xpose.msra.mxu0 %v1091_v0  ;;  %1208 = vmatpush.xpose.msra.mxu1 %v1092_v5  ;;  %v125_v0 = vadd.f32 %v124_v55, %v123_v18  ;;  %v98_v5 = vrot.slane %v97_v59, 1  ;;  %v112_v9 = vrot.slane %v111_v61, 1  ;;  %v1073_v18 = vld [vmem:[%s8034_s1 + $0x10] sm:$0xff] }
  0x1f   :  { %1228 = vmatpush.xpose.msra.mxu2 %v1093_v6  ;;  %1248 = vmatpush.xpose.msra.mxu3 %v1094_v7  ;;  %v105_v6 = vrot.slane %v104_v60, 1  ;;  %v1072_v7 = vld [vmem:[%s8034_s1 + $0x8] sm:$0xff]  ;;  %v119_v10 = vrot.slane %v118_v62, 1 }
  0x20   :  { %v126_v12 = vrot.slane %v125_v0, 1  ;;  %v99_v16 = vadd.f32 %v98_v5, %v97_v59 }
  0x21   :  { %v106_v17 = vadd.f32 %v105_v6, %v104_v60  ;;  %v120_v22 = vadd.f32 %v119_v10, %v118_v62 }
  0x22   :  { %1189 = vmatpush.xpose.msra.mxu0 %v1081_v20  ;;  %1209 = vmatpush.xpose.msra.mxu1 %v1082_v28  ;;  %v113_v20 = vadd.f32 %v112_v9, %v111_v61  ;;  %v127_v25 = vadd.f32 %v126_v12, %v125_v0 }
  0x23   :  { %1229 = vmatpush.xpose.msra.mxu2 %v1083_v36  ;;  %1249 = vmatpush.xpose.msra.mxu3 %v1084_v48 }
  0x24   :  { %22 = vsyncpa [#allocation7], 0  ;;  %v1167_v27 = vld [vmem:[%s8034_s1 + $0x300] sm:$0xff]  ;;  %v1168_v28 = vld [vmem:[%s8034_s1 + $0x308] sm:$0xff]  ;;  %v153_v36 = vadd.f32 %v5085_v21, %v5213_v11  ;;  %vm154_vm0 = vweird.f32 %v5085_v21  ;;  %vm184_vm1 = vcmask 1040384   ;;  %vm8054_vm2 = vcmask 1042434  }
  0x25   :  { %v134_v48 = vadd.f32 %v133_v26, %v132_v13  ;;  %vm8053_vm3 = vcmask 1041408   ;;  %vm8052_vm4 = vcmask 1044484   ;;  %vm8051_vm5 = vcmask 1046534   ;;  %v1155_v49 = vld [vmem:[%s8034_s1 + $0x2a0] sm:$0xff]  ;;  %v1156_v11 = vld [vmem:[%s8034_s1 + $0x2a8] sm:$0xff]  ;;  %v5270_v56 = vld [vmem:[%s8033_s0 + $0x50] sm:$0xff] }
  0x26   :  { %1190 = vmatpush.xpose.msra.mxu0 %v1071_v2  ;;  %1210 = vmatpush.xpose.msra.mxu1 %v1072_v7  ;;  %v5261_v54 = vsel %vm154_vm0, %v5085_v21, %v153_v36  ;;  %vm8050_vm6 = vcmask 1045508   ;;  %vm8049_vm7 = vcmask 1043456   ;;  %v210_v55 = vmax.f32 %v59_v29, %v69_v44  ;;  %v1157_v60 = vld [vmem:[%s8034_s1 + $0x2b0] sm:$0xff]  ;;  %v1158_v29 = vld [vmem:[%s8034_s1 + $0x2b8] sm:$0xff]  ;;  %s4943_s22 = smov 4   ;;  %s4490_s25 = sshll.u32 %s8046_s13, 4  ;;  %s4491_s25 = int_to_ptr.hbm [resolvable:$true] %s4490_s25 }
  0x27   :  { %1230 = vmatpush.xpose.msra.mxu2 %v1073_v18  ;;  %1250 = vmatpush.xpose.msra.mxu3 %v1074_v19  ;;  %8122 = vst [vmem:[#allocation10_spill] sm:$0xff] %v5261_v54  ;;  %v156_v57 = vmul.f32 %v5261_v54, %v85_v14  ;;  %v157_v58 = vmul.f32 %v5261_v54, %v92_v15  ;;  %v325_v59 = vunpack.c.l.bf16 %v5270_v56  ;;  %v1145_v5 = vld [vmem:[%s8034_s1 + $0x250] sm:$0xff]  ;;  %v1146_v6 = vld [vmem:[%s8034_s1 + $0x258] sm:$0xff]  ;;  %v1147_v15 = vld [vmem:[%s8034_s1 + $0x260] sm:$0xff]  ;;  %vm1560_vm9 = vcmask 654336  }
  0x28   :  { %v158_v21 = vmul.f32 %v5261_v54, %v99_v16  ;;  %v159_v44 = vmul.f32 %v5261_v54, %v106_v17  ;;  %v160_v61 = vmul.f32 %v5261_v54, %v113_v20  ;;  %v161_v62 = vmul.f32 %v5261_v54, %v120_v22  ;;  %v1148_v16 = vld [vmem:[%s8034_s1 + $0x268] sm:$0xff]  ;;  %v1135_v22 = vld [vmem:[%s8034_s1 + $0x200] sm:$0xff]  ;;  %v1138_v36 = vld [vmem:[%s8034_s1 + $0x218] sm:$0xff] }
  0x29   :  { %v162_v0 = vmul.f32 %v5261_v54, %v127_v25  ;;  %v163_v1 = vmul.f32 %v5261_v54, %v134_v48  ;;  %v176_v2 = vrot.slane %v157_v58, 7  ;;  %v211_v4 = vrot.slane %v210_v55, 4  ;;  %v1125_v30 = vld [vmem:[%s8034_s1 + $0x1b0] sm:$0xff]  ;;  %v1126_v38 = vld [vmem:[%s8034_s1 + $0x1b8] sm:$0xff] }
  0x2a   :  { %1261 = vmatpush.xpose.msrb.mxu0 %v1165_v63  ;;  %1281 = vmatpush.xpose.msrb.mxu1 %v1166_v8  ;;  %v177_v3 = vrot.slane %v158_v21, 6  ;;  %v178_v63 = vrot.slane %v159_v44, 5  ;;  %v179_v7 = vrot.slane %v160_v61, 4  ;;  %v180_v8 = vrot.slane %v161_v62, 3  ;;  %v5356_v39 = vld [vmem:[%s8033_s0 + $0x58] sm:$0xff] }
  0x2b   :  { %1301 = vmatpush.xpose.msrb.mxu2 %v1167_v27  ;;  %1321 = vmatpush.xpose.msrb.mxu3 %v1168_v28  ;;  %v181_v9 = vrot.slane %v162_v0, 2  ;;  %v182_v10 = vrot.slane %v163_v1, 1  ;;  %v185_v12 = vsel %vm184_vm1, %v156_v57, %v176_v2  ;;  %v212_v13 = vmax.f32 %v210_v55, %v211_v4  ;;  %v1137_v28 = vld [vmem:[%s8034_s1 + $0x210] sm:$0xff] }
  0x2c   :  { %v217_v14 = vmax.f32 %v60_v33, %v70_v45  ;;  %v187_v17 = vsel %vm8054_vm2, %v177_v3, %v178_v63  ;;  %v191_v18 = vsel %vm8052_vm4, %v179_v7, %v180_v8  ;;  %v224_v32 = vmax.f32 %v61_v34, %v71_v46  ;;  %v1136_v34 = vld [vmem:[%s8034_s1 + $0x208] sm:$0xff] }
  0x2d   :  { %v231_v23 = vmax.f32 %v62_v35, %v72_v47  ;;  %v189_v33 = vsel %vm8053_vm3, %v185_v12, %v187_v17  ;;  %v193_v45 = vsel %vm8051_vm5, %v181_v9, %v182_v10  ;;  %v213_v19 = vrot.slane %v212_v13, 2  ;;  %v5374_v10 = vld [vmem:[%s8033_s0 + $0x60] sm:$0xff]  ;;  %v1118_v17 = vld [vmem:[%s8034_s1 + $0x178] sm:$0xff] }
  0x2e   :  { %1262 = vmatpush.xpose.msrb.mxu0 %v1155_v49  ;;  %1282 = vmatpush.xpose.msrb.mxu1 %v1156_v11  ;;  %v218_v20 = vrot.slane %v217_v14, 4  ;;  %v195_v37 = vsel %vm8050_vm6, %v191_v18, %v193_v45  ;;  %v225_v24 = vrot.slane %v224_v32, 4  ;;  %v238_v46 = vmax.f32 %v63_v40, %v73_v50 }
  0x2f   :  { %1302 = vmatpush.xpose.msrb.mxu2 %v1157_v60  ;;  %1322 = vmatpush.xpose.msrb.mxu3 %v1158_v29  ;;  %v232_v35 = vrot.slane %v231_v23, 4  ;;  %v197_v47 = vsel %vm8049_vm7, %v189_v33, %v195_v37  ;;  %v214_v25 = vmax.f32 %v212_v13, %v213_v19  ;;  %v326_v27 = vunpack.c.h.bf16 %v5270_v56  ;;  %v1128_v29 = vld [vmem:[%s8034_s1 + $0x1c8] sm:$0xff]  ;;  %v1105_v37 = vld [vmem:[%s8034_s1 + $0x110] sm:$0xff] }
  0x30   :  { %v219_v26 = vmax.f32 %v217_v14, %v218_v20  ;;  %201 = vst [vmem:[#allocation2] ss:$8 sm:$0xf] %v197_v47  ;;  %v226_v48 = vmax.f32 %v224_v32, %v225_v24  ;;  %v239_v40 = vrot.slane %v238_v46, 4  ;;  %v245_v50 = vmax.f32 %v64_v41, %v74_v51  ;;  %v1106_v24 = vld [vmem:[%s8034_s1 + $0x118] sm:$0xff] }
  0x31   :  { %v233_v49 = vmax.f32 %v231_v23, %v232_v35  ;;  %v215_v11 = vrot.slane %v214_v25, 1  ;;  %v252_v57 = vmax.f32 %v65_v42, %v75_v52  ;;  %v259_v58 = vmax.f32 %v66_v43, %v76_v53  ;;  %202 = vst [vmem:[#allocation2] ss:$8 sm:$0xf0] %v197_v47  ;;  %v1127_v53 = vld [vmem:[%s8034_s1 + $0x1c0] sm:$0xff] }
  0x32   :  { %1263 = vmatpush.xpose.msrb.mxu0 %v1145_v5  ;;  %1283 = vmatpush.xpose.msrb.mxu1 %v1146_v6  ;;  %v220_v55 = vrot.slane %v219_v26, 2  ;;  %v227_v41 = vrot.slane %v226_v48, 2  ;;  %v240_v21 = vmax.f32 %v238_v46, %v239_v40  ;;  %v246_v60 = vrot.slane %v245_v50, 4  ;;  %v1115_v5 = vld [vmem:[%s8034_s1 + $0x160] sm:$0xff]  ;;  %v1116_v6 = vld [vmem:[%s8034_s1 + $0x168] sm:$0xff] }
  0x33   :  { %1303 = vmatpush.xpose.msrb.mxu2 %v1147_v15  ;;  %1323 = vmatpush.xpose.msrb.mxu3 %v1148_v16  ;;  %v234_v51 = vrot.slane %v233_v49, 2  ;;  %v216_v31 = vmax.f32 %v214_v25, %v215_v11  ;;  %v253_v43 = vrot.slane %v252_v57, 4  ;;  %v260_v52 = vrot.slane %v259_v58, 4  ;;  %v1117_v16 = vld [vmem:[%s8034_s1 + $0x170] sm:$0xff]  ;;  %v1108_v11 = vld [vmem:[%s8034_s1 + $0x128] sm:$0xff] }
  0x34   :  { %v221_v42 = vmax.f32 %v219_v26, %v220_v55  ;;  %v228_v44 = vmax.f32 %v226_v48, %v227_v41  ;;  %v241_v62 = vrot.slane %v240_v21, 2  ;;  %v247_v0 = vmax.f32 %v245_v50, %v246_v60  ;;  %v5399_v48 = vld [vmem:[%s8033_s0 + $0x78] sm:$0xff]  ;;  %v1107_v50 = vld [vmem:[%s8034_s1 + $0x120] sm:$0xff]  ;;  %v5424_v60 = vld [vmem:[%s8033_s0 + $0x90] sm:$0xff] }
  0x35   :  { %v235_v61 = vmax.f32 %v233_v49, %v234_v51  ;;  %v254_v2 = vmax.f32 %v252_v57, %v253_v43  ;;  %v261_v3 = vmax.f32 %v259_v58, %v260_v52  ;;  %v327_v4 = vunpack.c.l.bf16 %v5356_v39  ;;  %v5404_v49 = vld [vmem:[%s8033_s0 + $0x80] sm:$0xff]  ;;  %v1096_v43 = vld [vmem:[%s8034_s1 + $0xc8] sm:$0xff] }
  0x36   :  { %1264 = vmatpush.xpose.msrb.mxu0 %v1135_v22  ;;  %1284 = vmatpush.xpose.msrb.mxu1 %v1136_v34  ;;  %v222_v1 = vrot.slane %v221_v42, 1  ;;  %v229_v63 = vrot.slane %v228_v44, 1  ;;  %v242_v8 = vmax.f32 %v240_v21, %v241_v62  ;;  %v248_v9 = vrot.slane %v247_v0, 2  ;;  %v5386_v22 = vld [vmem:[%s8033_s0 + $0x68] sm:$0xff] }
  0x37   :  { %1304 = vmatpush.xpose.msrb.mxu2 %v1137_v28  ;;  %1324 = vmatpush.xpose.msrb.mxu3 %v1138_v36  ;;  %v236_v7 = vrot.slane %v235_v61, 1  ;;  %v255_v13 = vrot.slane %v254_v2, 2  ;;  %v262_v14 = vrot.slane %v261_v3, 2  ;;  %v328_v15 = vunpack.c.h.bf16 %v5356_v39 }
  0x38   :  { %v223_v12 = vmax.f32 %v221_v42, %v222_v1  ;;  %v230_v18 = vmax.f32 %v228_v44, %v229_v63  ;;  %v243_v23 = vrot.slane %v242_v8, 1  ;;  %v249_v33 = vmax.f32 %v247_v0, %v248_v9  ;;  %v1095_v42 = vld [vmem:[%s8034_s1 + $0xc0] sm:$0xff] }
  0x39   :  { %v237_v32 = vmax.f32 %v235_v61, %v236_v7  ;;  %v256_v45 = vmax.f32 %v254_v2, %v255_v13  ;;  %v263_v19 = vmax.f32 %v261_v3, %v262_v14  ;;  %v329_v34 = vunpack.c.l.bf16 %v5374_v10  ;;  %v1097_v2 = vld [vmem:[%s8034_s1 + $0xd0] sm:$0xff]  ;;  %v1098_v3 = vld [vmem:[%s8034_s1 + $0xd8] sm:$0xff] }
  0x3a   :  { %1265 = vmatpush.xpose.msrb.mxu0 %v1125_v30  ;;  %1285 = vmatpush.xpose.msrb.mxu1 %v1126_v38  ;;  %v290_v20 = vrot.slane %v223_v12, 7  ;;  %v244_v35 = vmax.f32 %v242_v8, %v243_v23  ;;  %v250_v46 = vrot.slane %v249_v33, 1  ;;  %v291_v47 = vrot.slane %v230_v18, 6  ;;  %v5417_v30 = vld [vmem:[%s8033_s0 + $0x88] sm:$0xff]  ;;  %v5451_v8 = vld [vmem:[%s8033_s0 + $0xa0] sm:$0xff] }
  0x3b   :  { %1305 = vmatpush.xpose.msrb.mxu2 %v1127_v53  ;;  %1325 = vmatpush.xpose.msrb.mxu3 %v1128_v29  ;;  %v292_v25 = vrot.slane %v237_v32, 5  ;;  %v257_v26 = vrot.slane %v256_v45, 1  ;;  %v264_v28 = vrot.slane %v263_v19, 1  ;;  %v330_v40 = vunpack.c.h.bf16 %v5374_v10 }
  0x3c   :  { %v298_v36 = vsel %vm184_vm1, %v216_v31, %v290_v20  ;;  %v251_v55 = vmax.f32 %v249_v33, %v250_v46  ;;  %v293_v57 = vrot.slane %v244_v35, 4  ;;  %v331_v38 = vunpack.c.l.bf16 %v5386_v22 }
  0x3d   :  { %v299_v58 = vsel %vm8054_vm2, %v291_v47, %v292_v25  ;;  %v258_v41 = vmax.f32 %v256_v45, %v257_v26  ;;  %v265_v51 = vmax.f32 %v263_v19, %v264_v28  ;;  %v332_v31 = vunpack.c.h.bf16 %v5386_v22 }
  0x3e   :  { %1266 = vmatpush.xpose.msrb.mxu0 %v1115_v5  ;;  %1286 = vmatpush.xpose.msrb.mxu1 %v1116_v6  ;;  %v300_v21 = vsel %vm8053_vm3, %v298_v36, %v299_v58  ;;  %v294_v52 = vrot.slane %v251_v55, 3  ;;  %v335_v53 = vunpack.c.l.bf16 %v5399_v48  ;;  %v336_v29 = vunpack.c.h.bf16 %v5399_v48 }
  0x3f   :  { %1306 = vmatpush.xpose.msrb.mxu2 %v1117_v16  ;;  %1326 = vmatpush.xpose.msrb.mxu3 %v1118_v17  ;;  %v337_v44 = vunpack.c.l.bf16 %v5404_v49  ;;  %v295_v61 = vrot.slane %v258_v41, 2  ;;  %v296_v62 = vrot.slane %v265_v51, 1  ;;  %v338_v0 = vunpack.c.h.bf16 %v5404_v49  ;;  %v1085_v16 = vld [vmem:[%s8034_s1 + $0x70] sm:$0xff]  ;;  %v1086_v17 = vld [vmem:[%s8034_s1 + $0x78] sm:$0xff] }
  0x40   :  { %v339_v1 = vunpack.c.l.bf16 %v5417_v30  ;;  %v301_v5 = vsel %vm8052_vm4, %v293_v57, %v294_v52  ;;  %v340_v6 = vunpack.c.h.bf16 %v5417_v30  ;;  %v341_v63 = vunpack.c.l.bf16 %v5424_v60 }
  0x41   :  { %v342_v7 = vunpack.c.h.bf16 %v5424_v60  ;;  %v302_v9 = vsel %vm8051_vm5, %v295_v61, %v296_v62  ;;  %v345_v12 = vadd.f32 %v335_v53, %v325_v59  ;;  %v352_v13 = vadd.f32 %v336_v29, %v326_v27  ;;  %v5545_v60 = vld [vmem:[%s8033_s0 + $0xa8] sm:$0xff] }
  0x42   :  { %1267 = vmatpush.xpose.msrb.mxu0 %v1105_v37  ;;  %1287 = vmatpush.xpose.msrb.mxu1 %v1106_v24  ;;  %v574_v14 = vunpack.c.l.bf16 %v5451_v8  ;;  %v303_v18 = vsel %vm8050_vm6, %v301_v5, %v302_v9  ;;  %v359_v32 = vadd.f32 %v337_v44, %v327_v4  ;;  %v366_v23 = vadd.f32 %v338_v0, %v328_v15 }
  0x43   :  { %1307 = vmatpush.xpose.msrb.mxu2 %v1107_v50  ;;  %1327 = vmatpush.xpose.msrb.mxu3 %v1108_v11  ;;  %v373_v33 = vadd.f32 %v339_v1, %v329_v34  ;;  %v304_v45 = vsel %vm8049_vm7, %v300_v21, %v303_v18  ;;  %v346_v19 = vrot.slane %v345_v12, 4  ;;  %v353_v20 = vrot.slane %v352_v13, 4 }
  0x44   :  { %v380_v37 = vadd.f32 %v340_v6, %v330_v40  ;;  %309 = vst [vmem:[#allocation2 + $0x4] ss:$8 sm:$0xf] %v304_v45  ;;  %v360_v24 = vrot.slane %v359_v32, 4  ;;  %v367_v35 = vrot.slane %v366_v23, 4  ;;  %v387_v47 = vadd.f32 %v341_v63, %v331_v38 }
  0x45   :  { %v374_v46 = vrot.slane %v373_v33, 4  ;;  %v347_v25 = vadd.f32 %v346_v19, %v345_v12  ;;  %v354_v26 = vadd.f32 %v353_v20, %v352_v13  ;;  %v394_v36 = vadd.f32 %v342_v7, %v332_v31  ;;  %310 = vst [vmem:[#allocation2 + $0x4] ss:$8 sm:$0xf0] %v304_v45 }
  0x46   :  { %1268 = vmatpush.xpose.msrb.mxu0 %v1095_v42  ;;  %1288 = vmatpush.xpose.msrb.mxu1 %v1096_v43  ;;  %v381_v28 = vrot.slane %v380_v37, 4  ;;  %v361_v50 = vadd.f32 %v360_v24, %v359_v32  ;;  %v368_v11 = vadd.f32 %v367_v35, %v366_v23  ;;  %v388_v57 = vrot.slane %v387_v47, 4 }
  0x47   :  { %1308 = vmatpush.xpose.msrb.mxu2 %v1097_v2  ;;  %1328 = vmatpush.xpose.msrb.mxu3 %v1098_v3  ;;  %v375_v55 = vadd.f32 %v374_v46, %v373_v33  ;;  %v348_v58 = vrot.slane %v347_v25, 2  ;;  %v355_v41 = vrot.slane %v354_v26, 2  ;;  %v395_v21 = vrot.slane %v394_v36, 4 }
  0x48   :  { %v382_v51 = vadd.f32 %v381_v28, %v380_v37  ;;  %v362_v42 = vrot.slane %v361_v50, 2  ;;  %v369_v43 = vrot.slane %v368_v11, 2  ;;  %v389_v61 = vadd.f32 %v388_v57, %v387_v47 }
  0x49   :  { %v376_v52 = vrot.slane %v375_v55, 2  ;;  %v349_v62 = vadd.f32 %v348_v58, %v347_v25  ;;  %v356_v2 = vadd.f32 %v355_v41, %v354_v26  ;;  %v396_v5 = vadd.f32 %v395_v21, %v394_v36 }
  0x4a   :  { %1269 = vmatpush.xpose.msrb.mxu0 %v1085_v16  ;;  %1289 = vmatpush.xpose.msrb.mxu1 %v1086_v17  ;;  %v383_v3 = vrot.slane %v382_v51, 2  ;;  %v363_v9 = vadd.f32 %v362_v42, %v361_v50  ;;  %v370_v12 = vadd.f32 %v369_v43, %v368_v11  ;;  %v390_v16 = vrot.slane %v389_v61, 2 }
  0x4b   :  { %v377_v13 = vadd.f32 %v376_v52, %v375_v55  ;;  %v350_v17 = vrot.slane %v349_v62, 1  ;;  %v357_v18 = vrot.slane %v356_v2, 1  ;;  %v397_v23 = vrot.slane %v396_v5, 2 }
  0x4c   :  { %v384_v32 = vadd.f32 %v383_v3, %v382_v51  ;;  %v364_v33 = vrot.slane %v363_v9, 1  ;;  %v371_v45 = vrot.slane %v370_v12, 1  ;;  %v391_v20 = vadd.f32 %v390_v16, %v389_v61 }
  0x4d   :  { %v378_v19 = vrot.slane %v377_v13, 1  ;;  %v351_v37 = vadd.f32 %v350_v17, %v349_v62  ;;  %v358_v24 = vadd.f32 %v357_v18, %v356_v2  ;;  %v398_v46 = vadd.f32 %v397_v23, %v396_v5 }
  0x4e   :  { %v385_v35 = vrot.slane %v384_v32, 1  ;;  %v365_v47 = vadd.f32 %v364_v33, %v363_v9  ;;  %v372_v25 = vadd.f32 %v371_v45, %v370_v12  ;;  %v392_v28 = vrot.slane %v391_v20, 1 }
  0x4f   :  { %v379_v26 = vadd.f32 %v378_v19, %v377_v13  ;;  %v399_v50 = vrot.slane %v398_v46, 1  ;;  %v415_v11 = vmul.f32 %v351_v37, %v5261_v54  ;;  %v416_v55 = vmul.f32 %v358_v24, %v5261_v54 }
  0x50   :  { %v386_v36 = vadd.f32 %v385_v35, %v384_v32  ;;  %v393_v57 = vadd.f32 %v392_v28, %v391_v20  ;;  %v417_v58 = vmul.f32 %v365_v47, %v5261_v54  ;;  %v418_v41 = vmul.f32 %v372_v25, %v5261_v54 }
  0x51   :  { %v419_v51 = vmul.f32 %v379_v26, %v5261_v54  ;;  %v400_v21 = vadd.f32 %v399_v50, %v398_v46  ;;  %v435_v43 = vrot.slane %v416_v55, 7  ;;  %v459_v52 = vmax.f32 %v325_v59, %v335_v53 }
  0x52   :  { %v420_v42 = vmul.f32 %v386_v36, %v5261_v54  ;;  %v421_v61 = vmul.f32 %v393_v57, %v5261_v54  ;;  %v436_v62 = vrot.slane %v417_v58, 6  ;;  %v437_v2 = vrot.slane %v418_v41, 5 }
  0x53   :  { %v438_v3 = vrot.slane %v419_v51, 4  ;;  %v422_v5 = vmul.f32 %v400_v21, %v5261_v54  ;;  %v443_v12 = vsel %vm184_vm1, %v415_v11, %v435_v43  ;;  %v460_v13 = vrot.slane %v459_v52, 4 }
  0x54   :  { %v439_v9 = vrot.slane %v420_v42, 3  ;;  %v440_v16 = vrot.slane %v421_v61, 2  ;;  %v444_v17 = vsel %vm8054_vm2, %v436_v62, %v437_v2  ;;  %v466_v18 = vmax.f32 %v326_v27, %v336_v29 }
  0x55   :  { %v473_v59 = vmax.f32 %v327_v4, %v337_v44  ;;  %v441_v53 = vrot.slane %v422_v5, 1  ;;  %v445_v32 = vsel %vm8053_vm3, %v443_v12, %v444_v17  ;;  %v461_v33 = vmax.f32 %v459_v52, %v460_v13 }
  0x56   :  { %v446_v23 = vsel %vm8052_vm4, %v438_v3, %v439_v9  ;;  %v467_v45 = vrot.slane %v466_v18, 4  ;;  %v480_v48 = vmax.f32 %v328_v15, %v338_v0  ;;  %v487_v56 = vmax.f32 %v329_v34, %v339_v1  ;;  %v5551_v3 = vld [vmem:[%s8033_s0 + $0xb0] sm:$0xff] }
  0x57   :  { %v474_v19 = vrot.slane %v473_v59, 4  ;;  %v447_v27 = vsel %vm8051_vm5, %v440_v16, %v441_v53  ;;  %v462_v4 = vrot.slane %v461_v33, 2  ;;  %v494_v29 = vmax.f32 %v330_v40, %v340_v6  ;;  %v5557_v53 = vld [vmem:[%s8033_s0 + $0xb8] sm:$0xff] }
  0x58   :  { %v501_v49 = vmax.f32 %v331_v38, %v341_v63  ;;  %v448_v39 = vsel %vm8050_vm6, %v446_v23, %v447_v27  ;;  %v468_v15 = vmax.f32 %v466_v18, %v467_v45  ;;  %v481_v0 = vrot.slane %v480_v48, 4 }
  0x59   :  { %v475_v44 = vmax.f32 %v473_v59, %v474_v19  ;;  %v449_v34 = vsel %vm8049_vm7, %v445_v32, %v448_v39  ;;  %v463_v1 = vmax.f32 %v461_v33, %v462_v4  ;;  %v488_v20 = vrot.slane %v487_v56, 4  ;;  %v5565_v4 = vld [vmem:[%s8033_s0 + $0xc8] sm:$0xff] }
  0x5a   :  { %v495_v37 = vrot.slane %v494_v29, 4  ;;  %454 = vst [vmem:[#allocation2 + $0x1] ss:$8 sm:$0xf] %v449_v34  ;;  %v469_v30 = vrot.slane %v468_v15, 2  ;;  %v482_v10 = vmax.f32 %v480_v48, %v481_v0  ;;  %v502_v40 = vrot.slane %v501_v49, 4 }
  0x5b   :  { %v476_v24 = vrot.slane %v475_v44, 2  ;;  %v464_v6 = vrot.slane %v463_v1, 1  ;;  %v489_v35 = vmax.f32 %v487_v56, %v488_v20  ;;  %v508_v38 = vmax.f32 %v332_v31, %v342_v7  ;;  %455 = vst [vmem:[#allocation2 + $0x1] ss:$8 sm:$0xf0] %v449_v34  ;;  %v5582_v0 = vld [vmem:[%s8033_s0 + $0xe0] sm:$0xff] }
  0x5c   :  { %v496_v46 = vmax.f32 %v494_v29, %v495_v37  ;;  %v470_v63 = vmax.f32 %v468_v15, %v469_v30  ;;  %v483_v25 = vrot.slane %v482_v10, 2  ;;  %v503_v26 = vmax.f32 %v501_v49, %v502_v40  ;;  %v5570_v29 = vld [vmem:[%s8033_s0 + $0xd0] sm:$0xff]  ;;  %v5575_v49 = vld [vmem:[%s8033_s0 + $0xd8] sm:$0xff] }
  0x5d   :  { %v477_v47 = vmax.f32 %v475_v44, %v476_v24  ;;  %v465_v28 = vmax.f32 %v463_v1, %v464_v6  ;;  %v490_v36 = vrot.slane %v489_v35, 2  ;;  %v509_v11 = vrot.slane %v508_v38, 4 }
  0x5e   :  { %v497_v50 = vrot.slane %v496_v46, 2  ;;  %v471_v55 = vrot.slane %v470_v63, 1  ;;  %v484_v58 = vmax.f32 %v482_v10, %v483_v25  ;;  %v504_v41 = vrot.slane %v503_v26, 2 }
  0x5f   :  { %v478_v57 = vrot.slane %v477_v47, 1  ;;  %v491_v22 = vmax.f32 %v489_v35, %v490_v36  ;;  %v510_v7 = vmax.f32 %v508_v38, %v509_v11  ;;  %v575_v51 = vunpack.c.h.bf16 %v5451_v8 }
  0x60   :  { %v498_v31 = vmax.f32 %v496_v46, %v497_v50  ;;  %v472_v21 = vmax.f32 %v470_v63, %v471_v55  ;;  %v485_v43 = vrot.slane %v484_v58, 1  ;;  %v505_v52 = vmax.f32 %v503_v26, %v504_v41 }
  0x61   :  { %v479_v42 = vmax.f32 %v477_v47, %v478_v57  ;;  %v492_v61 = vrot.slane %v491_v22, 1  ;;  %v511_v2 = vrot.slane %v510_v7, 2  ;;  %v576_v5 = vunpack.c.l.bf16 %v5545_v60 }
  0x62   :  { %v499_v62 = vrot.slane %v498_v31, 1  ;;  %v486_v9 = vmax.f32 %v484_v58, %v485_v43  ;;  %v506_v12 = vrot.slane %v505_v52, 1  ;;  %v539_v13 = vrot.slane %v472_v21, 7 }
  0x63   :  { %v540_v16 = vrot.slane %v479_v42, 6  ;;  %v493_v17 = vmax.f32 %v491_v22, %v492_v61  ;;  %v512_v59 = vmax.f32 %v510_v7, %v511_v2  ;;  %v577_v32 = vunpack.c.h.bf16 %v5545_v60 }
  0x64   :  { %v500_v18 = vmax.f32 %v498_v31, %v499_v62  ;;  %v507_v23 = vmax.f32 %v505_v52, %v506_v12  ;;  %v541_v33 = vrot.slane %v486_v9, 5  ;;  %v547_v45 = vsel %vm184_vm1, %v465_v28, %v539_v13 }
  0x65   :  { %v578_v19 = vunpack.c.l.bf16 %v5551_v3  ;;  %v513_v48 = vrot.slane %v512_v59, 1  ;;  %v542_v56 = vrot.slane %v493_v17, 4  ;;  %v579_v39 = vunpack.c.h.bf16 %v5551_v3 }
  0x66   :  { %v543_v27 = vrot.slane %v500_v18, 3  ;;  %v544_v15 = vrot.slane %v507_v23, 2  ;;  %v548_v44 = vsel %vm8054_vm2, %v540_v16, %v541_v33  ;;  %v580_v34 = vunpack.c.l.bf16 %v5557_v53 }
  0x67   :  { %v581_v1 = vunpack.c.h.bf16 %v5557_v53  ;;  %v514_v20 = vmax.f32 %v512_v59, %v513_v48  ;;  %v549_v37 = vsel %vm8053_vm3, %v547_v45, %v548_v44  ;;  %v584_v24 = vunpack.c.l.bf16 %v5565_v4 }
  0x68   :  { %v550_v30 = vsel %vm8052_vm4, %v542_v56, %v543_v27  ;;  %v585_v10 = vunpack.c.h.bf16 %v5565_v4  ;;  %v586_v40 = vunpack.c.l.bf16 %v5570_v29  ;;  %v587_v6 = vunpack.c.h.bf16 %v5570_v29 }
  0x69   :  { %v588_v35 = vunpack.c.l.bf16 %v5575_v49  ;;  %v545_v46 = vrot.slane %v514_v20, 1  ;;  %v589_v38 = vunpack.c.h.bf16 %v5575_v49  ;;  %v590_v63 = vunpack.c.l.bf16 %v5582_v0 }
  0x6a   :  { %v591_v47 = vunpack.c.h.bf16 %v5582_v0  ;;  %v594_v25 = vadd.f32 %v584_v24, %v574_v14  ;;  %v601_v26 = vadd.f32 %v585_v10, %v575_v51  ;;  %v608_v28 = vadd.f32 %v586_v40, %v576_v5 }
  0x6b   :  { %v615_v36 = vadd.f32 %v587_v6, %v577_v32  ;;  %v551_v50 = vsel %vm8051_vm5, %v544_v15, %v545_v46  ;;  %v622_v11 = vadd.f32 %v588_v35, %v578_v19  ;;  %v629_v55 = vadd.f32 %v589_v38, %v579_v39 }
  0x6c   :  { %v636_v57 = vadd.f32 %v590_v63, %v580_v34  ;;  %v552_v58 = vsel %vm8050_vm6, %v550_v30, %v551_v50  ;;  %v595_v41 = vrot.slane %v594_v25, 4  ;;  %v602_v22 = vrot.slane %v601_v26, 4 }
  0x6d   :  { %v609_v31 = vrot.slane %v608_v28, 4  ;;  %v553_v7 = vsel %vm8049_vm7, %v549_v37, %v552_v58  ;;  %v616_v21 = vrot.slane %v615_v36, 4  ;;  %v623_v42 = vrot.slane %v622_v11, 4 }
  0x6e   :  { %v630_v43 = vrot.slane %v629_v55, 4  ;;  %558 = vst [vmem:[#allocation2 + $0x5] ss:$8 sm:$0xf] %v553_v7  ;;  %v596_v52 = vadd.f32 %v595_v41, %v594_v25  ;;  %v603_v61 = vadd.f32 %v602_v22, %v601_v26  ;;  %v637_v2 = vrot.slane %v636_v57, 4 }
  0x6f   :  { %v610_v62 = vadd.f32 %v609_v31, %v608_v28  ;;  %v617_v9 = vadd.f32 %v616_v21, %v615_v36  ;;  %v624_v12 = vadd.f32 %v623_v42, %v622_v11  ;;  %v643_v16 = vadd.f32 %v591_v47, %v581_v1  ;;  %559 = vst [vmem:[#allocation2 + $0x5] ss:$8 sm:$0xf0] %v553_v7 }
  0x70   :  { %v631_v13 = vadd.f32 %v630_v43, %v629_v55  ;;  %v597_v17 = vrot.slane %v596_v52, 2  ;;  %v604_v18 = vrot.slane %v603_v61, 2  ;;  %v638_v23 = vadd.f32 %v637_v2, %v636_v57 }
  0x71   :  { %v611_v59 = vrot.slane %v610_v62, 2  ;;  %v618_v33 = vrot.slane %v617_v9, 2  ;;  %v625_v45 = vrot.slane %v624_v12, 2  ;;  %v644_v56 = vrot.slane %v643_v16, 4 }
  0x72   :  { %v632_v48 = vrot.slane %v631_v13, 2  ;;  %v598_v27 = vadd.f32 %v597_v17, %v596_v52  ;;  %v605_v15 = vadd.f32 %v604_v18, %v603_v61  ;;  %v639_v20 = vrot.slane %v638_v23, 2 }
  0x73   :  { %v612_v44 = vadd.f32 %v611_v59, %v610_v62  ;;  %v619_v37 = vadd.f32 %v618_v33, %v617_v9  ;;  %v626_v30 = vadd.f32 %v625_v45, %v624_v12  ;;  %v645_v25 = vadd.f32 %v644_v56, %v643_v16 }
  0x74   :  { %v633_v46 = vadd.f32 %v632_v48, %v631_v13  ;;  %v599_v26 = vrot.slane %v598_v27, 1  ;;  %v606_v28 = vrot.slane %v605_v15, 1  ;;  %v640_v50 = vadd.f32 %v639_v20, %v638_v23 }
  0x75   :  { %v613_v36 = vrot.slane %v612_v44, 1  ;;  %v620_v11 = vrot.slane %v619_v37, 1  ;;  %v627_v55 = vrot.slane %v626_v30, 1  ;;  %v646_v57 = vrot.slane %v645_v25, 2 }
  0x76   :  { %v634_v58 = vrot.slane %v633_v46, 1  ;;  %v600_v41 = vadd.f32 %v599_v26, %v598_v27  ;;  %v607_v22 = vadd.f32 %v606_v28, %v605_v15  ;;  %v641_v7 = vrot.slane %v640_v50, 1 }
  0x77   :  { %v614_v31 = vadd.f32 %v613_v36, %v612_v44  ;;  %v621_v21 = vadd.f32 %v620_v11, %v619_v37  ;;  %v628_v42 = vadd.f32 %v627_v55, %v626_v30  ;;  %v647_v52 = vadd.f32 %v646_v57, %v645_v25 }
  0x78   :  { %v635_v43 = vadd.f32 %v634_v58, %v633_v46  ;;  %v642_v61 = vadd.f32 %v641_v7, %v640_v50  ;;  %v664_v62 = vmul.f32 %v600_v41, %v5261_v54  ;;  %v665_v2 = vmul.f32 %v607_v22, %v5261_v54 }
  0x79   :  { %v666_v9 = vmul.f32 %v614_v31, %v5261_v54  ;;  %v648_v12 = vrot.slane %v647_v52, 1  ;;  %v667_v13 = vmul.f32 %v621_v21, %v5261_v54  ;;  %v668_v16 = vmul.f32 %v628_v42, %v5261_v54 }
  0x7a   :  { %v669_v17 = vmul.f32 %v635_v43, %v5261_v54  ;;  %v670_v18 = vmul.f32 %v642_v61, %v5261_v54  ;;  %v684_v59 = vrot.slane %v665_v2, 7  ;;  %v708_v33 = vmax.f32 %v574_v14, %v584_v24 }
  0x7b   :  { %v685_v23 = vrot.slane %v666_v9, 6  ;;  %v649_v45 = vadd.f32 %v648_v12, %v647_v52  ;;  %v686_v48 = vrot.slane %v667_v13, 5  ;;  %v687_v56 = vrot.slane %v668_v16, 4  ;;  %v5681_v13 = vld [vmem:[%s8033_s0 + $0xf0] sm:$0xff] }
  0x7c   :  { %v688_v27 = vrot.slane %v669_v17, 3  ;;  %v689_v15 = vrot.slane %v670_v18, 2  ;;  %v692_v44 = vsel %vm184_vm1, %v664_v62, %v684_v59  ;;  %v709_v20 = vrot.slane %v708_v33, 4 }
  0x7d   :  { %v715_v37 = vmax.f32 %v575_v51, %v585_v10  ;;  %v671_v30 = vmul.f32 %v649_v45, %v5261_v54  ;;  %v693_v46 = vsel %vm8054_vm2, %v685_v23, %v686_v48  ;;  %v722_v14 = vmax.f32 %v576_v5, %v586_v40  ;;  %v5687_v23 = vld [vmem:[%s8033_s0 + $0xf8] sm:$0xff] }
  0x7e   :  { %v695_v25 = vsel %vm8052_vm4, %v687_v56, %v688_v27  ;;  %v694_v24 = vsel %vm8053_vm3, %v692_v44, %v693_v46  ;;  %v710_v26 = vmax.f32 %v708_v33, %v709_v20  ;;  %v729_v8 = vmax.f32 %v577_v32, %v587_v6 }
  0x7f   :  { %v716_v28 = vrot.slane %v715_v37, 4  ;;  %v690_v51 = vrot.slane %v671_v30, 1  ;;  %v723_v4 = vrot.slane %v722_v14, 4  ;;  %v736_v10 = vmax.f32 %v578_v19, %v588_v35 }
  0x80   :  { %v743_v5 = vmax.f32 %v579_v39, %v589_v38  ;;  %v711_v40 = vrot.slane %v710_v26, 2  ;;  %v730_v50 = vrot.slane %v729_v8, 4  ;;  %v750_v60 = vmax.f32 %v580_v34, %v590_v63 }
  0x81   :  { %v717_v36 = vmax.f32 %v715_v37, %v716_v28  ;;  %v696_v32 = vsel %vm8051_vm5, %v689_v15, %v690_v51  ;;  %v724_v29 = vmax.f32 %v722_v14, %v723_v4  ;;  %v737_v6 = vrot.slane %v736_v10, 4  ;;  %v5693_v37 = vld [vmem:[%s8033_s0 + $0x100] sm:$0xff]  ;;  %v5699_v14 = vld [vmem:[%s8033_s0 + $0x108] sm:$0xff]  ;;  %v5705_v51 = vld [vmem:[%s8033_s0 + $0x118] sm:$0xff] }
  0x82   :  { %v744_v11 = vrot.slane %v743_v5, 4  ;;  %v697_v19 = vsel %vm8050_vm6, %v695_v25, %v696_v32  ;;  %v712_v35 = vmax.f32 %v710_v26, %v711_v40  ;;  %v731_v55 = vmax.f32 %v729_v8, %v730_v50  ;;  %v5712_v40 = vld [vmem:[%s8033_s0 + $0x120] sm:$0xff] }
  0x83   :  { %v718_v49 = vrot.slane %v717_v36, 2  ;;  %v698_v3 = vsel %vm8049_vm7, %v694_v24, %v697_v19  ;;  %v725_v39 = vrot.slane %v724_v29, 2  ;;  %v738_v38 = vmax.f32 %v736_v10, %v737_v6 }
  0x84   :  { %v745_v58 = vmax.f32 %v743_v5, %v744_v11  ;;  %703 = vst [vmem:[#allocation2 + $0x2] ss:$8 sm:$0xf] %v698_v3  ;;  %v713_v57 = vrot.slane %v712_v35, 1  ;;  %v732_v22 = vrot.slane %v731_v55, 2  ;;  %v751_v34 = vrot.slane %v750_v60, 4 }
  0x85   :  { %v719_v41 = vmax.f32 %v717_v36, %v718_v49  ;;  %v726_v63 = vmax.f32 %v724_v29, %v725_v39  ;;  %v739_v31 = vrot.slane %v738_v38, 2  ;;  %v757_v21 = vmax.f32 %v581_v1, %v591_v47  ;;  %704 = vst [vmem:[#allocation2 + $0x2] ss:$8 sm:$0xf0] %v698_v3  ;;  %v5717_v36 = vld [vmem:[%s8033_s0 + $0x128] sm:$0xff]  ;;  %v5726_v11 = vld [vmem:[%s8033_s0 + $0x130] sm:$0xff] }
  0x86   :  { %v746_v7 = vrot.slane %v745_v58, 2  ;;  %v714_v42 = vmax.f32 %v712_v35, %v713_v57  ;;  %v733_v52 = vmax.f32 %v731_v55, %v732_v22  ;;  %v752_v61 = vmax.f32 %v750_v60, %v751_v34 }
  0x87   :  { %v720_v43 = vrot.slane %v719_v41, 1  ;;  %v727_v62 = vrot.slane %v726_v63, 1  ;;  %v740_v2 = vmax.f32 %v738_v38, %v739_v31  ;;  %v758_v12 = vrot.slane %v757_v21, 4 }
  0x88   :  { %v747_v9 = vmax.f32 %v745_v58, %v746_v7  ;;  %v734_v17 = vrot.slane %v733_v52, 1  ;;  %v753_v0 = vrot.slane %v752_v61, 2  ;;  %v823_v53 = vunpack.c.l.bf16 %v5681_v13 }
  0x89   :  { %v721_v16 = vmax.f32 %v719_v41, %v720_v43  ;;  %v728_v1 = vmax.f32 %v726_v63, %v727_v62  ;;  %v741_v47 = vrot.slane %v740_v2, 1  ;;  %v759_v59 = vmax.f32 %v757_v21, %v758_v12 }
  0x8a   :  { %v748_v18 = vrot.slane %v747_v9, 1  ;;  %v735_v33 = vmax.f32 %v733_v52, %v734_v17  ;;  %v754_v45 = vmax.f32 %v752_v61, %v753_v0  ;;  %v824_v56 = vunpack.c.h.bf16 %v5681_v13 }
  0x8b   :  { %v788_v48 = vrot.slane %v721_v16, 7  ;;  %v742_v27 = vmax.f32 %v740_v2, %v741_v47  ;;  %v760_v44 = vrot.slane %v759_v59, 2  ;;  %v789_v20 = vrot.slane %v728_v1, 6 }
  0x8c   :  { %v749_v15 = vmax.f32 %v747_v9, %v748_v18  ;;  %v755_v30 = vrot.slane %v754_v45, 1  ;;  %v790_v46 = vrot.slane %v735_v33, 5  ;;  %v825_v24 = vunpack.c.l.bf16 %v5687_v23 }
  0x8d   :  { %v796_v25 = vsel %vm184_vm1, %v714_v42, %v788_v48  ;;  %v761_v26 = vmax.f32 %v759_v59, %v760_v44  ;;  %v791_v28 = vrot.slane %v742_v27, 4  ;;  %v826_v4 = vunpack.c.h.bf16 %v5687_v23 }
  0x8e   :  { %v792_v8 = vrot.slane %v749_v15, 3  ;;  %v756_v10 = vmax.f32 %v754_v45, %v755_v30  ;;  %v797_v5 = vsel %vm8054_vm2, %v789_v20, %v790_v46  ;;  %v827_v50 = vunpack.c.l.bf16 %v5693_v37 }
  0x8f   :  { %v828_v60 = vunpack.c.h.bf16 %v5693_v37  ;;  %v762_v32 = vrot.slane %v761_v26, 1  ;;  %v798_v29 = vsel %vm8053_vm3, %v796_v25, %v797_v5  ;;  %v829_v19 = vunpack.c.l.bf16 %v5699_v14  ;;  %v1087_v37 = vld [vmem:[%s8034_s1 + $0x80] sm:$0xff] }
  0x90   :  { %v799_v6 = vsel %vm8052_vm4, %v791_v28, %v792_v8  ;;  %v793_v35 = vrot.slane %v756_v10, 2  ;;  %v830_v49 = vunpack.c.h.bf16 %v5699_v14  ;;  %v833_v55 = vunpack.c.l.bf16 %v5705_v51  ;;  %1309 = vmatpush.xpose.msrb.mxu2 %v1087_v37 }
  0x91   :  { %v834_v3 = vunpack.c.h.bf16 %v5705_v51  ;;  %v763_v39 = vmax.f32 %v761_v26, %v762_v32  ;;  %v835_v38 = vunpack.c.l.bf16 %v5712_v40  ;;  %v836_v58 = vunpack.c.h.bf16 %v5712_v40 }
  0x92   :  { %v837_v57 = vunpack.c.l.bf16 %v5717_v36  ;;  %v838_v41 = vunpack.c.h.bf16 %v5717_v36  ;;  %v839_v22 = vunpack.c.l.bf16 %v5726_v11  ;;  %v840_v34 = vunpack.c.h.bf16 %v5726_v11  ;;  %v1075_v36 = vld [vmem:[%s8034_s1 + $0x20] sm:$0xff] }
  0x93   :  { %v843_v63 = vadd.f32 %v833_v55, %v823_v53  ;;  %v794_v31 = vrot.slane %v763_v39, 1  ;;  %v850_v7 = vadd.f32 %v834_v3, %v824_v56  ;;  %v857_v21 = vadd.f32 %v835_v38, %v825_v24  ;;  %1270 = vmatpush.xpose.msrb.mxu0 %v1075_v36  ;;  %v5857_v36 = vld [vmem:[%s8033_s0 + $0xc0] sm:$0xff] }
  0x94   :  { %v864_v42 = vadd.f32 %v836_v58, %v826_v4  ;;  %v871_v52 = vadd.f32 %v837_v57, %v827_v50  ;;  %v878_v61 = vadd.f32 %v838_v41, %v828_v60  ;;  %v885_v62 = vadd.f32 %v839_v22, %v829_v19 }
  0x95   :  { %v844_v43 = vrot.slane %v843_v63, 4  ;;  %v800_v2 = vsel %vm8051_vm5, %v793_v35, %v794_v31  ;;  %v851_v9 = vrot.slane %v850_v7, 4  ;;  %v858_v12 = vrot.slane %v857_v21, 4 }
  0x96   :  { %v865_v16 = vrot.slane %v864_v42, 4  ;;  %v801_v17 = vsel %vm8050_vm6, %v799_v6, %v800_v2  ;;  %v872_v1 = vrot.slane %v871_v52, 4  ;;  %v879_v47 = vrot.slane %v878_v61, 4 }
  0x97   :  { %v845_v0 = vadd.f32 %v844_v43, %v843_v63  ;;  %v802_v18 = vsel %vm8049_vm7, %v798_v29, %v801_v17  ;;  %v852_v59 = vadd.f32 %v851_v9, %v850_v7  ;;  %v859_v33 = vadd.f32 %v858_v12, %v857_v21 }
  0x98   :  { %v866_v45 = vadd.f32 %v865_v16, %v864_v42  ;;  %807 = vst [vmem:[#allocation2 + $0x6] ss:$8 sm:$0xf] %v802_v18  ;;  %v873_v27 = vadd.f32 %v872_v1, %v871_v52  ;;  %v880_v15 = vadd.f32 %v879_v47, %v878_v61  ;;  %v886_v44 = vrot.slane %v885_v62, 4 }
  0x99   :  { %v846_v48 = vrot.slane %v845_v0, 2  ;;  %v853_v20 = vrot.slane %v852_v59, 2  ;;  %v860_v30 = vrot.slane %v859_v33, 2  ;;  %v892_v25 = vadd.f32 %v840_v34, %v830_v49  ;;  %808 = vst [vmem:[#allocation2 + $0x6] ss:$8 sm:$0xf0] %v802_v18 }
  0x9a   :  { %v867_v46 = vrot.slane %v866_v45, 2  ;;  %v874_v28 = vrot.slane %v873_v27, 2  ;;  %v881_v8 = vrot.slane %v880_v15, 2  ;;  %v887_v10 = vadd.f32 %v886_v44, %v885_v62 }
  0x9b   :  { %v847_v26 = vadd.f32 %v846_v48, %v845_v0  ;;  %v854_v5 = vadd.f32 %v853_v20, %v852_v59  ;;  %v861_v32 = vadd.f32 %v860_v30, %v859_v33  ;;  %v893_v6 = vrot.slane %v892_v25, 4 }
  0x9c   :  { %v868_v29 = vadd.f32 %v867_v46, %v866_v45  ;;  %v875_v39 = vadd.f32 %v874_v28, %v873_v27  ;;  %v882_v63 = vadd.f32 %v881_v8, %v880_v15  ;;  %v888_v31 = vrot.slane %v887_v10, 2 }
  0x9d   :  { %v848_v35 = vrot.slane %v847_v26, 1  ;;  %v855_v7 = vrot.slane %v854_v5, 1  ;;  %v862_v21 = vrot.slane %v861_v32, 1  ;;  %v894_v43 = vadd.f32 %v893_v6, %v892_v25 }
  0x9e   :  { %v869_v42 = vrot.slane %v868_v29, 1  ;;  %v876_v61 = vrot.slane %v875_v39, 1  ;;  %v883_v2 = vrot.slane %v882_v63, 1  ;;  %v889_v9 = vadd.f32 %v888_v31, %v887_v10 }
  0x9f   :  { %v849_v52 = vadd.f32 %v848_v35, %v847_v26  ;;  %v856_v12 = vadd.f32 %v855_v7, %v854_v5  ;;  %v863_v16 = vadd.f32 %v862_v21, %v861_v32  ;;  %v895_v62 = vrot.slane %v894_v43, 2 }
  0xa0   :  { %v870_v17 = vadd.f32 %v869_v42, %v868_v29  ;;  %v877_v0 = vadd.f32 %v876_v61, %v875_v39  ;;  %v884_v1 = vadd.f32 %v883_v2, %v882_v63  ;;  %v890_v47 = vrot.slane %v889_v9, 1 }
  0xa1   :  { %v913_v18 = vmul.f32 %v849_v52, %v5261_v54  ;;  %v896_v59 = vadd.f32 %v895_v62, %v894_v43  ;;  %v914_v33 = vmul.f32 %v856_v12, %v5261_v54  ;;  %v915_v45 = vmul.f32 %v863_v16, %v5261_v54 }
  0xa2   :  { %v916_v48 = vmul.f32 %v870_v17, %v5261_v54  ;;  %v891_v27 = vadd.f32 %v890_v47, %v889_v9  ;;  %v917_v15 = vmul.f32 %v877_v0, %v5261_v54  ;;  %v918_v44 = vmul.f32 %v884_v1, %v5261_v54  ;;  %v1077_v1 = vld [vmem:[%s8034_s1 + $0x30] sm:$0xff] }
  0xa3   :  { %v957_v20 = vmax.f32 %v823_v53, %v833_v55  ;;  %v897_v30 = vrot.slane %v896_v59, 1  ;;  %v933_v46 = vrot.slane %v914_v33, 7  ;;  %v934_v25 = vrot.slane %v915_v45, 6  ;;  %1310 = vmatpush.xpose.msrb.mxu2 %v1077_v1 }
  0xa4   :  { %v935_v26 = vrot.slane %v916_v48, 5  ;;  %v919_v28 = vmul.f32 %v891_v27, %v5261_v54  ;;  %v936_v8 = vrot.slane %v917_v15, 4  ;;  %v937_v10 = vrot.slane %v918_v44, 3  ;;  %v1078_v15 = vld [vmem:[%s8034_s1 + $0x38] sm:$0xff] }
  0xa5   :  { %v958_v5 = vrot.slane %v957_v20, 4  ;;  %v898_v32 = vadd.f32 %v897_v30, %v896_v59  ;;  %v941_v29 = vsel %vm184_vm1, %v913_v18, %v933_v46  ;;  %v964_v35 = vmax.f32 %v824_v56, %v834_v3 }
  0xa6   :  { %v942_v6 = vsel %vm8054_vm2, %v934_v25, %v935_v26  ;;  %v938_v53 = vrot.slane %v919_v28, 2  ;;  %v944_v39 = vsel %vm8052_vm4, %v936_v8, %v937_v10  ;;  %v971_v21 = vmax.f32 %v825_v24, %v835_v38 }
  0xa7   :  { %v943_v55 = vsel %vm8053_vm3, %v941_v29, %v942_v6  ;;  %v959_v63 = vmax.f32 %v957_v20, %v958_v5  ;;  %v920_v31 = vmul.f32 %v898_v32, %v5261_v54  ;;  %v965_v7 = vrot.slane %v964_v35, 4 }
  0xa8   :  { %v978_v13 = vmax.f32 %v826_v4, %v836_v58  ;;  %v985_v51 = vmax.f32 %v827_v50, %v837_v57  ;;  %v992_v3 = vmax.f32 %v828_v60, %v838_v41  ;;  %v999_v24 = vmax.f32 %v829_v19, %v839_v22  ;;  %v1076_v41 = vld [vmem:[%s8034_s1 + $0x28] sm:$0xff] }
  0xa9   :  { %v960_v56 = vrot.slane %v959_v63, 2  ;;  %v939_v40 = vrot.slane %v920_v31, 1  ;;  %v966_v38 = vmax.f32 %v964_v35, %v965_v7  ;;  %v972_v23 = vrot.slane %v971_v21, 4  ;;  %v1088_v22 = vld [vmem:[%s8034_s1 + $0x88] sm:$0xff]  ;;  %1290 = vmatpush.xpose.msrb.mxu1 %v1076_v41  ;;  %v53_v31 = vld [vmem:[%s8033_s0 + $0x20] sm:$0xff] }
  0xaa   :  { %v979_v4 = vrot.slane %v978_v13, 4  ;;  %v986_v42 = vrot.slane %v985_v51, 4  ;;  %v993_v43 = vrot.slane %v992_v3, 4  ;;  %v1000_v52 = vrot.slane %v999_v24, 4  ;;  %1329 = vmatpush.xpose.msrb.mxu3 %v1088_v22  ;;  %v58_v7 = vld [vmem:[%s8033_s0 + $0x48] sm:$0xff] }
  0xab   :  { %v961_v58 = vmax.f32 %v959_v63, %v960_v56  ;;  %v945_v50 = vsel %vm8051_vm5, %v938_v53, %v939_v40  ;;  %v967_v60 = vrot.slane %v966_v38, 2  ;;  %v973_v19 = vmax.f32 %v971_v21, %v972_v23  ;;  %v4530_v23 = vld [vmem:[%s8033_s0 + $0x98] sm:$0xff] }
  0xac   :  { %v980_v57 = vmax.f32 %v978_v13, %v979_v4  ;;  %v946_v61 = vsel %vm8050_vm6, %v944_v39, %v945_v50  ;;  %v987_v9 = vmax.f32 %v985_v51, %v986_v42  ;;  %v994_v12 = vmax.f32 %v992_v3, %v993_v43  ;;  %v4525_v3 = vld [vmem:[%s8033_s0 + $0x70] sm:$0xff] }
  0xad   :  { %v962_v2 = vrot.slane %v961_v58, 1  ;;  %v947_v16 = vsel %vm8049_vm7, %v943_v55, %v946_v61  ;;  %v968_v17 = vmax.f32 %v966_v38, %v967_v60  ;;  %v974_v62 = vrot.slane %v973_v19, 2 }
  0xae   :  { %v981_v0 = vrot.slane %v980_v57, 2  ;;  %952 = vst [vmem:[#allocation2 + $0x3] ss:$8 sm:$0xf] %v947_v16  ;;  %v988_v47 = vrot.slane %v987_v9, 2  ;;  %v995_v18 = vrot.slane %v994_v12, 2  ;;  %v1001_v59 = vmax.f32 %v999_v24, %v1000_v52  ;;  %1330 = vmatpush.xpose.msrb.mxu3 %v1078_v15 }
  0xaf   :  { %v969_v33 = vrot.slane %v968_v17, 1  ;;  %v975_v45 = vmax.f32 %v973_v19, %v974_v62  ;;  %v1006_v27 = vmax.f32 %v830_v49, %v840_v34  ;;  %953 = vst [vmem:[#allocation2 + $0x3] ss:$8 sm:$0xf0] %v947_v16  ;;  %v963_v44 = vmax.f32 %v961_v58, %v962_v2 }
  0xb0   :  { %v982_v48 = vmax.f32 %v980_v57, %v981_v0  ;;  %v989_v20 = vmax.f32 %v987_v9, %v988_v47  ;;  %v996_v30 = vmax.f32 %v994_v12, %v995_v18  ;;  %v1002_v46 = vrot.slane %v1001_v59, 2 }
  0xb1   :  { %v970_v25 = vmax.f32 %v968_v17, %v969_v33  ;;  %v976_v26 = vrot.slane %v975_v45, 1  ;;  %v1007_v8 = vrot.slane %v1006_v27, 4  ;;  %v68_v51 = vunpack.c.h.bf16 %v53_v31 }
  0xb2   :  { %v983_v28 = vrot.slane %v982_v48, 1  ;;  %v990_v10 = vrot.slane %v989_v20, 1  ;;  %v997_v11 = vrot.slane %v996_v30, 1  ;;  %v1003_v5 = vmax.f32 %v1001_v59, %v1002_v46 }
  0xb3   :  { %v977_v14 = vmax.f32 %v975_v45, %v976_v26  ;;  %v1008_v34 = vmax.f32 %v1006_v27, %v1007_v8  ;;  %v1037_v32 = vrot.slane %v970_v25, 7  ;;  %v78_v38 = vunpack.c.h.bf16 %v58_v7 }
  0xb4   :  { %v984_v49 = vmax.f32 %v982_v48, %v983_v28  ;;  %v991_v29 = vmax.f32 %v989_v20, %v990_v10  ;;  %v998_v6 = vmax.f32 %v996_v30, %v997_v11  ;;  %v1004_v35 = vrot.slane %v1003_v5, 1 }
  0xb5   :  { %v1009_v53 = vrot.slane %v1008_v34, 2  ;;  %v1038_v55 = vrot.slane %v977_v14, 6  ;;  %v1045_v63 = vsel %vm184_vm1, %v963_v44, %v1037_v32  ;;  %v334_v4 = vunpack.c.h.bf16 %v4525_v3 }
  0xb6   :  { %v1039_v39 = vrot.slane %v984_v49, 5  ;;  %v1005_v21 = vmax.f32 %v1003_v5, %v1004_v35  ;;  %v1040_v13 = vrot.slane %v991_v29, 4  ;;  %v1041_v56 = vrot.slane %v998_v6, 3 }
  0xb7   :  { %v1010_v24 = vmax.f32 %v1008_v34, %v1009_v53  ;;  %v67_v52 = vunpack.c.l.bf16 %v53_v31  ;;  %v77_v50 = vunpack.c.l.bf16 %v58_v7  ;;  %v142_v60 = vadd.f32 %v78_v38, %v68_v51 }
  0xb8   :  { %v1046_v40 = vsel %vm8054_vm2, %v1038_v55, %v1039_v39  ;;  %v1042_v58 = vrot.slane %v1005_v21, 2  ;;  %v1048_v43 = vsel %vm8052_vm4, %v1040_v13, %v1041_v56  ;;  %v333_v19 = vunpack.c.l.bf16 %v4525_v3 }
  0xb9   :  { %v1047_v42 = vsel %vm8053_vm3, %v1045_v63, %v1046_v40  ;;  %v1011_v37 = vrot.slane %v1010_v24, 1  ;;  %v273_v57 = vmax.f32 %v68_v51, %v78_v38  ;;  %v343_v41 = vunpack.c.l.bf16 %v4530_v23 }
  0xba   :  { %v344_v22 = vunpack.c.h.bf16 %v4530_v23  ;;  %v582_v61 = vunpack.c.l.bf16 %v5857_v36  ;;  %v135_v9 = vadd.f32 %v77_v50, %v67_v52  ;;  %v143_v12 = vrot.slane %v142_v60, 4 }
  0xbb   :  { %v1012_v2 = vmax.f32 %v1010_v24, %v1011_v37  ;;  %v583_v16 = vunpack.c.h.bf16 %v5857_v36  ;;  %v266_v17 = vmax.f32 %v67_v52, %v77_v50  ;;  %v274_v62 = vrot.slane %v273_v57, 4  ;;  %v1170_v52 = vld [vmem:[%s8034_s1 + $0x318] sm:$0xff] }
  0xbc   :  { %v401_v0 = vadd.f32 %v343_v41, %v333_v19  ;;  %v408_v1 = vadd.f32 %v344_v22, %v334_v4  ;;  %v136_v18 = vrot.slane %v135_v9, 4  ;;  %v144_v59 = vadd.f32 %v143_v12, %v142_v60  ;;  %v1150_v36 = vld [vmem:[%s8034_s1 + $0x278] sm:$0xff] }
  0xbd   :  { %v1043_v47 = vrot.slane %v1012_v2, 1  ;;  %v515_v33 = vmax.f32 %v333_v19, %v343_v41  ;;  %v267_v45 = vrot.slane %v266_v17, 4  ;;  %v275_v48 = vmax.f32 %v273_v57, %v274_v62  ;;  %v4540_v57 = vld [vmem:[%s8033_s0 + $0xe8] sm:$0xff] }
  0xbe   :  { %v402_v27 = vrot.slane %v401_v0, 4  ;;  %v409_v15 = vrot.slane %v408_v1, 4  ;;  %v137_v20 = vadd.f32 %v136_v18, %v135_v9  ;;  %v145_v30 = vrot.slane %v144_v59, 2 }
  0xbf   :  { %v1049_v44 = vsel %vm8051_vm5, %v1042_v58, %v1043_v47  ;;  %v516_v46 = vrot.slane %v515_v33, 4  ;;  %v268_v26 = vmax.f32 %v266_v17, %v267_v45  ;;  %v276_v28 = vrot.slane %v275_v48, 2  ;;  %v5889_v45 = vld [vmem:[%s8033_s0 + $0x138] sm:$0xff] }
  0xc0   :  { %v1050_v25 = vsel %vm8050_vm6, %v1048_v43, %v1049_v44  ;;  %v403_v8 = vadd.f32 %v402_v27, %v401_v0  ;;  %v138_v11 = vrot.slane %v137_v20, 2  ;;  %v146_v5 = vadd.f32 %v145_v30, %v144_v59  ;;  %v1159_v44 = vld [vmem:[%s8034_s1 + $0x2c0] sm:$0xff] }
  0xc1   :  { %v1051_v10 = vsel %vm8049_vm7, %v1047_v42, %v1050_v25  ;;  %v410_v14 = vadd.f32 %v409_v15, %v408_v1  ;;  %v269_v49 = vrot.slane %v268_v26, 2  ;;  %v277_v34 = vmax.f32 %v275_v48, %v276_v28 }
  0xc2   :  { %1056 = vst [vmem:[#allocation2 + $0x7] ss:$8 sm:$0xf] %v1051_v10  ;;  %v404_v32 = vrot.slane %v403_v8, 2  ;;  %v517_v29 = vmax.f32 %v515_v33, %v516_v46  ;;  %v139_v6 = vadd.f32 %v138_v11, %v137_v20  ;;  %v147_v35 = vrot.slane %v146_v5, 1  ;;  %v5884_v33 = vld [vmem:[%s8033_s0 + $0x110] sm:$0xff] }
  0xc3   :  { %1057 = vst [vmem:[#allocation2 + $0x7] ss:$8 sm:$0xf0] %v1051_v10  ;;  %v411_v53 = vrot.slane %v410_v14, 2  ;;  %v522_v55 = vmax.f32 %v334_v4, %v344_v22  ;;  %v270_v39 = vmax.f32 %v268_v26, %v269_v49  ;;  %v278_v63 = vrot.slane %v277_v34, 1  ;;  %v1169_v4 = vld [vmem:[%s8034_s1 + $0x310] sm:$0xff] }
  0xc4   :  { %v405_v31 = vadd.f32 %v404_v32, %v403_v8  ;;  %v518_v7 = vrot.slane %v517_v29, 2  ;;  %v140_v21 = vrot.slane %v139_v6, 1  ;;  %v148_v13 = vadd.f32 %v147_v35, %v146_v5  ;;  %v1160_v11 = vld [vmem:[%s8034_s1 + $0x2c8] sm:$0xff]  ;;  %v1149_v5 = vld [vmem:[%s8034_s1 + $0x270] sm:$0xff] }
  0xc5   :  { %v412_v56 = vadd.f32 %v411_v53, %v410_v14  ;;  %v523_v51 = vrot.slane %v522_v55, 4  ;;  %v271_v3 = vrot.slane %v270_v39, 1  ;;  %v279_v24 = vmax.f32 %v277_v34, %v278_v63 }
  0xc6   :  { %v406_v40 = vrot.slane %v405_v31, 1  ;;  %v519_v38 = vmax.f32 %v517_v29, %v518_v7  ;;  %v141_v23 = vadd.f32 %v140_v21, %v139_v6  ;;  %v165_v58 = vmul.f32 %v5261_v54, %v148_v13 }
  0xc7   :  { %v413_v42 = vrot.slane %v412_v56, 1  ;;  %v524_v43 = vmax.f32 %v522_v55, %v523_v51  ;;  %v203_v37 = vlaneseq  ;;  %v272_v50 = vmax.f32 %v270_v39, %v271_v3 }
  0xc8   :  { %v297_v60 = vrot.slane %v279_v24, 7  ;;  %v407_v19 = vadd.f32 %v406_v40, %v405_v31  ;;  %v164_v9 = vmul.f32 %v5261_v54, %v141_v23  ;;  %v183_v12 = vrot.slane %v165_v58, 7 }
  0xc9   :  { %v1063_v41 = vld [vmem:[#allocation2 + $0x10] sm:$0xff]  ;;  %v1061_v22 = vld [vmem:[#allocation2] sm:$0xff]  ;;  %v1064_v2 = vld [vmem:[#allocation2 + $0x18] sm:$0xff]  ;;  %v414_v17 = vadd.f32 %v413_v42, %v412_v56  ;;  %v520_v62 = vrot.slane %v519_v38, 1  ;;  %vm5875_vm8 = vcmp.lt.s32.totalorder %v203_v37, 256  ;;  %v8123_v1 = vmov 0 }
  0xca   :  { %1231 = vmatmul.f32.vlgmr.msra.gmra.mxu2 %v1063_v41  ;;  %1191 = vmatmul.f32.vlgmr.msra.gmra.mxu0 %v1061_v22  ;;  %v1062_v0 = vld [vmem:[#allocation2 + $0x8] sm:$0xff]  ;;  %v8124_v1 = vsel %vm5875_vm8, 4294967295, %v8123_v1  ;;  %v305_v47 = vsel %vm184_vm1, %v272_v50, %v297_v60  ;;  %v423_v18 = vmul.f32 %v407_v19, %v5261_v54  ;;  %v525_v59 = vrot.slane %v524_v43, 2  ;;  %v1067_v29 = vld [vmem:[#allocation2 + $0x30] sm:$0xff]  ;;  %v1065_v6 = vld [vmem:[#allocation2 + $0x20] sm:$0xff] }
  0xcb   :  { %8125 = vst [vmem:[#allocation11_spill] sm:$0xff] %v8124_v1  ;;  %1251 = vmatmul.f32.vlgmr.msra.gmra.mxu3 %v1064_v2  ;;  %1341 = vmatpush.xpose.msra.mxu0 %v1169_v4  ;;  %v198_v48 = vsel %vm184_vm1, %v164_v9, %v183_v12  ;;  %v424_v27 = vmul.f32 %v414_v17, %v5261_v54  ;;  %v592_v30 = vunpack.c.l.bf16 %v4540_v57  ;;  %v593_v46 = vunpack.c.h.bf16 %v4540_v57  ;;  %v1068_v35 = vld [vmem:[#allocation2 + $0x38] sm:$0xff]  ;;  %v1140_v9 = vld [vmem:[%s8034_s1 + $0x228] sm:$0xff] }
  0xcc   :  { %312 = vst.msk [vmem:[#allocation2 + $0x44] ss:$8 sm:$0x3] %vm5875_vm8, %v305_v47  ;;  %v521_v15 = vmax.f32 %v519_v38, %v520_v62  ;;  %1211 = vmatmul.f32.vlgmr.msra.gmra.mxu1 %v1062_v0  ;;  %v526_v20 = vmax.f32 %v524_v43, %v525_v59  ;;  %v831_v25 = vunpack.c.l.bf16 %v5884_v33  ;;  %v832_v28 = vunpack.c.h.bf16 %v5884_v33 }
  0xcd   :  { %208 = vst.msk [vmem:[#allocation2 + $0x40] ss:$8 sm:$0x3] %vm5875_vm8, %v198_v48  ;;  %1361 = vmatpush.xpose.msra.mxu1 %v1170_v52  ;;  %v442_v26 = vrot.slane %v424_v27, 7  ;;  %v841_v8 = vunpack.c.l.bf16 %v5889_v45  ;;  %v842_v10 = vunpack.c.h.bf16 %v5889_v45  ;;  %v650_v49 = vadd.f32 %v592_v30, %v582_v61  ;;  %v1139_v52 = vld [vmem:[%s8034_s1 + $0x220] sm:$0xff]  ;;  %v1129_v45 = vld [vmem:[%s8034_s1 + $0x1d0] sm:$0xff] }
  0xce   :  { %v527_v14 = vrot.slane %v526_v20, 1  ;;  %v657_v34 = vadd.f32 %v593_v46, %v583_v16  ;;  %v764_v32 = vmax.f32 %v582_v61, %v592_v30  ;;  %v771_v55 = vmax.f32 %v583_v16, %v593_v46  ;;  %v1066_v61 = vld [vmem:[#allocation2 + $0x28] sm:$0xff] }
  0xcf   :  { %1342 = vmatpush.xpose.msra.mxu0 %v1159_v44  ;;  %v450_v53 = vsel %vm184_vm1, %v423_v18, %v442_v26  ;;  %v899_v39 = vadd.f32 %v841_v8, %v831_v25  ;;  %v906_v63 = vadd.f32 %v842_v10, %v832_v28  ;;  %v651_v7 = vrot.slane %v650_v49, 4 }
  0xd0   :  { %457 = vst.msk [vmem:[#allocation2 + $0x41] ss:$8 sm:$0x3] %vm5875_vm8, %v450_v53  ;;  %v528_v31 = vmax.f32 %v526_v20, %v527_v14  ;;  %v658_v21 = vrot.slane %v657_v34, 4  ;;  %v765_v13 = vrot.slane %v764_v32, 4  ;;  %v772_v56 = vrot.slane %v771_v55, 4 }
  0xd1   :  { %1362 = vmatpush.xpose.msra.mxu1 %v1160_v11  ;;  %v900_v51 = vrot.slane %v899_v39, 4  ;;  %v907_v3 = vrot.slane %v906_v63, 4  ;;  %v1013_v24 = vmax.f32 %v831_v25, %v841_v8  ;;  %v652_v40 = vadd.f32 %v651_v7, %v650_v49  ;;  %v1130_v25 = vld [vmem:[%s8034_s1 + $0x1d8] sm:$0xff] }
  0xd2   :  { %1311 = vmatmul.f32.vlgmr.msrb.gmra.mxu2 %v1067_v29  ;;  %1271 = vmatmul.f32.vlgmr.msrb.gmra.mxu0 %v1065_v6  ;;  %v546_v16 = vrot.slane %v528_v31, 7  ;;  %v659_v38 = vadd.f32 %v658_v21, %v657_v34  ;;  %v766_v23 = vmax.f32 %v764_v32, %v765_v13  ;;  %v773_v58 = vmax.f32 %v771_v55, %v772_v56  ;;  %v1391_v11 = vld [vmem:[%s8036_s3 + $0x78] sm:$0xff]  ;;  %v1119_v29 = vld [vmem:[%s8034_s1 + $0x180] sm:$0xff]  ;;  %v1120_v31 = vld [vmem:[%s8034_s1 + $0x188] sm:$0xff] }
  0xd3   :  { %1331 = vmatmul.f32.vlgmr.msrb.gmra.mxu3 %v1068_v35  ;;  %1343 = vmatpush.xpose.msra.mxu0 %v1149_v5  ;;  %v901_v42 = vadd.f32 %v900_v51, %v899_v39  ;;  %v908_v43 = vadd.f32 %v907_v3, %v906_v63  ;;  %v1014_v4 = vrot.slane %v1013_v24, 4  ;;  %v653_v50 = vrot.slane %v652_v40, 2  ;;  %v1407_v32 = vld [vmem:[%s8036_s3 + $0xf8] sm:$0xff]  ;;  %v1406_v3 = vld [vmem:[%s8036_s3 + $0xf0] sm:$0xff] }
  0xd4   :  { %1291 = vmatmul.f32.vlgmr.msrb.gmra.mxu1 %v1066_v61  ;;  %v554_v37 = vsel %vm184_vm1, %v521_v15, %v546_v16  ;;  %v660_v60 = vrot.slane %v659_v38, 2  ;;  %v767_v19 = vrot.slane %v766_v23, 2  ;;  %v774_v57 = vrot.slane %v773_v58, 2  ;;  %4551 = vmatpush.xpose.msk.msra.mxu2 %vm1560_vm9, %v1391_v11  ;;  %v1390_v61 = vld [vmem:[%s8036_s3 + $0x70] sm:$0xff]  ;;  %v1435_v11 = vld [vmem:[%s8036_s3 + $0x1d8] sm:$0xff] }
  0xd5   :  { %1363 = vmatpush.xpose.msra.mxu1 %v1150_v36  ;;  %561 = vst.msk [vmem:[#allocation2 + $0x45] ss:$8 sm:$0x3] %vm5875_vm8, %v554_v37  ;;  %v902_v41 = vrot.slane %v901_v42, 2  ;;  %v909_v22 = vrot.slane %v908_v43, 2  ;;  %v1015_v2 = vmax.f32 %v1013_v24, %v1014_v4  ;;  %v654_v12 = vadd.f32 %v653_v50, %v652_v40  ;;  %4568 = vmatpush.xpose.msk.msra.mxu3 %vm1560_vm9, %v1407_v32  ;;  %v1109_v24 = vld [vmem:[%s8034_s1 + $0x130] sm:$0xff] }
  0xd6   :  { %v661_v17 = vadd.f32 %v660_v60, %v659_v38  ;;  %v768_v62 = vmax.f32 %v766_v23, %v767_v19  ;;  %v1020_v0 = vmax.f32 %v832_v28, %v842_v10  ;;  %v775_v47 = vmax.f32 %v773_v58, %v774_v57  ;;  %v1110_v38 = vld [vmem:[%s8034_s1 + $0x138] sm:$0xff]  ;;  %v1099_v4 = vld [vmem:[%s8034_s1 + $0xe0] sm:$0xff]  ;;  %v1100_v37 = vld [vmem:[%s8034_s1 + $0xe8] sm:$0xff] }
  0xd7   :  { %1344 = vmatpush.xpose.msra.mxu0 %v1139_v52  ;;  %v903_v18 = vadd.f32 %v902_v41, %v901_v42  ;;  %v910_v59 = vadd.f32 %v909_v22, %v908_v43  ;;  %v1016_v33 = vrot.slane %v1015_v2, 2  ;;  %v655_v48 = vrot.slane %v654_v12, 1  ;;  %v1389_v42 = vld [vmem:[%s8036_s3 + $0x68] sm:$0xff]  ;;  %v1388_v60 = vld [vmem:[%s8036_s3 + $0x60] sm:$0xff]  ;;  %v1089_v57 = vld [vmem:[%s8034_s1 + $0x90] sm:$0xff] }
  0xd8   :  { %v662_v27 = vrot.slane %v661_v17, 1  ;;  %v769_v15 = vrot.slane %v768_v62, 1  ;;  %v1021_v44 = vrot.slane %v1020_v0, 4  ;;  %v776_v20 = vrot.slane %v775_v47, 1  ;;  %4552 = vmatpush.xpose.msk.msra.mxu2 %vm1560_vm9, %v1390_v61  ;;  %v1405_v43 = vld [vmem:[%s8036_s3 + $0xe8] sm:$0xff]  ;;  %v1404_v19 = vld [vmem:[%s8036_s3 + $0xe0] sm:$0xff] }
  0xd9   :  { %1364 = vmatpush.xpose.msra.mxu1 %v1140_v9  ;;  %v904_v30 = vrot.slane %v903_v18, 1  ;;  %v911_v46 = vrot.slane %v910_v59, 1  ;;  %v656_v26 = vadd.f32 %v655_v48, %v654_v12  ;;  %v1017_v8 = vmax.f32 %v1015_v2, %v1016_v33  ;;  %4569 = vmatpush.xpose.msk.msra.mxu3 %vm1560_vm9, %v1406_v3  ;;  %v1090_v41 = vld [vmem:[%s8034_s1 + $0x98] sm:$0xff]  ;;  %v1079_v9 = vld [vmem:[%s8034_s1 + $0x40] sm:$0xff]  ;;  %v1422_v33 = vld [vmem:[%s8036_s3 + $0x170] sm:$0xff] }
  0xda   :  { %v663_v28 = vadd.f32 %v662_v27, %v661_v17  ;;  %v1022_v10 = vmax.f32 %v1020_v0, %v1021_v44  ;;  %v770_v5 = vmax.f32 %v768_v62, %v769_v15  ;;  %v777_v14 = vmax.f32 %v775_v47, %v776_v20  ;;  %v1387_v22 = vld [vmem:[%s8036_s3 + $0x58] sm:$0xff]  ;;  %v1080_v17 = vld [vmem:[%s8034_s1 + $0x48] sm:$0xff]  ;;  %v1386_v62 = vld [vmem:[%s8036_s3 + $0x50] sm:$0xff] }
  0xdb   :  { %1345 = vmatpush.xpose.msra.mxu0 %v1129_v45  ;;  %v905_v49 = vadd.f32 %v904_v30, %v903_v18  ;;  %v912_v34 = vadd.f32 %v911_v46, %v910_v59  ;;  %v672_v6 = vmul.f32 %v656_v26, %v5261_v54  ;;  %v1018_v21 = vrot.slane %v1017_v8, 1  ;;  %v1403_v2 = vld [vmem:[%s8036_s3 + $0xd8] sm:$0xff]  ;;  %v1402_v18 = vld [vmem:[%s8036_s3 + $0xd0] sm:$0xff]  ;;  %v1385_v45 = vld [vmem:[%s8036_s3 + $0x48] sm:$0xff] }
  0xdc   :  { %v673_v35 = vmul.f32 %v663_v28, %v5261_v54  ;;  %v1023_v53 = vrot.slane %v1022_v10, 2  ;;  %v795_v55 = vrot.slane %v777_v14, 7  ;;  %4553 = vmatpush.xpose.msk.msra.mxu2 %vm1560_vm9, %v1389_v42  ;;  %v1423_v12 = vld [vmem:[%s8036_s3 + $0x178] sm:$0xff]  ;;  %v1438_v48 = vld [vmem:[%s8036_s3 + $0x1f0] sm:$0xff]  ;;  %v1401_v27 = vld [vmem:[%s8036_s3 + $0xc8] sm:$0xff] }
  0xdd   :  { %1365 = vmatpush.xpose.msra.mxu1 %v1130_v25  ;;  %v921_v39 = vmul.f32 %v905_v49, %v5261_v54  ;;  %v922_v63 = vmul.f32 %v912_v34, %v5261_v54  ;;  %v1019_v23 = vmax.f32 %v1017_v8, %v1018_v21  ;;  %4570 = vmatpush.xpose.msk.msra.mxu3 %vm1560_vm9, %v1405_v43  ;;  %v1439_v47 = vld [vmem:[%s8036_s3 + $0x1f8] sm:$0xff]  ;;  %v1421_v15 = vld [vmem:[%s8036_s3 + $0x168] sm:$0xff]  ;;  %v1384_v44 = vld [vmem:[%s8036_s3 + $0x40] sm:$0xff] }
  0xde   :  { %v691_v7 = vrot.slane %v673_v35, 7  ;;  %v1024_v13 = vmax.f32 %v1022_v10, %v1023_v53  ;;  %v803_v56 = vsel %vm184_vm1, %v770_v5, %v795_v55  ;;  %v1437_v20 = vld [vmem:[%s8036_s3 + $0x1e8] sm:$0xff]  ;;  %v1400_v30 = vld [vmem:[%s8036_s3 + $0xc0] sm:$0xff]  ;;  %v1383_v25 = vld [vmem:[%s8036_s3 + $0x38] sm:$0xff] }
  0xdf   :  { %1346 = vmatpush.xpose.msra.mxu0 %v1119_v29  ;;  %v940_v51 = vrot.slane %v922_v63, 7  ;;  %810 = vst.msk [vmem:[#allocation2 + $0x46] ss:$8 sm:$0x3] %vm5875_vm8, %v803_v56  ;;  %v1420_v46 = vld [vmem:[%s8036_s3 + $0x160] sm:$0xff]  ;;  %v1399_v28 = vld [vmem:[%s8036_s3 + $0xb8] sm:$0xff] }
  0xe0   :  { %v699_v36 = vsel %vm184_vm1, %v672_v6, %v691_v7  ;;  %v1025_v16 = vrot.slane %v1024_v13, 1  ;;  %4554 = vmatpush.xpose.msk.msra.mxu2 %vm1560_vm9, %v1388_v60  ;;  %v1436_v26 = vld [vmem:[%s8036_s3 + $0x1e0] sm:$0xff]  ;;  %v1419_v8 = vld [vmem:[%s8036_s3 + $0x158] sm:$0xff]  ;;  %v1382_v10 = vld [vmem:[%s8036_s3 + $0x30] sm:$0xff] }
  0xe1   :  { %1366 = vmatpush.xpose.msra.mxu1 %v1120_v31  ;;  %706 = vst.msk [vmem:[#allocation2 + $0x42] ss:$8 sm:$0x3] %vm5875_vm8, %v699_v36  ;;  %v948_v40 = vsel %vm184_vm1, %v921_v39, %v940_v51  ;;  %4571 = vmatpush.xpose.msk.msra.mxu3 %vm1560_vm9, %v1404_v19  ;;  %v1398_v5 = vld [vmem:[%s8036_s3 + $0xb0] sm:$0xff]  ;;  %v1381_v49 = vld [vmem:[%s8036_s3 + $0x28] sm:$0xff]  ;;  %v1380_v6 = vld [vmem:[%s8036_s3 + $0x20] sm:$0xff] }
  0xe2   :  { %955 = vst.msk [vmem:[#allocation2 + $0x43] ss:$8 sm:$0x3] %vm5875_vm8, %v948_v40  ;;  %v1026_v58 = vmax.f32 %v1024_v13, %v1025_v16  ;;  %v1418_v14 = vld [vmem:[%s8036_s3 + $0x150] sm:$0xff]  ;;  %v1397_v32 = vld [vmem:[%s8036_s3 + $0xa8] sm:$0xff]  ;;  %v1396_v53 = vld [vmem:[%s8036_s3 + $0xa0] sm:$0xff] }
  0xe3   :  { %1347 = vmatpush.xpose.msra.mxu0 %v1109_v24  ;;  %v1434_v34 = vld [vmem:[%s8036_s3 + $0x1d0] sm:$0xff]  ;;  %v1417_v29 = vld [vmem:[%s8036_s3 + $0x148] sm:$0xff]  ;;  %v1416_v55 = vld [vmem:[%s8036_s3 + $0x140] sm:$0xff] }
  0xe4   :  { %v1044_v52 = vrot.slane %v1026_v58, 7  ;;  %4555 = vmatpush.xpose.msk.msra.mxu2 %vm1560_vm9, %v1387_v22  ;;  %v1433_v35 = vld [vmem:[%s8036_s3 + $0x1c8] sm:$0xff]  ;;  %v1379_v39 = vld [vmem:[%s8036_s3 + $0x18] sm:$0xff]  ;;  %v1432_v63 = vld [vmem:[%s8036_s3 + $0x1c0] sm:$0xff] }
  0xe5   :  { %1367 = vmatpush.xpose.msra.mxu1 %v1110_v38  ;;  %4572 = vmatpush.xpose.msk.msra.mxu3 %vm1560_vm9, %v1403_v2  ;;  %v1395_v31 = vld [vmem:[%s8036_s3 + $0x98] sm:$0xff]  ;;  %v1378_v21 = vld [vmem:[%s8036_s3 + $0x10] sm:$0xff]  ;;  %v1377_v51 = vld [vmem:[%s8036_s3 + $0x8] sm:$0xff] }
  0xe6   :  { %v1052_v50 = vsel %vm184_vm1, %v1019_v23, %v1044_v52  ;;  %v1415_v7 = vld [vmem:[%s8036_s3 + $0x138] sm:$0xff]  ;;  %v1394_v61 = vld [vmem:[%s8036_s3 + $0x90] sm:$0xff]  ;;  %v1393_v24 = vld [vmem:[%s8036_s3 + $0x88] sm:$0xff] }
  0xe7   :  { %1348 = vmatpush.xpose.msra.mxu0 %v1099_v4  ;;  %1059 = vst.msk [vmem:[#allocation2 + $0x47] ss:$8 sm:$0x3] %vm5875_vm8, %v1052_v50  ;;  %v1431_v13 = vld [vmem:[%s8036_s3 + $0x1b8] sm:$0xff]  ;;  %v1414_v56 = vld [vmem:[%s8036_s3 + $0x130] sm:$0xff]  ;;  %v1413_v36 = vld [vmem:[%s8036_s3 + $0x128] sm:$0xff] }
  0xe8   :  { %4556 = vmatpush.xpose.msk.msra.mxu2 %vm1560_vm9, %v1386_v62  ;;  %v1430_v3 = vld [vmem:[%s8036_s3 + $0x1b0] sm:$0xff]  ;;  %v1376_v16 = vld [vmem:[%s8036_s3] sm:$0xff]  ;;  %v1429_v40 = vld [vmem:[%s8036_s3 + $0x1a8] sm:$0xff] }
  0xe9   :  { %1368 = vmatpush.xpose.msra.mxu1 %v1100_v37  ;;  %4573 = vmatpush.xpose.msk.msra.mxu3 %vm1560_vm9, %v1402_v18  ;;  %v1455_v38 = vld [vmem:[%s8036_s3 + $0x278] sm:$0xff]  ;;  %v1392_v23 = vld [vmem:[%s8036_s3 + $0x80] sm:$0xff]  ;;  %v1454_v4 = vld [vmem:[%s8036_s3 + $0x270] sm:$0xff] }
  0xea   :  { %v1412_v58 = vld [vmem:[%s8036_s3 + $0x120] sm:$0xff]  ;;  %v1471_v42 = vld [vmem:[%s8036_s3 + $0x2f8] sm:$0xff]  ;;  %v1470_v37 = vld [vmem:[%s8036_s3 + $0x2f0] sm:$0xff] }
  0xeb   :  { %1349 = vmatpush.xpose.msra.mxu0 %v1089_v57  ;;  %v1428_v43 = vld [vmem:[%s8036_s3 + $0x1a0] sm:$0xff]  ;;  %v1411_v52 = vld [vmem:[%s8036_s3 + $0x118] sm:$0xff]  ;;  %v1453_v60 = vld [vmem:[%s8036_s3 + $0x268] sm:$0xff] }
  0xec   :  { %4557 = vmatpush.xpose.msk.msra.mxu2 %vm1560_vm9, %v1385_v45  ;;  %v1427_v50 = vld [vmem:[%s8036_s3 + $0x198] sm:$0xff]  ;;  %v1410_v19 = vld [vmem:[%s8036_s3 + $0x110] sm:$0xff]  ;;  %v1469_v57 = vld [vmem:[%s8036_s3 + $0x2e8] sm:$0xff] }
  0xed   :  { %1369 = vmatpush.xpose.msra.mxu1 %v1090_v41  ;;  %4574 = vmatpush.xpose.msk.msra.mxu3 %vm1560_vm9, %v1401_v27  ;;  %v1426_v41 = vld [vmem:[%s8036_s3 + $0x190] sm:$0xff]  ;;  %v1452_v22 = vld [vmem:[%s8036_s3 + $0x260] sm:$0xff]  ;;  %v1409_v2 = vld [vmem:[%s8036_s3 + $0x108] sm:$0xff] }
  0xee   :  { %v1069_v0 = vld [vmem:[#allocation2 + $0x40] sm:$0xff]  ;;  %v1070_v59 = vld [vmem:[#allocation2 + $0x48] sm:$0xff]  ;;  %v1408_v62 = vld [vmem:[%s8036_s3 + $0x100] sm:$0xff] }
  0xef   :  { %1350 = vmatpush.xpose.msra.mxu0 %v1079_v9  ;;  %v1468_v9 = vld [vmem:[%s8036_s3 + $0x2e0] sm:$0xff]  ;;  %v1466_v45 = vld [vmem:[%s8036_s3 + $0x2d0] sm:$0xff] }
  0xf0   :  { %4558 = vmatpush.xpose.msk.msra.mxu2 %vm1560_vm9, %v1384_v44  ;;  %v1424_v18 = vld [vmem:[%s8036_s3 + $0x180] sm:$0xff]  ;;  %v1502_v27 = vld [vmem:[%s8036_s3 + $0x3f0] sm:$0xff]  ;;  %v1465_v44 = vld [vmem:[%s8036_s3 + $0x2c8] sm:$0xff] }
  0xf1   :  { %1370 = vmatpush.xpose.msra.mxu1 %v1080_v17  ;;  %4575 = vmatpush.xpose.msk.msra.mxu3 %vm1560_vm9, %v1400_v30  ;;  %v1451_v17 = vld [vmem:[%s8036_s3 + $0x258] sm:$0xff]  ;;  %v1501_v30 = vld [vmem:[%s8036_s3 + $0x3e8] sm:$0xff] }
  0xf2   :  { %1351 = vmatmul.f32.vlgmr.msra.gmra.mxu0 %v1069_v0  ;;  %v1467_v0 = vld [vmem:[%s8036_s3 + $0x2d8] sm:$0xff] }
  0xf3   :  { %4585 = vmatpush.xpose.msk.msrb.mxu0 %vm1560_vm9, %v1423_v12  ;;  %v1425_v12 = vld [vmem:[%s8036_s3 + $0x188] sm:$0xff] }
  0xf4   :  { %1371 = vmatmul.f32.vlgmr.msra.gmra.mxu1 %v1070_v59  ;;  %4559 = vmatpush.xpose.msk.msra.mxu2 %vm1560_vm9, %v1383_v25  ;;  %v1503_v59 = vld [vmem:[%s8036_s3 + $0x3f8] sm:$0xff]  ;;  %v1464_v25 = vld [vmem:[%s8036_s3 + $0x2c0] sm:$0xff] }
  0xf5   :  { %4602 = vmatpush.xpose.msk.msrb.mxu1 %vm1560_vm9, %v1439_v47  ;;  %4576 = vmatpush.xpose.msk.msra.mxu3 %vm1560_vm9, %v1399_v28  ;;  %v1487_v47 = vld [vmem:[%s8036_s3 + $0x378] sm:$0xff]  ;;  %v1500_v28 = vld [vmem:[%s8036_s3 + $0x3e0] sm:$0xff] }
  0xf7   :  { %4586 = vmatpush.xpose.msk.msrb.mxu0 %vm1560_vm9, %v1422_v33  ;;  %v1450_v33 = vld [vmem:[%s8036_s3 + $0x250] sm:$0xff] }
  0xf8   :  { %4560 = vmatpush.xpose.msk.msra.mxu2 %vm1560_vm9, %v1382_v10  ;;  %v1463_v10 = vld [vmem:[%s8036_s3 + $0x2b8] sm:$0xff] }
  0xf9   :  { %4603 = vmatpush.xpose.msk.msrb.mxu1 %vm1560_vm9, %v1438_v48  ;;  %4577 = vmatpush.xpose.msk.msra.mxu3 %vm1560_vm9, %v1398_v5  ;;  %v1486_v48 = vld [vmem:[%s8036_s3 + $0x370] sm:$0xff] }
  0xfa   :  { %v1446_v5 = vld [vmem:[%s8036_s3 + $0x230] sm:$0xff] }
  0xfb   :  { %4587 = vmatpush.xpose.msk.msrb.mxu0 %vm1560_vm9, %v1421_v15  ;;  %v1449_v15 = vld [vmem:[%s8036_s3 + $0x248] sm:$0xff] }
  0xfc   :  { %4561 = vmatpush.xpose.msk.msra.mxu2 %vm1560_vm9, %v1381_v49  ;;  %v1462_v49 = vld [vmem:[%s8036_s3 + $0x2b0] sm:$0xff] }
  0xfd   :  { %4604 = vmatpush.xpose.msk.msrb.mxu1 %vm1560_vm9, %v1437_v20  ;;  %4578 = vmatpush.xpose.msk.msra.mxu3 %vm1560_vm9, %v1397_v32  ;;  %v1485_v20 = vld [vmem:[%s8036_s3 + $0x368] sm:$0xff] }
  0xfe   :  { %v1445_v32 = vld [vmem:[%s8036_s3 + $0x228] sm:$0xff] }
  0xff   :  { %4588 = vmatpush.xpose.msk.msrb.mxu0 %vm1560_vm9, %v1420_v46  ;;  %v1448_v46 = vld [vmem:[%s8036_s3 + $0x240] sm:$0xff] }
 0x100   :  { %4562 = vmatpush.xpose.msk.msra.mxu2 %vm1560_vm9, %v1380_v6  ;;  %v1461_v6 = vld [vmem:[%s8036_s3 + $0x2a8] sm:$0xff] }
 0x101   :  { %4605 = vmatpush.xpose.msk.msrb.mxu1 %vm1560_vm9, %v1436_v26  ;;  %4579 = vmatpush.xpose.msk.msra.mxu3 %vm1560_vm9, %v1396_v53  ;;  %v1484_v26 = vld [vmem:[%s8036_s3 + $0x360] sm:$0xff] }
 0x102   :  { %v1444_v53 = vld [vmem:[%s8036_s3 + $0x220] sm:$0xff] }
 0x103   :  { %4589 = vmatpush.xpose.msk.msrb.mxu0 %vm1560_vm9, %v1419_v8  ;;  %v1447_v8 = vld [vmem:[%s8036_s3 + $0x238] sm:$0xff] }
 0x104   :  { %4563 = vmatpush.xpose.msk.msra.mxu2 %vm1560_vm9, %v1379_v39  ;;  %v1460_v39 = vld [vmem:[%s8036_s3 + $0x2a0] sm:$0xff] }
 0x105   :  { %4606 = vmatpush.xpose.msk.msrb.mxu1 %vm1560_vm9, %v1435_v11  ;;  %4580 = vmatpush.xpose.msk.msra.mxu3 %vm1560_vm9, %v1395_v31  ;;  %v1483_v11 = vld [vmem:[%s8036_s3 + $0x358] sm:$0xff] }
 0x106   :  { %v1443_v31 = vld [vmem:[%s8036_s3 + $0x218] sm:$0xff] }
 0x107   :  { %4590 = vmatpush.xpose.msk.msrb.mxu0 %vm1560_vm9, %v1418_v14  ;;  %v1499_v14 = vld [vmem:[%s8036_s3 + $0x3d8] sm:$0xff] }
 0x108   :  { %4564 = vmatpush.xpose.msk.msra.mxu2 %vm1560_vm9, %v1378_v21  ;;  %v1459_v21 = vld [vmem:[%s8036_s3 + $0x298] sm:$0xff] }
 0x109   :  { %4607 = vmatpush.xpose.msk.msrb.mxu1 %vm1560_vm9, %v1434_v34  ;;  %4581 = vmatpush.xpose.msk.msra.mxu3 %vm1560_vm9, %v1394_v61  ;;  %v1482_v34 = vld [vmem:[%s8036_s3 + $0x350] sm:$0xff] }
 0x10a   :  { %v1442_v61 = vld [vmem:[%s8036_s3 + $0x210] sm:$0xff] }
 0x10b   :  { %4591 = vmatpush.xpose.msk.msrb.mxu0 %vm1560_vm9, %v1417_v29  ;;  %v1498_v29 = vld [vmem:[%s8036_s3 + $0x3d0] sm:$0xff] }
 0x10c   :  { %4565 = vmatpush.xpose.msk.msra.mxu2 %vm1560_vm9, %v1377_v51  ;;  %v1458_v51 = vld [vmem:[%s8036_s3 + $0x290] sm:$0xff] }
 0x10d   :  { %4608 = vmatpush.xpose.msk.msrb.mxu1 %vm1560_vm9, %v1433_v35  ;;  %4582 = vmatpush.xpose.msk.msra.mxu3 %vm1560_vm9, %v1393_v24  ;;  %v1481_v35 = vld [vmem:[%s8036_s3 + $0x348] sm:$0xff]  ;;  %v1478_v24 = vld [vmem:[%s8036_s3 + $0x330] sm:$0xff] }
 0x10f   :  { %4592 = vmatpush.xpose.msk.msrb.mxu0 %vm1560_vm9, %v1416_v55  ;;  %v1497_v55 = vld [vmem:[%s8036_s3 + $0x3c8] sm:$0xff] }
 0x110   :  { %4566 = vmatpush.xpose.msk.msra.mxu2 %vm1560_vm9, %v1376_v16  ;;  %v1494_v16 = vld [vmem:[%s8036_s3 + $0x3b0] sm:$0xff] }
 0x111   :  { %4609 = vmatpush.xpose.msk.msrb.mxu1 %vm1560_vm9, %v1432_v63  ;;  %4583 = vmatpush.xpose.msk.msra.mxu3 %vm1560_vm9, %v1392_v23  ;;  %v1480_v63 = vld [vmem:[%s8036_s3 + $0x340] sm:$0xff] }
 0x113   :  { %4593 = vmatpush.xpose.msk.msrb.mxu0 %vm1560_vm9, %v1415_v7  ;;  %v1496_v7 = vld [vmem:[%s8036_s3 + $0x3c0] sm:$0xff] }
 0x114   :  { %4619 = vmatpush.xpose.msk.msrb.mxu2 %vm1560_vm9, %v1455_v38  ;;  %v1457_v38 = vld [vmem:[%s8036_s3 + $0x288] sm:$0xff] }
 0x115   :  { %4610 = vmatpush.xpose.msk.msrb.mxu1 %vm1560_vm9, %v1431_v13  ;;  %4636 = vmatpush.xpose.msk.msrb.mxu3 %vm1560_vm9, %v1471_v42  ;;  %v1479_v13 = vld [vmem:[%s8036_s3 + $0x338] sm:$0xff] }
 0x117   :  { %4594 = vmatpush.xpose.msk.msrb.mxu0 %vm1560_vm9, %v1414_v56  ;;  %v1495_v56 = vld [vmem:[%s8036_s3 + $0x3b8] sm:$0xff] }
 0x118   :  { %4620 = vmatpush.xpose.msk.msrb.mxu2 %vm1560_vm9, %v1454_v4  ;;  %v1440_v4 = vld [vmem:[%s8036_s3 + $0x200] sm:$0xff] }
 0x119   :  { %4611 = vmatpush.xpose.msk.msrb.mxu1 %vm1560_vm9, %v1430_v3  ;;  %4637 = vmatpush.xpose.msk.msrb.mxu3 %vm1560_vm9, %v1470_v37  ;;  %v4777_v3 = vld [vmem:[%s8035_s2] ss:$0 sm:$0xff] }
 0x11b   :  { %4595 = vmatpush.xpose.msk.msrb.mxu0 %vm1560_vm9, %v1413_v36 }
 0x11c   :  { %4621 = vmatpush.xpose.msk.msrb.mxu2 %vm1560_vm9, %v1453_v60 }
 0x11d   :  { %4612 = vmatpush.xpose.msk.msrb.mxu1 %vm1560_vm9, %v1429_v40  ;;  %4638 = vmatpush.xpose.msk.msrb.mxu3 %vm1560_vm9, %v1469_v57  ;;  %v1441_v40 = vld [vmem:[%s8036_s3 + $0x208] sm:$0xff] }
 0x11f   :  { %4596 = vmatpush.xpose.msk.msrb.mxu0 %vm1560_vm9, %v1412_v58  ;;  %v1477_v58 = vld [vmem:[%s8036_s3 + $0x328] sm:$0xff] }
 0x120   :  { %4622 = vmatpush.xpose.msk.msrb.mxu2 %vm1560_vm9, %v1452_v22 }
 0x121   :  { %4613 = vmatpush.xpose.msk.msrb.mxu1 %vm1560_vm9, %v1428_v43  ;;  %4639 = vmatpush.xpose.msk.msrb.mxu3 %vm1560_vm9, %v1468_v9  ;;  %v1493_v43 = vld [vmem:[%s8036_s3 + $0x3a8] sm:$0xff] }
 0x123   :  { %4597 = vmatpush.xpose.msk.msrb.mxu0 %vm1560_vm9, %v1411_v52  ;;  %v1456_v52 = vld [vmem:[%s8036_s3 + $0x280] sm:$0xff] }
 0x124   :  { %4623 = vmatpush.xpose.msk.msrb.mxu2 %vm1560_vm9, %v1451_v17 }
 0x125   :  { %4614 = vmatpush.xpose.msk.msrb.mxu1 %vm1560_vm9, %v1427_v50  ;;  %4640 = vmatpush.xpose.msk.msrb.mxu3 %vm1560_vm9, %v1467_v0  ;;  %v1476_v50 = vld [vmem:[%s8036_s3 + $0x320] sm:$0xff] }
 0x127   :  { %4598 = vmatpush.xpose.msk.msrb.mxu0 %vm1560_vm9, %v1410_v19  ;;  %v1492_v19 = vld [vmem:[%s8036_s3 + $0x3a0] sm:$0xff] }
 0x128   :  { %4624 = vmatpush.xpose.msk.msrb.mxu2 %vm1560_vm9, %v1450_v33 }
 0x129   :  { %4615 = vmatpush.xpose.msk.msrb.mxu1 %vm1560_vm9, %v1426_v41  ;;  %4641 = vmatpush.xpose.msk.msrb.mxu3 %vm1560_vm9, %v1466_v45  ;;  %v1475_v41 = vld [vmem:[%s8036_s3 + $0x318] sm:$0xff]  ;;  %v1472_v45 = vld [vmem:[%s8036_s3 + $0x300] sm:$0xff] }
 0x12b   :  { %4599 = vmatpush.xpose.msk.msrb.mxu0 %vm1560_vm9, %v1409_v2  ;;  %v1491_v2 = vld [vmem:[%s8036_s3 + $0x398] sm:$0xff] }
 0x12c   :  { %4625 = vmatpush.xpose.msk.msrb.mxu2 %vm1560_vm9, %v1449_v15 }
 0x12d   :  { %4616 = vmatpush.xpose.msk.msrb.mxu1 %vm1560_vm9, %v1425_v12  ;;  %4642 = vmatpush.xpose.msk.msrb.mxu3 %vm1560_vm9, %v1465_v44  ;;  %v1474_v12 = vld [vmem:[%s8036_s3 + $0x310] sm:$0xff] }
 0x12f   :  { %4600 = vmatpush.xpose.msk.msrb.mxu0 %vm1560_vm9, %v1408_v62  ;;  %v1490_v62 = vld [vmem:[%s8036_s3 + $0x390] sm:$0xff] }
 0x130   :  { %4626 = vmatpush.xpose.msk.msrb.mxu2 %vm1560_vm9, %v1448_v46 }
 0x131   :  { %4617 = vmatpush.xpose.msk.msrb.mxu1 %vm1560_vm9, %v1424_v18  ;;  %4643 = vmatpush.xpose.msk.msrb.mxu3 %vm1560_vm9, %v1464_v25 }
 0x133   :  { %4653 = vmatpush.xpose.msk.msra.mxu0 %vm1560_vm9, %v1487_v47  ;;  %v1473_v47 = vld [vmem:[%s8036_s3 + $0x308] sm:$0xff] }
 0x134   :  { %4627 = vmatpush.xpose.msk.msrb.mxu2 %vm1560_vm9, %v1447_v8  ;;  %v1519_v8 = vld [vmem:[%s8036_s3 + $0x478] sm:$0xff] }
 0x135   :  { %4670 = vmatpush.xpose.msk.msra.mxu1 %vm1560_vm9, %v1503_v59  ;;  %4644 = vmatpush.xpose.msk.msrb.mxu3 %vm1560_vm9, %v1463_v10  ;;  %v1489_v59 = vld [vmem:[%s8036_s3 + $0x388] sm:$0xff]  ;;  %v1535_v10 = vld [vmem:[%s8036_s3 + $0x4f8] sm:$0xff] }
 0x137   :  { %4654 = vmatpush.xpose.msk.msra.mxu0 %vm1560_vm9, %v1486_v48 }
 0x138   :  { %4628 = vmatpush.xpose.msk.msrb.mxu2 %vm1560_vm9, %v1446_v5  ;;  %v1534_v5 = vld [vmem:[%s8036_s3 + $0x4f0] sm:$0xff] }
 0x139   :  { %4671 = vmatpush.xpose.msk.msra.mxu1 %vm1560_vm9, %v1502_v27  ;;  %4645 = vmatpush.xpose.msk.msrb.mxu3 %vm1560_vm9, %v1462_v49  ;;  %v1488_v27 = vld [vmem:[%s8036_s3 + $0x380] sm:$0xff]  ;;  %v1533_v49 = vld [vmem:[%s8036_s3 + $0x4e8] sm:$0xff] }
 0x13b   :  { %4655 = vmatpush.xpose.msk.msra.mxu0 %vm1560_vm9, %v1485_v20 }
 0x13c   :  { %4629 = vmatpush.xpose.msk.msrb.mxu2 %vm1560_vm9, %v1445_v32  ;;  %v1532_v32 = vld [vmem:[%s8036_s3 + $0x4e0] sm:$0xff] }
 0x13d   :  { %4672 = vmatpush.xpose.msk.msra.mxu1 %vm1560_vm9, %v1501_v30  ;;  %4646 = vmatpush.xpose.msk.msrb.mxu3 %vm1560_vm9, %v1461_v6  ;;  %v1531_v6 = vld [vmem:[%s8036_s3 + $0x4d8] sm:$0xff] }
 0x13f   :  { %4656 = vmatpush.xpose.msk.msra.mxu0 %vm1560_vm9, %v1484_v26 }
 0x140   :  { %4630 = vmatpush.xpose.msk.msrb.mxu2 %vm1560_vm9, %v1444_v53  ;;  %v1530_v53 = vld [vmem:[%s8036_s3 + $0x4d0] sm:$0xff] }
 0x141   :  { %4673 = vmatpush.xpose.msk.msra.mxu1 %vm1560_vm9, %v1500_v28  ;;  %4647 = vmatpush.xpose.msk.msrb.mxu3 %vm1560_vm9, %v1460_v39  ;;  %v1529_v39 = vld [vmem:[%s8036_s3 + $0x4c8] sm:$0xff] }
 0x143   :  { %4657 = vmatpush.xpose.msk.msra.mxu0 %vm1560_vm9, %v1483_v11  ;;  %v1518_v11 = vld [vmem:[%s8036_s3 + $0x470] sm:$0xff] }
 0x144   :  { %4631 = vmatpush.xpose.msk.msrb.mxu2 %vm1560_vm9, %v1443_v31  ;;  %v1528_v31 = vld [vmem:[%s8036_s3 + $0x4c0] sm:$0xff] }
 0x145   :  { %4674 = vmatpush.xpose.msk.msra.mxu1 %vm1560_vm9, %v1499_v14  ;;  %4648 = vmatpush.xpose.msk.msrb.mxu3 %vm1560_vm9, %v1459_v21  ;;  %v1517_v14 = vld [vmem:[%s8036_s3 + $0x468] sm:$0xff]  ;;  %v1527_v21 = vld [vmem:[%s8036_s3 + $0x4b8] sm:$0xff] }
 0x147   :  { %4658 = vmatpush.xpose.msk.msra.mxu0 %vm1560_vm9, %v1482_v34  ;;  %v1192_v36 = vpop.f32.mrf.mxu0  ;;  %v1516_v34 = vld [vmem:[%s8036_s3 + $0x460] sm:$0xff] }
 0x148   :  { %4632 = vmatpush.xpose.msk.msrb.mxu2 %vm1560_vm9, %v1442_v61  ;;  %v1193_v23 = vadd.f32 %v4777_v3, %v1192_v36  ;;  %v1526_v61 = vld [vmem:[%s8036_s3 + $0x4b0] sm:$0xff]  ;;  %v1508_v3 = vld [vmem:[%s8036_s3 + $0x420] sm:$0xff]  ;;  %v1507_v36 = vld [vmem:[%s8036_s3 + $0x418] sm:$0xff] }
 0x149   :  { %4675 = vmatpush.xpose.msk.msra.mxu1 %vm1560_vm9, %v1498_v29  ;;  %4649 = vmatpush.xpose.msk.msrb.mxu3 %vm1560_vm9, %v1458_v51  ;;  %v1212_v42 = vpop.f32.mrf.mxu1  ;;  %v1515_v29 = vld [vmem:[%s8036_s3 + $0x458] sm:$0xff]  ;;  %v1525_v51 = vld [vmem:[%s8036_s3 + $0x4a8] sm:$0xff] }
 0x14a   :  { %v1213_v37 = vadd.f32 %v1212_v42, %v1193_v23  ;;  %v1505_v23 = vld [vmem:[%s8036_s3 + $0x408] sm:$0xff]  ;;  %v1504_v42 = vld [vmem:[%s8036_s3 + $0x400] sm:$0xff] }
 0x14b   :  { %4659 = vmatpush.xpose.msk.msra.mxu0 %vm1560_vm9, %v1481_v35  ;;  %v1514_v35 = vld [vmem:[%s8036_s3 + $0x450] sm:$0xff] }
 0x14c   :  { %4633 = vmatpush.xpose.msk.msrb.mxu2 %vm1560_vm9, %v1441_v40  ;;  %v1506_v40 = vld [vmem:[%s8036_s3 + $0x410] sm:$0xff] }
 0x14d   :  { %4676 = vmatpush.xpose.msk.msra.mxu1 %vm1560_vm9, %v1497_v55  ;;  %4650 = vmatpush.xpose.msk.msrb.mxu3 %vm1560_vm9, %v1457_v38  ;;  %v1232_v60 = vpop.f32.mrf.mxu2  ;;  %v1513_v55 = vld [vmem:[%s8036_s3 + $0x448] sm:$0xff]  ;;  %v1522_v38 = vld [vmem:[%s8036_s3 + $0x490] sm:$0xff] }
 0x14e   :  { %v1233_v57 = vadd.f32 %v1232_v60, %v1213_v37  ;;  %v1252_v22 = vpop.f32.mrf.mxu3 }
 0x14f   :  { %4660 = vmatpush.xpose.msk.msra.mxu0 %vm1560_vm9, %v1480_v63  ;;  %v1272_v17 = vpop.f32.mrf.mxu0  ;;  %v1512_v63 = vld [vmem:[%s8036_s3 + $0x440] sm:$0xff] }
 0x150   :  { %4634 = vmatpush.xpose.msk.msrb.mxu2 %vm1560_vm9, %v1440_v4  ;;  %v1253_v9 = vadd.f32 %v1252_v22, %v1233_v57  ;;  %v1536_v4 = vld [vmem:[%s8037_s4] sm:$0xff] }
 0x151   :  { %4677 = vmatpush.xpose.msk.msra.mxu1 %vm1560_vm9, %v1496_v7  ;;  %4651 = vmatpush.xpose.msk.msrb.mxu3 %vm1560_vm9, %v1456_v52  ;;  %v1292_v18 = vpop.f32.mrf.mxu1  ;;  %v1511_v7 = vld [vmem:[%s8036_s3 + $0x438] sm:$0xff]  ;;  %v1542_v52 = vperm.slane %v1536_v4, 2  ;;  %v1543_v37 = vperm.slane %v1536_v4, 3  ;;  %v1541_v22 = vperm.slane %v1536_v4, 1 }
 0x152   :  { %v1273_v0 = vadd.f32 %v1272_v17, %v1253_v9 }
 0x153   :  { %4661 = vmatpush.xpose.msk.msra.mxu0 %vm1560_vm9, %v1479_v13  ;;  %v1510_v13 = vld [vmem:[%s8036_s3 + $0x430] sm:$0xff] }
 0x154   :  { %v1293_v33 = vadd.f32 %v1292_v18, %v1273_v0  ;;  %v1547_v18 = vperm.slane %v1536_v4, 7 }
 0x155   :  { %4678 = vmatpush.xpose.msk.msra.mxu1 %vm1560_vm9, %v1495_v56  ;;  %v1312_v48 = vpop.f32.mrf.mxu2  ;;  %v1509_v56 = vld [vmem:[%s8036_s3 + $0x428] sm:$0xff] }
 0x156   :  { %v1313_v15 = vadd.f32 %v1312_v48, %v1293_v33  ;;  %v1332_v44 = vpop.f32.mrf.mxu3 }
 0x157   :  { %4662 = vmatpush.xpose.msk.msra.mxu0 %vm1560_vm9, %v1478_v24  ;;  %v1524_v24 = vld [vmem:[%s8036_s3 + $0x4a0] sm:$0xff] }
 0x158   :  { %v1333_v20 = vadd.f32 %v1332_v44, %v1313_v15 }
 0x159   :  { %4679 = vmatpush.xpose.msk.msra.mxu1 %vm1560_vm9, %v1494_v16  ;;  %v1523_v16 = vld [vmem:[%s8036_s3 + $0x498] sm:$0xff] }
 0x15b   :  { %4663 = vmatpush.xpose.msk.msra.mxu0 %vm1560_vm9, %v1477_v58  ;;  %v1521_v58 = vld [vmem:[%s8036_s3 + $0x488] sm:$0xff] }
 0x15d   :  { %4680 = vmatpush.xpose.msk.msra.mxu1 %vm1560_vm9, %v1493_v43  ;;  %v1520_v43 = vld [vmem:[%s8036_s3 + $0x480] sm:$0xff] }
 0x15f   :  { %4664 = vmatpush.xpose.msk.msra.mxu0 %vm1560_vm9, %v1476_v50 }
 0x161   :  { %4681 = vmatpush.xpose.msk.msra.mxu1 %vm1560_vm9, %v1492_v19 }
 0x163   :  { %4665 = vmatpush.xpose.msk.msra.mxu0 %vm1560_vm9, %v1475_v41  ;;  %v1540_v41 = vperm.slane %v1536_v4, 0 }
 0x165   :  { %4682 = vmatpush.xpose.msk.msra.mxu1 %vm1560_vm9, %v1491_v2 }
 0x167   :  { %4666 = vmatpush.xpose.msk.msra.mxu0 %vm1560_vm9, %v1474_v12 }
 0x169   :  { %4683 = vmatpush.xpose.msk.msra.mxu1 %vm1560_vm9, %v1490_v62 }
 0x16b   :  { %4667 = vmatpush.xpose.msk.msra.mxu0 %vm1560_vm9, %v1473_v47  ;;  %v1546_v47 = vperm.slane %v1536_v4, 6 }
 0x16d   :  { %4684 = vmatpush.xpose.msk.msra.mxu1 %vm1560_vm9, %v1489_v59 }
 0x16f   :  { %4668 = vmatpush.xpose.msk.msra.mxu0 %vm1560_vm9, %v1472_v45  ;;  %v1352_v30 = vpop.f32.mrf.mxu0 }
 0x170   :  { %v1353_v46 = vadd.f32 %v1352_v30, %v1333_v20 }
 0x171   :  { %4685 = vmatpush.xpose.msk.msra.mxu1 %vm1560_vm9, %v1488_v27  ;;  %v1372_v25 = vpop.f32.mrf.mxu1 }
 0x172   :  { %v1373_v26 = vadd.f32 %v1372_v25, %v1353_v46 }
 0x174   :  { %v6500_v28 = vmax.f32 %v1373_v26, 0.0 }
 0x176   :  { %4567 = vmatmul.msk.f32.vlgmr.msra.gmra.mxu2 %vm1560_vm9, %v6500_v28  ;;  %4584 = vmatmul.msk.f32.vlgmr.msra.gmra.mxu3 %vm1560_vm9, %v6500_v28 }
 0x177   :  { %4601 = vmatmul.msk.f32.vlgmr.msrb.gmra.mxu0 %vm1560_vm9, %v6500_v28  ;;  %4618 = vmatmul.msk.f32.vlgmr.msrb.gmra.mxu1 %vm1560_vm9, %v6500_v28 }
 0x178   :  { %4687 = vmatpush.xpose.msk.msra.mxu2 %vm1560_vm9, %v1519_v8  ;;  %4704 = vmatpush.xpose.msk.msra.mxu3 %vm1560_vm9, %v1535_v10  ;;  %v1544_v10 = vperm.slane %v1536_v4, 4 }
 0x17c   :  { %4688 = vmatpush.xpose.msk.msra.mxu2 %vm1560_vm9, %v1518_v11  ;;  %4705 = vmatpush.xpose.msk.msra.mxu3 %vm1560_vm9, %v1534_v5 }
 0x17e   :  { %4635 = vmatmul.msk.f32.vlgmr.msrb.gmra.mxu2 %vm1560_vm9, %v6500_v28  ;;  %4652 = vmatmul.msk.f32.vlgmr.msrb.gmra.mxu3 %vm1560_vm9, %v6500_v28 }
 0x17f   :  { %4669 = vmatmul.msk.f32.vlgmr.msra.gmra.mxu0 %vm1560_vm9, %v6500_v28  ;;  %4686 = vmatmul.msk.f32.vlgmr.msra.gmra.mxu1 %vm1560_vm9, %v6500_v28 }
 0x180   :  { %4689 = vmatpush.xpose.msk.msra.mxu2 %vm1560_vm9, %v1517_v14  ;;  %4706 = vmatpush.xpose.msk.msra.mxu3 %vm1560_vm9, %v1533_v49  ;;  %v1545_v14 = vperm.slane %v1536_v4, 5 }
 0x184   :  { %4690 = vmatpush.xpose.msk.msra.mxu2 %vm1560_vm9, %v1516_v34  ;;  %4707 = vmatpush.xpose.msk.msra.mxu3 %vm1560_vm9, %v1532_v32 }
 0x188   :  { %4691 = vmatpush.xpose.msk.msra.mxu2 %vm1560_vm9, %v1515_v29  ;;  %4708 = vmatpush.xpose.msk.msra.mxu3 %vm1560_vm9, %v1531_v6 }
 0x18c   :  { %4692 = vmatpush.xpose.msk.msra.mxu2 %vm1560_vm9, %v1514_v35  ;;  %4709 = vmatpush.xpose.msk.msra.mxu3 %vm1560_vm9, %v1530_v53 }
 0x190   :  { %4693 = vmatpush.xpose.msk.msra.mxu2 %vm1560_vm9, %v1513_v55  ;;  %4710 = vmatpush.xpose.msk.msra.mxu3 %vm1560_vm9, %v1529_v39 }
 0x194   :  { %4694 = vmatpush.xpose.msk.msra.mxu2 %vm1560_vm9, %v1512_v63  ;;  %4711 = vmatpush.xpose.msk.msra.mxu3 %vm1560_vm9, %v1528_v31 }
 0x198   :  { %4695 = vmatpush.xpose.msk.msra.mxu2 %vm1560_vm9, %v1511_v7  ;;  %4712 = vmatpush.xpose.msk.msra.mxu3 %vm1560_vm9, %v1527_v21 }
 0x19c   :  { %4696 = vmatpush.xpose.msk.msra.mxu2 %vm1560_vm9, %v1510_v13  ;;  %4713 = vmatpush.xpose.msk.msra.mxu3 %vm1560_vm9, %v1526_v61 }
 0x1a0   :  { %4697 = vmatpush.xpose.msk.msra.mxu2 %vm1560_vm9, %v1509_v56  ;;  %4714 = vmatpush.xpose.msk.msra.mxu3 %vm1560_vm9, %v1525_v51 }
 0x1a4   :  { %4698 = vmatpush.xpose.msk.msra.mxu2 %vm1560_vm9, %v1508_v3  ;;  %4715 = vmatpush.xpose.msk.msra.mxu3 %vm1560_vm9, %v1524_v24 }
 0x1a8   :  { %4699 = vmatpush.xpose.msk.msra.mxu2 %vm1560_vm9, %v1507_v36  ;;  %4716 = vmatpush.xpose.msk.msra.mxu3 %vm1560_vm9, %v1523_v16 }
 0x1ac   :  { %4700 = vmatpush.xpose.msk.msra.mxu2 %vm1560_vm9, %v1506_v40  ;;  %4717 = vmatpush.xpose.msk.msra.mxu3 %vm1560_vm9, %v1522_v38 }
 0x1b0   :  { %4701 = vmatpush.xpose.msk.msra.mxu2 %vm1560_vm9, %v1505_v23  ;;  %4718 = vmatpush.xpose.msk.msra.mxu3 %vm1560_vm9, %v1521_v58 }
 0x1b4   :  { %4702 = vmatpush.xpose.msk.msra.mxu2 %vm1560_vm9, %v1504_v42  ;;  %4719 = vmatpush.xpose.msk.msra.mxu3 %vm1560_vm9, %v1520_v43 }
 0x1b7   :  { %4703 = vmatmul.msk.f32.vlgmr.msra.gmra.mxu2 %vm1560_vm9, %v6500_v28  ;;  %4720 = vmatmul.msk.f32.vlgmr.msra.gmra.mxu3 %vm1560_vm9, %v6500_v28 }
 0x1f4   :  { %v2101_v50 = vpop.f32.mrf.mxu0  ;;  %v2121_v60 = vpop.f32.mrf.mxu1 }
 0x1f5   :  { %v2102_v19 = vadd.f32 %v2101_v50, %v1542_v52  ;;  %v2122_v57 = vadd.f32 %v2121_v60, %v1543_v37 }
 0x1f7   :  { %v2256_v2 = vrot.slane %v2102_v19, 4  ;;  %v2257_v9 = vrot.slane %v2122_v57, 4 }
 0x1f9   :  { %v2276_v12 = vadd.f32 %v2256_v2, %v2102_v19  ;;  %v2277_v17 = vadd.f32 %v2257_v9, %v2122_v57  ;;  %v2061_v62 = vpop.f32.mrf.mxu2  ;;  %v2081_v0 = vpop.f32.mrf.mxu3 }
 0x1fa   :  { %v2062_v59 = vadd.f32 %v2061_v62, %v1540_v41  ;;  %v2082_v33 = vadd.f32 %v2081_v0, %v1541_v22 }
 0x1fb   :  { %v2286_v45 = vsub.f32 0.0, %v2276_v12  ;;  %v2287_v48 = vsub.f32 0.0, %v2277_v17  ;;  %v6679_v12 = vld [vmem:[%s8033_s0 + $0x80] sm:$0xff] }
 0x1fc   :  { %v2254_v27 = vrot.slane %v2062_v59, 4  ;;  %v2255_v15 = vrot.slane %v2082_v33, 4  ;;  %v2181_v44 = vpop.f32.mrf.mxu0  ;;  %v2201_v20 = vpop.f32.mrf.mxu1 }
 0x1fd   :  { %v2298_v30 = vmul.f32 1.442695, %v2286_v45  ;;  %v2300_v46 = vmul.f32 1.442695, %v2287_v48  ;;  %v2182_v25 = vadd.f32 %v2181_v44, %v1546_v47  ;;  %v2202_v26 = vadd.f32 %v2201_v20, %v1547_v18 }
 0x1fe   :  { %v2274_v28 = vadd.f32 %v2254_v27, %v2062_v59  ;;  %v2275_v8 = vadd.f32 %v2255_v15, %v2082_v33  ;;  %v2851_v15 = vunpack.c.l.bf16 %v6679_v12 }
 0x1ff   :  { %4792 = vpow2.f32 %v2298_v30  ;;  %v2260_v11 = vrot.slane %v2182_v25, 4  ;;  %v2261_v5 = vrot.slane %v2202_v26, 4 }
 0x200   :  { %4794 = vpow2.f32 %v2300_v46  ;;  %v2284_v49 = vsub.f32 0.0, %v2274_v28  ;;  %v2285_v34 = vsub.f32 0.0, %v2275_v8 }
 0x201   :  { %v2280_v32 = vadd.f32 %v2260_v11, %v2182_v25  ;;  %v2281_v29 = vadd.f32 %v2261_v5, %v2202_v26  ;;  %v2141_v6 = vpop.f32.mrf.mxu2  ;;  %v2161_v35 = vpop.f32.mrf.mxu3  ;;  %v2852_v25 = vunpack.c.h.bf16 %v6679_v12 }
 0x202   :  { %v2294_v53 = vmul.f32 1.442695, %v2284_v49  ;;  %v2296_v55 = vmul.f32 1.442695, %v2285_v34  ;;  %v2142_v39 = vadd.f32 %v2141_v6, %v1544_v10  ;;  %v2162_v7 = vadd.f32 %v2161_v35, %v1545_v14 }
 0x203   :  { %v2290_v63 = vsub.f32 0.0, %v2280_v32  ;;  %v2291_v31 = vsub.f32 0.0, %v2281_v29 }
 0x204   :  { %4796 = vpow2.f32 %v2294_v53  ;;  %v2258_v21 = vrot.slane %v2142_v39, 4  ;;  %v2259_v16 = vrot.slane %v2162_v7, 4 }
 0x205   :  { %v4793_v13 = vpop.eup %4792  ;;  %4798 = vpow2.f32 %v2296_v55  ;;  %v2306_v61 = vmul.f32 1.442695, %v2290_v63  ;;  %v2308_v3 = vmul.f32 1.442695, %v2291_v31  ;;  %v6733_v55 = vld [vmem:[%s8037_s4 + $0x8] sm:$0x3] }
 0x206   :  { %v4795_v56 = vpop.eup %4794  ;;  %v6653_v51 = vadd.f32 1.0, %v4793_v13  ;;  %v2278_v24 = vadd.f32 %v2258_v21, %v2142_v39  ;;  %v2279_v42 = vadd.f32 %v2259_v16, %v2162_v7  ;;  %v6747_v13 = vld [vmem:[%s8033_s0 + $0x78] sm:$0xff] }
 0x207   :  { %v6655_v36 = vadd.f32 1.0, %v4795_v56  ;;  %4800 = vpow2.f32 %v2306_v61  ;;  %v2850_v10 = vunpack.c.h.bf16 %v6747_v13 }
 0x208   :  { %4802 = vrcp.f32 %v6653_v51  ;;  %v2288_v38 = vsub.f32 0.0, %v2278_v24  ;;  %v2365_v50 = vand.u32 2147483648, %v6653_v51  ;;  %v2289_v41 = vsub.f32 0.0, %v2279_v42  ;;  %v2483_v24 = vld [vmem:[%s8033_s0 + $0x28] sm:$0xff] }
 0x209   :  { %4804 = vrcp.f32 %v6655_v36  ;;  %v2380_v60 = vand.u32 2147483648, %v6655_v36  ;;  %v2363_v2 = vand.u32 2147483647, %v6653_v51  ;;  %vm2359_vm10 = vweird.f32 %v6653_v51 }
 0x20a   :  { %v4797_v40 = vpop.eup %4796  ;;  %4806 = vpow2.f32 %v2308_v3  ;;  %v2302_v52 = vmul.f32 1.442695, %v2288_v38  ;;  %v6686_v47 = vor.u32 1.1754944e-38, %v2365_v50  ;;  %v2378_v59 = vand.u32 2147483647, %v6655_v36 }
 0x20b   :  { %v4799_v23 = vpop.eup %4798  ;;  %v6659_v58 = vadd.f32 1.0, %v4797_v40  ;;  %v6689_v33 = vor.u32 1.1754944e-38, %v2380_v60  ;;  %vm2374_vm11 = vweird.f32 %v6655_v36  ;;  %v2304_v27 = vmul.f32 1.442695, %v2289_v41 }
 0x20c   :  { %v6661_v43 = vadd.f32 1.0, %v4799_v23  ;;  %vm6709_vm12 = vcmp.eq.f32.partialorder %v2363_v2, 8.507059e+37  ;;  %vm6717_vm0 = vcmp.eq.f32.partialorder %v2378_v59, 8.507059e+37  ;;  %v1548_v38 = vperm.slane %v6733_v55, 0 }
 0x20d   :  { %v4801_v4 = vpop.eup %4800  ;;  %4808 = vrcp.f32 %v6659_v58  ;;  %v2335_v48 = vand.u32 2147483648, %v6659_v58  ;;  %v2333_v46 = vand.u32 2147483647, %v6659_v58  ;;  %vm2329_vm13 = vweird.f32 %v6659_v58 }
 0x20e   :  { %v6664_v37 = vpop.eup %4802  ;;  %4810 = vrcp.f32 %v6661_v43  ;;  %v6681_v62 = vadd.f32 1.0, %v4801_v4  ;;  %v2348_v8 = vand.u32 2147483647, %v6661_v43  ;;  %vm2344_vm14 = vweird.f32 %v6661_v43 }
 0x20f   :  { %v6669_v19 = vpop.eup %4804  ;;  %v2355_v57 = vmul.f32 %v6664_v37, %v6653_v51  ;;  %4812 = vpow2.f32 %v2302_v52  ;;  %v2350_v5 = vand.u32 2147483648, %v6661_v43  ;;  %vm2360_vm15 = vweird.f32 %v6664_v37 }
 0x210   :  { %v4807_v22 = vpop.eup %4806  ;;  %v2370_v9 = vmul.f32 %v6669_v19, %v6655_v36  ;;  %4814 = vrcp.f32 %v6681_v62  ;;  %v2336_v34 = vor.u32 1.1754944e-38, %v2335_v48  ;;  %vm2375_vm9 = vweird.f32 %v6669_v19  ;;  %vm6760_vm4 = vmor %vm2359_vm10, %vm2360_vm15 }
 0x211   :  { %v2356_v17 = vsub.f32 1.0, %v2355_v57  ;;  %v6683_v0 = vadd.f32 1.0, %v4807_v22  ;;  %vm6724_vm7 = vcmp.eq.f32.partialorder %v2333_v46, 8.507059e+37  ;;  %vm6739_vm6 = vcmp.eq.f32.partialorder %v2348_v8, 8.507059e+37  ;;  %vm6774_vm2 = vmor %vm2374_vm11, %vm2375_vm9  ;;  %v6847_v8 = vld [vmem:[%s8033_s0 + $0x88] sm:$0xff] }
 0x212   :  { %v2371_v18 = vsub.f32 1.0, %v2370_v9  ;;  %v2425_v21 = vand.u32 2147483648, %v6681_v62  ;;  %v2351_v40 = vor.u32 1.1754944e-38, %v2350_v5  ;;  %v2849_v52 = vunpack.c.l.bf16 %v6747_v13  ;;  %v2486_v5 = vld [vmem:[%s8033_s0 + $0x40] sm:$0xff] }
 0x213   :  { %v6691_v45 = vpop.eup %4808  ;;  %v2357_v20 = vmul.f32 %v6664_v37, %v2356_v17  ;;  %4816 = vrcp.f32 %v6683_v0  ;;  %vm2419_vm10 = vweird.f32 %v6681_v62  ;;  %v2854_v7 = vunpack.c.h.bf16 %v6847_v8 }
 0x214   :  { %v6697_v44 = vpop.eup %4810  ;;  %v2325_v30 = vmul.f32 %v6691_v45, %v6659_v58  ;;  %v2372_v26 = vmul.f32 %v6669_v19, %v2371_v18  ;;  %4818 = vpow2.f32 %v2304_v27  ;;  %vm2330_vm5 = vweird.f32 %v6691_v45 }
 0x215   :  { %v2340_v28 = vmul.f32 %v6697_v44, %v6661_v43  ;;  %v4813_v14 = vpop.eup %4812  ;;  %v2358_v29 = vadd.f32 %v6664_v37, %v2357_v20  ;;  %vm2345_vm3 = vweird.f32 %v6697_v44  ;;  %v2426_v57 = vor.u32 1.1754944e-38, %v2425_v21 }
 0x216   :  { %v2326_v11 = vsub.f32 1.0, %v2325_v30  ;;  %v6728_v53 = vadd.f32 1.0, %v4813_v14  ;;  %v6735_v39 = vpop.eup %4814  ;;  %v2373_v63 = vadd.f32 %v6669_v19, %v2372_v26  ;;  %v2440_v43 = vand.u32 2147483648, %v6683_v0 }
 0x217   :  { %v2341_v32 = vsub.f32 1.0, %v2340_v28  ;;  %v2415_v56 = vmul.f32 %v6735_v39, %v6681_v62  ;;  %v2362_v23 = vsel %vm6760_vm4, %v6664_v37, %v2358_v29  ;;  %vm6788_vm4 = vmor %vm2329_vm13, %vm2330_vm5  ;;  %v2423_v37 = vand.u32 2147483647, %v6681_v62 }
 0x218   :  { %v2327_v6 = vmul.f32 %v6691_v45, %v2326_v11  ;;  %4820 = vrcp.f32 %v6728_v53  ;;  %v2377_v60 = vsel %vm6774_vm2, %v6669_v19, %v2373_v63  ;;  %vm6801_vm2 = vmor %vm2344_vm14, %vm2345_vm3  ;;  %v6811_v9 = vsel %vm6709_vm12, %v6686_v47, %v2362_v23 }
 0x219   :  { %v2342_v31 = vmul.f32 %v6697_v44, %v2341_v32  ;;  %v6754_v3 = vpop.eup %4816  ;;  %v2416_v42 = vsub.f32 1.0, %v2415_v56  ;;  %vm2434_vm5 = vweird.f32 %v6683_v0  ;;  %v6821_v59 = vsel %vm6717_vm0, %v6689_v33, %v2377_v60 }
 0x21a   :  { %v2328_v61 = vadd.f32 %v6691_v45, %v2327_v6  ;;  %v2430_v4 = vmul.f32 %v6754_v3, %v6683_v0  ;;  %v4819_v50 = vpop.eup %4818  ;;  %v2393_v48 = vand.u32 2147483647, %v6728_v53  ;;  %vm2420_vm3 = vweird.f32 %v6735_v39 }
 0x21b   :  { %v2343_v16 = vadd.f32 %v6697_v44, %v2342_v31  ;;  %v2417_v58 = vmul.f32 %v6735_v39, %v2416_v42  ;;  %v6806_v2 = vadd.f32 1.0, %v4819_v50  ;;  %vm2435_vm11 = vweird.f32 %v6754_v3  ;;  %v6879_v31 = vld [vmem:[%s8033_s0 + $0x90] sm:$0xff] }
 0x21c   :  { %v2332_v41 = vsel %vm6788_vm4, %v6691_v45, %v2328_v61  ;;  %v2431_v22 = vsub.f32 1.0, %v2430_v4  ;;  %v2441_v46 = vor.u32 1.1754944e-38, %v2440_v43  ;;  %vm2389_vm12 = vweird.f32 %v6728_v53  ;;  %vm6865_vm15 = vmor %vm2434_vm5, %vm2435_vm11  ;;  %v2484_v43 = vld [vmem:[%s8033_s0 + $0x30] sm:$0xff] }
 0x21d   :  { %v2347_v17 = vsel %vm6801_vm2, %v6697_v44, %v2343_v16  ;;  %4822 = vrcp.f32 %v6806_v2  ;;  %v6828_v47 = vsel %vm6724_vm7, %v2336_v34, %v2332_v41  ;;  %v2395_v44 = vand.u32 2147483648, %v6728_v53 }
 0x21e   :  { %v4821_v18 = vpop.eup %4820  ;;  %v2432_v45 = vmul.f32 %v6754_v3, %v2431_v22  ;;  %v6835_v33 = vsel %vm6739_vm6, %v2351_v40, %v2347_v17  ;;  %v2418_v20 = vadd.f32 %v6735_v39, %v2417_v58  ;;  %vm6840_vm7 = vcmp.eq.f32.partialorder %v2423_v37, 8.507059e+37  ;;  %vm6852_vm6 = vmor %vm2419_vm10, %vm2420_vm3 }
 0x21f   :  { %v2385_v27 = vmul.f32 %v4821_v18, %v6728_v53  ;;  %vm6857_vm13 = vcmp.eq.f32.partialorder %v2393_v48, 8.507059e+37  ;;  %v2438_v14 = vand.u32 2147483647, %v6683_v0  ;;  %v2859_v49 = vperm.slane %v6828_v47, 1 }
 0x220   :  { %v2433_v30 = vadd.f32 %v6754_v3, %v2432_v45  ;;  %vm2390_vm14 = vweird.f32 %v4821_v18  ;;  %v2396_v32 = vor.u32 1.1754944e-38, %v2395_v44  ;;  %v2860_v29 = vperm.slane %v6835_v33, 1 }
 0x221   :  { %v2386_v26 = vsub.f32 1.0, %v2385_v27  ;;  %v2422_v35 = vsel %vm6852_vm6, %v6735_v39, %v2418_v20  ;;  %v2853_v0 = vunpack.c.l.bf16 %v6847_v8  ;;  %v6886_v61 = vmul.f32 %v2859_v49, %v2849_v52  ;;  %vm2391_vm0 = vmor %vm2389_vm12, %vm2390_vm14 }
 0x222   :  { %v2437_v63 = vsel %vm6865_vm15, %v6754_v3, %v2433_v30  ;;  %v6890_v39 = vmul.f32 %v2860_v29, %v2850_v10  ;;  %vm2404_vm9 = vweird.f32 %v6806_v2  ;;  %v2408_v56 = vand.u32 2147483647, %v6806_v2 }
 0x223   :  { %v2387_v34 = vmul.f32 %v4821_v18, %v2386_v26  ;;  %v4823_v6 = vpop.eup %4822  ;;  %8150 = vst [vmem:[#allocation12_spill] sm:$0xff] %v6886_v61  ;;  %v2410_v3 = vand.u32 2147483648, %v6806_v2  ;;  %vm2439_vm4 = vcmp.eq.f32.partialorder %v2438_v14, 8.507059e+37  ;;  %v2855_v23 = vunpack.c.l.bf16 %v6879_v31 }
 0x224   :  { %v2400_v13 = vmul.f32 %v4823_v6, %v6806_v2  ;;  %8151 = vst [vmem:[#allocation13_spill] sm:$0xff] %v6890_v39  ;;  %v2861_v51 = vperm.slane %v6811_v9, 1  ;;  %v6908_v42 = vsel %vm6840_vm7, %v2426_v57, %v2422_v35  ;;  %v6910_v4 = vsel %vm2439_vm4, %v2441_v46, %v2437_v63 }
 0x225   :  { %v2388_v21 = vadd.f32 %v4821_v18, %v2387_v34  ;;  %v2862_v52 = vperm.slane %v6821_v59, 1  ;;  %vm2405_vm10 = vweird.f32 %v4823_v6  ;;  %v2900_v60 = vadd.f32 %v6890_v39, %v6886_v61 }
 0x226   :  { %v2401_v40 = vsub.f32 1.0, %v2400_v13  ;;  %v2498_v36 = vunpack.c.l.bf16 %v2483_v24  ;;  %vm6915_vm2 = vcmp.eq.f32.partialorder %v2408_v56, 8.507059e+37  ;;  %v2411_v41 = vor.u32 1.1754944e-38, %v2410_v3  ;;  %vm2406_vm5 = vmor %vm2404_vm9, %vm2405_vm10 }
 0x227   :  { %v2392_v16 = vsel %vm2391_vm0, %v4821_v18, %v2388_v21  ;;  %v2499_v19 = vunpack.c.h.bf16 %v2483_v24  ;;  %v2508_v58 = vperm.slane %v6828_v47, 0  ;;  %v6925_v17 = vmul.f32 %v2861_v51, %v2851_v15  ;;  %v2485_v15 = vld [vmem:[%s8033_s0 + $0x38] sm:$0xff] }
 0x228   :  { %v6904_v53 = vsel %vm6857_vm13, %v2396_v32, %v2392_v16  ;;  %v2402_v50 = vmul.f32 %v4823_v6, %v2401_v40  ;;  %v2509_v18 = vperm.slane %v6835_v33, 0  ;;  %v1549_v45 = vperm.slane %v6733_v55, 1  ;;  %v4726_v21 = vld [vmem:[%s8033_s0 + $0x58] sm:$0xff] }
 0x229   :  { %v2863_v22 = vperm.slane %v6904_v53, 1  ;;  %8154 = vst [vmem:[#allocation14_spill] sm:$0xff] %v6925_v17  ;;  %v2856_v48 = vunpack.c.h.bf16 %v6879_v31  ;;  %v8058_v27 = vperm.slane %v6908_v42, 1  ;;  %v8057_v44 = vperm.slane %v6910_v4, 1 }
 0x22a   :  { %v2403_v57 = vadd.f32 %v4823_v6, %v2402_v50  ;;  %v6944_v30 = vmul.f32 %v2862_v52, %v2852_v25  ;;  %v2901_v2 = vadd.f32 %v2900_v60, %v6925_v17  ;;  %v6949_v46 = vmul.f32 %v2508_v58, %v2498_v36  ;;  %v4725_v25 = vld [vmem:[%s8033_s0 + $0x50] sm:$0xff] }
 0x22b   :  { %v2500_v28 = vunpack.c.l.bf16 %v2484_v43  ;;  %v2510_v10 = vperm.slane %v6811_v9, 0  ;;  %v6958_v12 = vmul.f32 %v2509_v18, %v2499_v19  ;;  %v6965_v11 = vmul.f32 %v2863_v22, %v2853_v0 }
 0x22c   :  { %v2407_v20 = vsel %vm2406_vm5, %v4823_v6, %v2403_v57  ;;  %8155 = vst [vmem:[#allocation15_spill] sm:$0xff] %v6944_v30  ;;  %v2501_v14 = vunpack.c.h.bf16 %v2484_v43  ;;  %v2502_v34 = vunpack.c.l.bf16 %v2485_v15  ;;  %v8060_v32 = vperm.slane %v6904_v53, 0 }
 0x22d   :  { %8156 = vst [vmem:[#allocation16_spill] sm:$0xff] %v6949_v46  ;;  %v6953_v26 = vsel %vm6915_vm2, %v2411_v41, %v2407_v20  ;;  %v2503_v62 = vunpack.c.h.bf16 %v2485_v15  ;;  %v2511_v6 = vperm.slane %v6821_v59, 0  ;;  %v2549_v63 = vadd.f32 %v6958_v12, %v6949_v46 }
 0x22e   :  { %8157 = vst [vmem:[#allocation17_spill] sm:$0xff] %v6958_v12  ;;  %v8059_v35 = vperm.slane %v6953_v26, 0  ;;  %v2864_v31 = vperm.slane %v6953_v26, 1  ;;  %v2902_v0 = vadd.f32 %v2901_v2, %v6944_v30  ;;  %v2839_v13 = vunpack.c.l.bf16 %v4725_v25 }
 0x22f   :  { %8158 = vst [vmem:[#allocation18_spill] sm:$0xff] %v6965_v11  ;;  %v2840_v56 = vunpack.c.h.bf16 %v4725_v25  ;;  %v6982_v3 = vmul.f32 %v8058_v27, %v2855_v23  ;;  %v2504_v24 = vunpack.c.l.bf16 %v2486_v5  ;;  %v2505_v16 = vunpack.c.h.bf16 %v2486_v5  ;;  %v4727_v23 = vld [vmem:[%s8033_s0 + $0x60] sm:$0xff] }
 0x230   :  { %v6986_v40 = vmul.f32 %v2510_v10, %v2500_v28  ;;  %v2903_v50 = vadd.f32 %v2902_v0, %v6965_v11  ;;  %v8056_v60 = vperm.slane %v6908_v42, 0  ;;  %v8055_v36 = vperm.slane %v6910_v4, 0 }
 0x231   :  { %v6993_v37 = vmul.f32 %v8060_v32, %v2502_v34  ;;  %v7000_v41 = vmul.f32 %v2511_v6, %v2501_v14  ;;  %v7004_v19 = vmul.f32 %v8059_v35, %v2503_v62  ;;  %v2841_v43 = vunpack.c.l.bf16 %v4726_v21  ;;  %v2478_v14 = vld [vmem:[%s8033_s0] sm:$0xff] }
 0x232   :  { %8159 = vst [vmem:[#allocation19_spill] sm:$0xff] %v6986_v40  ;;  %v2550_v57 = vadd.f32 %v2549_v63, %v6986_v40  ;;  %v7011_v15 = vmul.f32 %v2864_v31, %v2854_v7  ;;  %v2580_v20 = vmax.f32 %v6949_v46, %v6986_v40  ;;  %v7017_v2 = vmul.f32 %v2859_v49, %v2839_v13 }
 0x233   :  { %8160 = vst [vmem:[#allocation20_spill] sm:$0xff] %v6993_v37  ;;  %v7021_v28 = vmul.f32 %v2860_v29, %v2840_v56  ;;  %v7025_v25 = vmul.f32 %v8057_v44, %v2856_v48  ;;  %v2581_v8 = vmax.f32 %v6958_v12, %v7000_v41  ;;  %v2842_v7 = vunpack.c.h.bf16 %v4726_v21 }
 0x234   :  { %8161 = vst [vmem:[#allocation21_spill] sm:$0xff] %v7000_v41  ;;  %v2843_v5 = vunpack.c.l.bf16 %v4727_v23  ;;  %v2904_v49 = vadd.f32 %v2903_v50, %v7011_v15  ;;  %v7035_v34 = vmul.f32 %v8056_v60, %v2504_v24  ;;  %v7039_v29 = vmul.f32 %v8055_v36, %v2505_v16  ;;  %v2479_v24 = vld [vmem:[%s8033_s0 + $0x8] sm:$0xff] }
 0x235   :  { %8162 = vst [vmem:[#allocation22_spill] sm:$0xff] %v7004_v19  ;;  %v7042_v48 = vmax.f32 %v2580_v20, %v6993_v37  ;;  %v7045_v0 = vmax.f32 %v2581_v8, %v7004_v19  ;;  %v2551_v21 = vadd.f32 %v2550_v57, %v7000_v41  ;;  %v7050_v13 = vmul.f32 %v2861_v51, %v2841_v43  ;;  %v2480_v20 = vld [vmem:[%s8033_s0 + $0x10] sm:$0xff]  ;;  %v7241_v41 = vld [vmem:[%s8033_s0 + $0xe8] sm:$0xff] }
 0x236   :  { %8163 = vst [vmem:[#allocation23_spill] sm:$0xff] %v7011_v15  ;;  %v2889_v56 = vadd.f32 %v7021_v28, %v7017_v2  ;;  %v2488_v57 = vunpack.c.l.bf16 %v2478_v14  ;;  %v2489_v8 = vunpack.c.h.bf16 %v2478_v14  ;;  %v7065_v43 = vmul.f32 %v2862_v52, %v2842_v7 }
 0x237   :  { %8164 = vst [vmem:[#allocation24_spill] sm:$0xff] %v7017_v2  ;;  %v2552_v51 = vadd.f32 %v2551_v21, %v6993_v37  ;;  %v7069_v36 = vmul.f32 %v2863_v22, %v2843_v5  ;;  %v2490_v14 = vunpack.c.l.bf16 %v2479_v24  ;;  %v2491_v60 = vunpack.c.h.bf16 %v2479_v24 }
 0x238   :  { %8165 = vst [vmem:[#allocation25_spill] sm:$0xff] %v7021_v28  ;;  %v2890_v55 = vadd.f32 %v2889_v56, %v7050_v13  ;;  %v2492_v44 = vunpack.c.l.bf16 %v2480_v20  ;;  %v2493_v52 = vunpack.c.h.bf16 %v2480_v20  ;;  %v7078_v22 = vmul.f32 %v2508_v58, %v2488_v57  ;;  %v2481_v58 = vld [vmem:[%s8033_s0 + $0x18] sm:$0xff] }
 0x239   :  { %8166 = vst [vmem:[#allocation26_spill] sm:$0xff] %v7025_v25  ;;  %v7082_v5 = vmul.f32 %v2509_v18, %v2489_v8  ;;  %v2553_v56 = vadd.f32 %v2552_v51, %v7004_v19  ;;  %v2905_v20 = vadd.f32 %v2904_v49, %v6982_v3  ;;  %v7096_v18 = vmul.f32 %v2510_v10, %v2490_v14 }
 0x23a   :  { %v2221_v62 = vpop.f32.mrf.mxu2  ;;  %v2241_v63 = vpop.f32.mrf.mxu3  ;;  %8167 = vst [vmem:[#allocation27_spill] sm:$0xff] %v7050_v13  ;;  %v2891_v21 = vadd.f32 %v2890_v55, %v7065_v43  ;;  %v8177_v49 = vperm.slane %v6953_v26, 0  ;;  %v8190_v19 = vperm.slane %v6811_v9, 2  ;;  %vm2591_vm9 = vcmask 130048  }
 0x23b   :  { %v2222_v16 = vadd.f32 %v2221_v62, %v1548_v38  ;;  %v2242_v50 = vadd.f32 %v2241_v63, %v1549_v45  ;;  %8168 = vst [vmem:[#allocation28_spill] sm:$0xff] %v7065_v43  ;;  %v4728_v62 = vld [vmem:[%s8033_s0 + $0x68] sm:$0xff]  ;;  %v2844_v63 = vunpack.c.h.bf16 %v4727_v23  ;;  %v2538_v10 = vadd.f32 %v7082_v5, %v7078_v22 }
 0x23c   :  { %8169 = vst [vmem:[#allocation29_spill] sm:$0xff] %v7069_v36  ;;  %v2845_v35 = vunpack.c.l.bf16 %v4728_v62  ;;  %v2846_v23 = vunpack.c.h.bf16 %v4728_v62  ;;  %v2892_v32 = vadd.f32 %v2891_v21, %v7069_v36  ;;  %v2494_v62 = vunpack.c.l.bf16 %v2481_v58 }
 0x23d   :  { %v2262_v38 = vrot.slane %v2222_v16, 4  ;;  %v2263_v45 = vrot.slane %v2242_v50, 4  ;;  %8170 = vst [vmem:[#allocation30_spill] sm:$0xff] %v7078_v22  ;;  %v2539_v21 = vadd.f32 %v2538_v10, %v7096_v18 }
 0x23e   :  { %8171 = vst [vmem:[#allocation31_spill] sm:$0xff] %v7082_v5 }
 0x23f   :  { %v2282_v7 = vadd.f32 %v2262_v38, %v2222_v16  ;;  %v2283_v27 = vadd.f32 %v2263_v45, %v2242_v50  ;;  %v7089_v16 = vmul.f32 %v2864_v31, %v2844_v63  ;;  %8173 = vst [vmem:[#allocation33_spill] sm:$0xff] %v7096_v18  ;;  %v7100_v50 = vmul.f32 %v2511_v6, %v2491_v60  ;;  %v7121_v63 = vld [vmem:[%s8033_s0 + $0x98] sm:$0xff] }
 0x240   :  { %v7108_v31 = vmul.f32 %v8177_v49, %v2493_v52  ;;  %v2554_v45 = vadd.f32 %v2553_v56, %v7035_v34  ;;  %v8179_v6 = vperm.slane %v6908_v42, 1  ;;  %v4744_v56 = vld [vmem:[%s8033_s0 + $0xc8] sm:$0xff]  ;;  %v4746_v52 = vld [vmem:[%s8033_s0 + $0xd8] sm:$0xff]  ;;  %v7199_v49 = vld [vmem:[%s8033_s0 + $0x70] sm:$0xff] }
 0x241   :  { %v2292_v55 = vsub.f32 0.0, %v2282_v7  ;;  %v2293_v24 = vsub.f32 0.0, %v2283_v27  ;;  %8172 = vst [vmem:[#allocation32_spill] sm:$0xff] %v7089_v16  ;;  %v8175_v27 = vperm.slane %v6904_v53, 0  ;;  %v2893_v38 = vadd.f32 %v2892_v32, %v7089_v16 }
 0x242   :  { %8174 = vst [vmem:[#allocation34_spill] sm:$0xff] %v7100_v50  ;;  %v7116_v60 = vmul.f32 %v8179_v6, %v2845_v35  ;;  %v2569_v32 = vmax.f32 %v7078_v22, %v7096_v18  ;;  %v2570_v14 = vmax.f32 %v7082_v5, %v7100_v50  ;;  %v7129_v35 = vadd.f32 %v2905_v20, %v7025_v25 }
 0x243   :  { %v7104_v57 = vmul.f32 %v8175_v27, %v2492_v44  ;;  %8178 = vst [vmem:[#allocation36_spill] sm:$0xff] %v7108_v31  ;;  %v2310_v8 = vmul.f32 1.442695, %v2292_v55  ;;  %v2312_v51 = vmul.f32 1.442695, %v2293_v24  ;;  %v2495_v44 = vunpack.c.h.bf16 %v2481_v58  ;;  %v4745_v27 = vld [vmem:[%s8033_s0 + $0xd0] sm:$0xff] }
 0x244   :  { %8180 = vst [vmem:[#allocation37_spill] sm:$0xff] %v7116_v60  ;;  %v2894_v55 = vadd.f32 %v2893_v38, %v7116_v60  ;;  %v7143_v58 = vmax.f32 %v2570_v14, %v7108_v31  ;;  %v2540_v20 = vadd.f32 %v2539_v21, %v7100_v50  ;;  %v8182_v38 = vperm.slane %v6910_v4, 1 }
 0x245   :  { %8176 = vst [vmem:[#allocation35_spill] sm:$0xff] %v7104_v57  ;;  %4824 = vpow2.f32 %v2310_v8  ;;  %v7140_v24 = vmax.f32 %v2569_v32, %v7104_v57  ;;  %v8184_v6 = vperm.slane %v6908_v42, 0  ;;  %v8185_v14 = vperm.slane %v6910_v4, 0 }
 0x246   :  { %4826 = vpow2.f32 %v2312_v51  ;;  %8181 = vst [vmem:[#allocation38_spill] sm:$0xff] %v7143_v58  ;;  %v7152_v51 = vadd.f32 %v2554_v45, %v7039_v29  ;;  %v7156_v10 = vmul.f32 %v8182_v38, %v2846_v23  ;;  %v2541_v7 = vadd.f32 %v2540_v20, %v7104_v57  ;;  %v7173_v45 = vld [vmem:[%s8033_s0 + $0xe0] sm:$0xff] }
 0x247   :  { %v7160_v32 = vmul.f32 %v8184_v6, %v2494_v62  ;;  %v7164_v21 = vmul.f32 %v8185_v14, %v2495_v44  ;;  %v3181_v23 = vunpack.c.l.bf16 %v4744_v56  ;;  %v7178_v62 = vld [vmem:[%s8033_s0 + $0x48] sm:$0xff]  ;;  %v3182_v38 = vunpack.c.h.bf16 %v4744_v56 }
 0x248   :  { %8183 = vst [vmem:[#allocation39_spill] sm:$0xff] %v7156_v10  ;;  %v3183_v44 = vunpack.c.l.bf16 %v4745_v27  ;;  %v7183_v8 = vadd.f32 %v2894_v55, %v7156_v10  ;;  %v3184_v54 = vunpack.c.h.bf16 %v4745_v27  ;;  %v3185_v56 = vunpack.c.l.bf16 %v4746_v52 }
 0x249   :  { %v3186_v18 = vunpack.c.h.bf16 %v4746_v52  ;;  %v3187_v6 = vunpack.c.l.bf16 %v7173_v45  ;;  %v2542_v27 = vadd.f32 %v2541_v7, %v7108_v31  ;;  %v8186_v52 = vperm.slane %v6828_v47, 2 }
 0x24b   :  { %v4825_v14 = vpop.eup %4824  ;;  %v7206_v1 = vmul.f32 %v8186_v52, %v3181_v23  ;;  %v3188_v23 = vunpack.c.h.bf16 %v7173_v45  ;;  %v2543_v22 = vadd.f32 %v2542_v27, %v7160_v32  ;;  %v7233_v45 = vmul.f32 %v8190_v19, %v3183_v44 }
 0x24c   :  { %v4827_v57 = vpop.eup %4826  ;;  %v7189_v50 = vadd.f32 1.0, %v4825_v14  ;;  %v8192_v27 = vperm.slane %v6821_v59, 2  ;;  %v8193_v14 = vperm.slane %v6904_v53, 2  ;;  %v8194_v19 = vperm.slane %v6953_v26, 2 }
 0x24d   :  { %v7192_v5 = vadd.f32 1.0, %v4827_v57  ;;  %8187 = vst [vmem:[#allocation40_spill] sm:$0xff] %v7206_v1  ;;  %v8188_v57 = vperm.slane %v6835_v33, 2 }
 0x24e   :  { %4828 = vrcp.f32 %v7189_v50  ;;  %v2455_v31 = vand.u32 2147483648, %v7189_v50  ;;  %v2453_v52 = vand.u32 2147483647, %v7189_v50  ;;  %8191 = vst [vmem:[#allocation42_spill] sm:$0xff] %v7233_v45  ;;  %vm2449_vm3 = vweird.f32 %v7189_v50 }
 0x24f   :  { %v7210_v20 = vmul.f32 %v8188_v57, %v3182_v38  ;;  %4830 = vrcp.f32 %v7192_v5  ;;  %v2470_v38 = vand.u32 2147483648, %v7192_v5  ;;  %v7225_v57 = vld [vmem:[%s8033_s0 + $0x20] sm:$0xff]  ;;  %v2468_v55 = vand.u32 2147483647, %v7192_v5 }
 0x250   :  { %v7245_v7 = vmul.f32 %v8192_v27, %v3184_v54  ;;  %v7249_v40 = vmul.f32 %v8193_v14, %v3185_v56  ;;  %v7253_v44 = vmul.f32 %v8194_v19, %v3186_v18  ;;  %v2456_v46 = vor.u32 1.1754944e-38, %v2455_v31 }
 0x251   :  { %8189 = vst [vmem:[#allocation41_spill] sm:$0xff] %v7210_v20  ;;  %v3232_v37 = vadd.f32 %v7210_v20, %v7206_v1  ;;  %vm2464_vm11 = vweird.f32 %v7192_v5  ;;  %vm7260_vm7 = vcmp.eq.f32.partialorder %v2453_v52, 8.507059e+37  ;;  %v2471_v14 = vor.u32 1.1754944e-38, %v2470_v38 }
 0x252   :  { %v7265_v18 = vadd.f32 %v2543_v22, %v7164_v21  ;;  %v2913_v31 = vmax.f32 %v7017_v2, %v7050_v13  ;;  %vm7270_vm6 = vcmp.eq.f32.partialorder %v2468_v55, 8.507059e+37  ;;  %v2914_v52 = vmax.f32 %v7021_v28, %v7065_v43 }
 0x253   :  { %v3233_v58 = vadd.f32 %v3232_v37, %v7233_v45  ;;  %v2924_v38 = vmax.f32 %v6886_v61, %v6925_v17  ;;  %v2925_v55 = vmax.f32 %v6890_v39, %v6944_v30  ;;  %v8204_v1 = vunpack.c.l.bf16 %v7178_v62 }
 0x254   :  { %v4829_v12 = vpop.eup %4828  ;;  %v7281_v45 = vmax.f32 %v2913_v31, %v7069_v36  ;;  %v7287_v37 = vmax.f32 %v2914_v52, %v7089_v16  ;;  %v4740_v31 = vld [vmem:[%s8033_s0 + $0xa8] sm:$0xff] }
 0x255   :  { %v4831_v54 = vpop.eup %4830  ;;  %v2445_v27 = vmul.f32 %v4829_v12, %v7189_v50  ;;  %v3234_v2 = vadd.f32 %v3233_v58, %v7245_v7  ;;  %v7290_v43 = vmax.f32 %v2924_v38, %v6965_v11  ;;  %vm2450_vm12 = vweird.f32 %v4829_v12 }
 0x256   :  { %v2460_v19 = vmul.f32 %v4831_v54, %v7192_v5  ;;  %v7303_v58 = vmax.f32 %v2925_v55, %v7011_v15  ;;  %vm2465_vm13 = vweird.f32 %v4831_v54  ;;  %v8200_v38 = vperm.slane %v6910_v4, 2  ;;  %vm2451_vm14 = vmor %vm2449_vm3, %vm2450_vm12 }
 0x257   :  { %v2446_v20 = vsub.f32 1.0, %v2445_v27  ;;  %v4739_v27 = vld [vmem:[%s8033_s0 + $0xa0] sm:$0xff]  ;;  %v3235_v28 = vadd.f32 %v3234_v2, %v7249_v40  ;;  %v2917_v55 = vmax.f32 %v7281_v45, %v7116_v60  ;;  %vm2466_vm15 = vmor %vm2464_vm11, %vm2465_vm13  ;;  %v8207_v15 = vunpack.c.h.bf16 %v7121_v63 }
 0x258   :  { %v2461_v13 = vsub.f32 1.0, %v2460_v19  ;;  %v8199_v19 = vperm.slane %v6908_v42, 2  ;;  %v7307_v16 = vmul.f32 %v8200_v38, %v3188_v23  ;;  %v3171_v30 = vunpack.c.l.bf16 %v4739_v27  ;;  %v7334_v45 = vld [vmem:[%s8033_s0 + $0xc0] sm:$0xff] }
 0x259   :  { %v2447_v22 = vmul.f32 %v4829_v12, %v2446_v20  ;;  %v7313_v20 = vld [vmem:[%s8033_s0 + $0xb0] sm:$0xff]  ;;  %v2918_v23 = vmax.f32 %v7287_v37, %v7156_v10  ;;  %v3174_v37 = vunpack.c.h.bf16 %v4740_v31 }
 0x25a   :  { %v7300_v36 = vmul.f32 %v8199_v19, %v3187_v6  ;;  %v2462_v52 = vmul.f32 %v4831_v54, %v2461_v13  ;;  %v3172_v6 = vunpack.c.h.bf16 %v4739_v27  ;;  %v3173_v19 = vunpack.c.l.bf16 %v4740_v31 }
 0x25b   :  { %v2448_v11 = vadd.f32 %v4829_v12, %v2447_v22  ;;  %v4742_v22 = vld [vmem:[%s8033_s0 + $0xb8] sm:$0xff]  ;;  %v3175_v27 = vunpack.c.l.bf16 %v7313_v20  ;;  %v3176_v5 = vunpack.c.h.bf16 %v7313_v20  ;;  %v8205_v20 = vunpack.c.l.bf16 %v7199_v49 }
 0x25c   :  { %v2463_v13 = vadd.f32 %v4831_v54, %v2462_v52  ;;  %v3177_v31 = vunpack.c.l.bf16 %v4742_v22 }
 0x25d   :  { %v2452_v38 = vsel %vm2451_vm14, %v4829_v12, %v2448_v11  ;;  %v3236_v11 = vadd.f32 %v3235_v28, %v7253_v44  ;;  %v8202_v28 = vunpack.c.l.bf16 %v7121_v63 }
 0x25e   :  { %v7339_v52 = vsel %vm7260_vm7, %v2456_v46, %v2452_v38  ;;  %v2467_v12 = vsel %vm2466_vm15, %v4831_v54, %v2463_v13  ;;  %v3178_v46 = vunpack.c.h.bf16 %v4742_v22  ;;  %v3179_v54 = vunpack.c.l.bf16 %v7334_v45 }
 0x25f   :  { %8201 = vst [vmem:[#allocation43_spill] sm:$0xff] %v7339_v52  ;;  %v7345_v50 = vsel %vm7270_vm6, %v2471_v14, %v2467_v12  ;;  %v2867_v2 = vperm.slane %v7339_v52, 1  ;;  %v2516_v10 = vperm.slane %v7339_v52, 0  ;;  %v3199_v12 = vperm.slane %v7339_v52, 2 }
 0x260   :  { %v2868_v60 = vperm.slane %v7345_v50, 1  ;;  %v2517_v56 = vperm.slane %v7345_v50, 0  ;;  %v8209_v22 = vunpack.c.h.bf16 %v7178_v62  ;;  %v8212_v62 = vunpack.c.h.bf16 %v7225_v57 }
 0x261   :  { %v7354_v13 = vmul.f32 %v2867_v2, %v8202_v28  ;;  %v7358_v14 = vmul.f32 %v2516_v10, %v8204_v1  ;;  %v7362_v38 = vmul.f32 %v2867_v2, %v8205_v20  ;;  %v8210_v28 = vunpack.c.l.bf16 %v7225_v57 }
 0x262   :  { %v7367_v17 = vmul.f32 %v2868_v60, %v8207_v15  ;;  %v7371_v39 = vmul.f32 %v2517_v56, %v8209_v22  ;;  %v3237_v1 = vadd.f32 %v3236_v11, %v7300_v36  ;;  %v8211_v20 = vmax.f32 %v7042_v48, %v7035_v34 }
 0x263   :  { %8203 = vst [vmem:[#allocation44_spill] sm:$0xff] %v7354_v13  ;;  %v7375_v61 = vmul.f32 %v2516_v10, %v8210_v28  ;;  %v2907_v2 = vadd.f32 %v7129_v35, %v7354_v13  ;;  %v2556_v15 = vadd.f32 %v7152_v51, %v7358_v14  ;;  %v7388_v22 = vmul.f32 %v2517_v56, %v8212_v62 }
 0x264   :  { %8206 = vst [vmem:[#allocation45_spill] sm:$0xff] %v7362_v38  ;;  %v2586_v63 = vmax.f32 %v8211_v20, %v7358_v14  ;;  %v8213_v10 = vmax.f32 %v7045_v0, %v7039_v29  ;;  %v8214_v28 = vperm.slane %v6828_v47, 2  ;;  %v8216_v52 = vperm.slane %v6835_v33, 2 }
 0x265   :  { %8208 = vst [vmem:[#allocation46_spill] sm:$0xff] %v7367_v17  ;;  %v8218_v20 = vperm.slane %v6811_v9, 2  ;;  %v2908_v57 = vadd.f32 %v2907_v2, %v7367_v17  ;;  %v2557_v56 = vadd.f32 %v2556_v15, %v7371_v39  ;;  %v2896_v0 = vadd.f32 %v7183_v8, %v7362_v38  ;;  %v8226_v15 = vld [vmem:[#allocation38_spill] sm:$0xff] }
 0x266   :  { %v2587_v11 = vmax.f32 %v8213_v10, %v7371_v39  ;;  %v7396_v35 = vmul.f32 %v8214_v28, %v3171_v30  ;;  %v7400_v48 = vmul.f32 %v8216_v52, %v3172_v6  ;;  %v8220_v62 = vunpack.c.l.bf16 %v7241_v41 }
 0x267   :  { %v7404_v51 = vmul.f32 %v8218_v20, %v3173_v19  ;;  %v8221_v28 = vunpack.c.h.bf16 %v7199_v49  ;;  %v3238_v52 = vadd.f32 %v3237_v1, %v7307_v16  ;;  %v8223_v19 = vperm.slane %v6821_v59, 2  ;;  %2909 = vadd.xlane.f32.xlu2 %v2908_v57  ;;  %2558 = vadd.xlane.f32.xlu0 %v2557_v56 }
 0x268   :  { %8215 = vst [vmem:[#allocation47_spill] sm:$0xff] %v7396_v35  ;;  %v7412_v10 = vmul.f32 %v3199_v12, %v8220_v62  ;;  %v2588_v30 = vmax.f32 %v2586_v63, %v2587_v11  ;;  %v8225_v8 = vmax.f32 %v7140_v24, %v7160_v32  ;;  %v8227_v63 = vmax.f32 %v8226_v15, %v7164_v21 }
 0x269   :  { %8217 = vst [vmem:[#allocation48_spill] sm:$0xff] %v7400_v48  ;;  %v7416_v6 = vmul.f32 %v2868_v60, %v8221_v28  ;;  %v7421_v20 = vmul.f32 %v8223_v19, %v3174_v37  ;;  %v2545_v60 = vadd.f32 %v7265_v18, %v7375_v61  ;;  %v3180_v1 = vunpack.c.h.bf16 %v7334_v45 }
 0x26a   :  { %8219 = vst [vmem:[#allocation49_spill] sm:$0xff] %v7404_v51  ;;  %v2575_v2 = vmax.f32 %v8225_v8, %v7375_v61  ;;  %v2576_v49 = vmax.f32 %v8227_v63, %v7388_v22  ;;  %2589 = vmax.xlane.f32.xlu1 %v2588_v30  ;;  %v3200_v37 = vperm.slane %v7345_v50, 2  ;;  %v8228_v11 = vperm.slane %v6904_v53, 2 }
 0x26b   :  { %8222 = vst [vmem:[#allocation50_spill] sm:$0xff] %v7416_v6  ;;  %v8230_v24 = vperm.slane %v6953_v26, 2  ;;  %v8232_v62 = vperm.slane %v6908_v42, 2  ;;  %v2897_v19 = vadd.f32 %v2896_v0, %v7416_v6  ;;  %v3239_v18 = vadd.f32 %v3238_v52, %v7412_v10 }
 0x26c   :  { %8224 = vst [vmem:[#allocation51_spill] sm:$0xff] %v7421_v20  ;;  %v7437_v57 = vmul.f32 %v8228_v11, %v3175_v27  ;;  %v7450_v45 = vmax.f32 %v2917_v55, %v7362_v38  ;;  %v8234_v30 = vperm.slane %v6910_v4, 2  ;;  %v7457_v27 = vmax.f32 %v2918_v23, %v7416_v6  ;;  %v7468_v55 = vld [vmem:[%s8033_s0 + $0xf0] sm:$0xff] }
 0x26d   :  { %v7441_v56 = vmul.f32 %v8230_v24, %v3176_v5  ;;  %v7445_v28 = vmul.f32 %v8232_v62, %v3177_v31  ;;  %v3245_v5 = vmax.f32 %v7396_v35, %v7404_v51  ;;  %v3246_v31 = vmax.f32 %v7400_v48, %v7421_v20 }
 0x26e   :  { %8229 = vst [vmem:[#allocation38_spill] sm:$0xff] %v7437_v57  ;;  %v7454_v8 = vmul.f32 %v8234_v30, %v3178_v46  ;;  %v3221_v0 = vadd.f32 %v7400_v48, %v7396_v35  ;;  %v2577_v52 = vmax.f32 %v2575_v2, %v2576_v49  ;;  %v2546_v46 = vadd.f32 %v2545_v60, %v7388_v22  ;;  %v8240_v48 = vld [vmem:[#allocation42_spill] sm:$0xff]  ;;  %v8242_v35 = vld [vmem:[#allocation41_spill] sm:$0xff] }
 0x26f   :  { %8231 = vst [vmem:[#allocation52_spill] sm:$0xff] %v7441_v56  ;;  %v8236_v23 = vmax.f32 %v7290_v43, %v6982_v3  ;;  %v8237_v63 = vmax.f32 %v7303_v58, %v7025_v25  ;;  %v8238_v24 = vunpack.c.h.bf16 %v7241_v41  ;;  %v3247_v30 = vmax.f32 %v3245_v5, %v7437_v57  ;;  %v8241_v43 = vld [vmem:[#allocation40_spill] sm:$0xff]  ;;  %v4758_v41 = vld [vmem:[%s8033_s0 + $0x118] sm:$0xff]  ;;  %2898 = vadd.xlane.f32.xlu2 %v2897_v19 }
 0x270   :  { %8233 = vst [vmem:[#allocation53_spill] sm:$0xff] %v7445_v28  ;;  %v3248_v2 = vmax.f32 %v3246_v31, %v7441_v56  ;;  %v3222_v49 = vadd.f32 %v3221_v0, %v7404_v51  ;;  %v7486_v60 = vmul.f32 %v3199_v12, %v3179_v54  ;;  %v3257_v6 = vmax.f32 %v8242_v35, %v7245_v7  ;;  %v4759_v12 = vld [vmem:[%s8033_s0 + $0x120] sm:$0xff]  ;;  %v7517_v19 = vld [vmem:[%s8033_s0 + $0xf8] sm:$0xff] }
 0x271   :  { %8235 = vst [vmem:[#allocation54_spill] sm:$0xff] %v7454_v8  ;;  %v2930_v15 = vmax.f32 %v8236_v23, %v7354_v13  ;;  %v2931_v11 = vmax.f32 %v8237_v63, %v7367_v17  ;;  %v7481_v62 = vmul.f32 %v3200_v37, %v8238_v24  ;;  %v3256_v23 = vmax.f32 %v8241_v43, %v8240_v48  ;;  %v4760_v63 = vld [vmem:[%s8033_s0 + $0x128] sm:$0xff] }
 0x272   :  { %8239 = vst [vmem:[#allocation55_spill] sm:$0xff] %v7486_v60  ;;  %v2921_v31 = vmax.f32 %v7450_v45, %v7457_v27  ;;  %v7499_v0 = vmul.f32 %v3200_v37, %v3180_v1  ;;  %v3223_v54 = vadd.f32 %v3222_v49, %v7421_v20  ;;  %2547 = vadd.xlane.f32.xlu0 %v2546_v46  ;;  %v3504_v1 = vunpack.c.h.bf16 %v7468_v55 }
 0x273   :  { %v3240_v5 = vadd.f32 %v3239_v18, %v7481_v62  ;;  %v2932_v24 = vmax.f32 %v2930_v15, %v2931_v11  ;;  %v3258_v18 = vmax.f32 %v3256_v23, %v7249_v40  ;;  %v3259_v58 = vmax.f32 %v3257_v6, %v7253_v44  ;;  %2578 = vmax.xlane.f32.xlu1 %v2577_v52  ;;  %v4761_v52 = vld [vmem:[%s8033_s0 + $0x130] sm:$0xff] }
 0x274   :  { %v3249_v37 = vmax.f32 %v3247_v30, %v7445_v28  ;;  %v3250_v45 = vmax.f32 %v3248_v2, %v7454_v8  ;;  %v3224_v27 = vadd.f32 %v3223_v54, %v7437_v57  ;;  %v3513_v49 = vunpack.c.l.bf16 %v4758_v41 }
 0x275   :  { %v3514_v46 = vunpack.c.h.bf16 %v4758_v41  ;;  %v3515_v15 = vunpack.c.l.bf16 %v4759_v12  ;;  %v3516_v11 = vunpack.c.h.bf16 %v4759_v12  ;;  %v3517_v23 = vunpack.c.l.bf16 %v4760_v63 }
 0x276   :  { %v3225_v6 = vadd.f32 %v3224_v27, %v7441_v56  ;;  %v3518_v30 = vunpack.c.h.bf16 %v4760_v63  ;;  %v3523_v2 = vperm.slane %v6828_v47, 3  ;;  %v3524_v54 = vperm.slane %v6835_v33, 3  ;;  %v4762_v47 = vld [vmem:[%s8033_s0 + $0x138] sm:$0xff] }
 0x277   :  { %v3525_v57 = vperm.slane %v6811_v9, 3  ;;  %v3526_v20 = vperm.slane %v6821_v59, 3  ;;  %v3527_v41 = vperm.slane %v6904_v53, 3  ;;  %v3260_v51 = vmax.f32 %v3258_v18, %v7300_v36  ;;  %3241 = vadd.xlane.f32.xlu2 %v3240_v5 }
 0x278   :  { %v3261_v27 = vmax.f32 %v3259_v58, %v7307_v16  ;;  %v3226_v56 = vadd.f32 %v3225_v6, %v7445_v28  ;;  %v3505_v33 = vunpack.c.l.bf16 %v7517_v19  ;;  %v3251_v9 = vmax.f32 %v3249_v37, %v7486_v60 }
 0x279   :  { %v3252_v59 = vmax.f32 %v3250_v45, %v7499_v0  ;;  %v3519_v63 = vunpack.c.l.bf16 %v4761_v52  ;;  %v3520_v53 = vunpack.c.h.bf16 %v4761_v52  ;;  %v7539_v38 = vmul.f32 %v3523_v2, %v3513_v49 }
 0x27a   :  { %v3227_v12 = vadd.f32 %v3226_v56, %v7454_v8  ;;  %v7541_v18 = vmul.f32 %v3524_v54, %v3514_v46  ;;  %v7543_v58 = vmul.f32 %v3525_v57, %v3515_v15  ;;  %2933 = vmax.xlane.f32.xlu0 %v2932_v24  ;;  %v3521_v6 = vunpack.c.l.bf16 %v4762_v47  ;;  %v8244_v46 = vld [vmem:[#allocation43_spill] sm:$0xff] }
 0x27b   :  { %v7545_v28 = vmul.f32 %v3526_v20, %v3516_v11  ;;  %v7547_v17 = vmul.f32 %v3527_v41, %v3517_v23  ;;  %v8243_v37 = vperm.slane %v6953_v26, 3  ;;  %2922 = vmax.xlane.f32.xlu1 %v2921_v31  ;;  %v3522_v52 = vunpack.c.h.bf16 %v4762_v47  ;;  %v4755_v31 = vld [vmem:[%s8033_s0 + $0x100] sm:$0xff] }
 0x27c   :  { %v3529_v56 = vperm.slane %v6908_v42, 3  ;;  %v3530_v49 = vperm.slane %v6910_v4, 3  ;;  %v3531_v15 = vperm.slane %v8244_v46, 3  ;;  %v3228_v5 = vadd.f32 %v3227_v12, %v7486_v60 }
 0x27d   :  { %v7551_v45 = vmul.f32 %v8243_v37, %v3518_v30  ;;  %v3532_v24 = vperm.slane %v7345_v50, 3  ;;  %v3588_v11 = vmax.f32 %v7539_v38, %v7543_v58  ;;  %v3589_v23 = vmax.f32 %v7541_v18, %v7545_v28 }
 0x27e   :  { %v3262_v42 = vmax.f32 %v3260_v51, %v7412_v10  ;;  %v3263_v4 = vmax.f32 %v3261_v27, %v7481_v62  ;;  %v8245_v30 = vunpack.c.l.bf16 %v7468_v55  ;;  %v7571_v12 = vmul.f32 %v3524_v54, %v3504_v1 }
 0x27f   :  { %v3590_v50 = vmax.f32 %v3588_v11, %v7547_v17  ;;  %v3591_v37 = vmax.f32 %v3589_v23, %v7551_v45  ;;  %v3253_v46 = vmax.f32 %v3251_v9, %v3252_v59  ;;  %v7575_v60 = vmul.f32 %v3529_v56, %v3519_v63  ;;  %v4756_v63 = vld [vmem:[%s8033_s0 + $0x108] sm:$0xff]  ;;  %v4757_v23 = vld [vmem:[%s8033_s0 + $0x110] sm:$0xff] }
 0x280   :  { %v7569_v47 = vmul.f32 %v3523_v2, %v8245_v30  ;;  %8246 = vst [vmem:[#allocation42_spill] sm:$0xff] %v7571_v12  ;;  %v3506_v8 = vunpack.c.h.bf16 %v7517_v19  ;;  %v3507_v13 = vunpack.c.l.bf16 %v4755_v31  ;;  %v3229_v51 = vadd.f32 %v3228_v5, %v7499_v0 }
 0x281   :  { %v7579_v25 = vmul.f32 %v3530_v49, %v3520_v53  ;;  %v7581_v27 = vmul.f32 %v3531_v15, %v3521_v6  ;;  %v7583_v55 = vmul.f32 %v3532_v24, %v3522_v52  ;;  %v3264_v1 = vmax.f32 %v3262_v42, %v3263_v4  ;;  %3254 = vmax.xlane.f32.xlu2 %v3253_v46 }
 0x282   :  { %v7585_v2 = vmul.f32 %v3525_v57, %v3505_v33  ;;  %v3553_v54 = vadd.f32 %v7571_v12, %v7569_v47  ;;  %v3564_v9 = vadd.f32 %v7541_v18, %v7539_v38  ;;  %3230 = vadd.xlane.f32.xlu0 %v3229_v51  ;;  %v3592_v19 = vmax.f32 %v3590_v50, %v7575_v60 }
 0x283   :  { %v3593_v59 = vmax.f32 %v3591_v37, %v7579_v25  ;;  %v3508_v53 = vunpack.c.h.bf16 %v4755_v31  ;;  %3265 = vmax.xlane.f32.xlu1 %v3264_v1  ;;  %v7596_v57 = vmul.f32 %v3526_v20, %v3506_v8  ;;  %v7598_v33 = vmul.f32 %v3527_v41, %v3507_v13 }
 0x284   :  { %8247 = vst [vmem:[#allocation40_spill] sm:$0xff] %v7585_v2  ;;  %v3554_v6 = vadd.f32 %v3553_v54, %v7585_v2  ;;  %v3565_v52 = vadd.f32 %v3564_v9, %v7543_v58  ;;  %v3594_v5 = vmax.f32 %v3592_v19, %v7581_v27  ;;  %v3509_v42 = vunpack.c.l.bf16 %v4756_v63 }
 0x285   :  { %8248 = vst [vmem:[#allocation41_spill] sm:$0xff] %v7596_v57  ;;  %v3595_v11 = vmax.f32 %v3593_v59, %v7583_v55  ;;  %v3510_v8 = vunpack.c.h.bf16 %v4756_v63  ;;  %v3511_v13 = vunpack.c.l.bf16 %v4757_v23  ;;  %v8250_v41 = vperm.slane %v6953_v26, 3 }
 0x286   :  { %8249 = vst [vmem:[#allocation43_spill] sm:$0xff] %v7598_v33  ;;  %v3555_v31 = vadd.f32 %v3554_v6, %v7596_v57  ;;  %v3566_v20 = vadd.f32 %v3565_v52, %v7545_v28  ;;  %v7615_v46 = vmul.f32 %v3529_v56, %v3509_v42  ;;  %v3512_v54 = vunpack.c.h.bf16 %v4757_v23 }
 0x287   :  { %v7611_v4 = vmul.f32 %v8250_v41, %v3508_v53  ;;  %v3596_v37 = vmax.f32 %v3594_v5, %v3595_v11  ;;  %v7619_v9 = vmul.f32 %v3530_v49, %v3510_v8  ;;  %v7621_v19 = vmul.f32 %v3531_v15, %v3511_v13 }
 0x288   :  { %v3556_v30 = vadd.f32 %v3555_v31, %v7598_v33  ;;  %v3567_v50 = vadd.f32 %v3566_v20, %v7547_v17  ;;  %8252 = vst [vmem:[#allocation57_spill] sm:$0xff] %v7615_v46  ;;  %v3577_v56 = vmax.f32 %v7569_v47, %v7585_v2  ;;  %v3578_v6 = vmax.f32 %v7571_v12, %v7596_v57 }
 0x289   :  { %8251 = vst [vmem:[#allocation56_spill] sm:$0xff] %v7611_v4  ;;  %3597 = vmax.xlane.f32.xlu2 %v3596_v37  ;;  %v7631_v52 = vmul.f32 %v3532_v24, %v3512_v54  ;;  %v4939_v41 = vmov 1280.0  }
 0x28a   :  { %v3557_v51 = vadd.f32 %v3556_v30, %v7611_v4  ;;  %v3568_v1 = vadd.f32 %v3567_v50, %v7551_v45  ;;  %8253 = vst [vmem:[#allocation58_spill] sm:$0xff] %v7619_v9  ;;  %v3579_v5 = vmax.f32 %v3577_v56, %v7598_v33  ;;  %v3580_v11 = vmax.f32 %v3578_v6, %v7611_v4 }
 0x28b   :  { %8254 = vst [vmem:[#allocation59_spill] sm:$0xff] %v7621_v19  ;;  %4832 = vrcp.f32 %v4939_v41  ;;  %v2475_v41 = vld [vmem:[%s8038_s5 + $0x8] sm:$0xff] }
 0x28c   :  { %v3558_v26 = vadd.f32 %v3557_v51, %v7615_v46  ;;  %v3569_v59 = vadd.f32 %v3568_v1, %v7575_v60  ;;  %8255 = vst [vmem:[#allocation60_spill] sm:$0xff] %v7631_v52  ;;  %v3581_v31 = vmax.f32 %v3579_v5, %v7615_v46  ;;  %v3582_v20 = vmax.f32 %v3580_v11, %v7619_v9  ;;  %v2474_v11 = vld [vmem:[%s8038_s5] sm:$0xff] }
 0x28e   :  { %v3559_v63 = vadd.f32 %v3558_v26, %v7619_v9  ;;  %v3570_v53 = vadd.f32 %v3569_v59, %v7579_v25  ;;  %v3583_v24 = vmax.f32 %v3581_v31, %v7621_v19  ;;  %v3584_v8 = vmax.f32 %v3582_v20, %v7631_v52 }
 0x290   :  { %v3560_v49 = vadd.f32 %v3559_v63, %v7621_v19  ;;  %v3571_v15 = vadd.f32 %v3570_v53, %v7581_v27  ;;  %v3585_v13 = vmax.f32 %v3583_v24, %v3584_v8 }
 0x291   :  { %v4833_v30 = vpop.eup %4832 }
 0x292   :  { %v3561_v23 = vadd.f32 %v3560_v49, %v7631_v52  ;;  %v3572_v42 = vadd.f32 %v3571_v15, %v7583_v55  ;;  %v2561_v50 = vmul.f32 1280.0, %v4833_v30  ;;  %vm2565_vm0 = vweird.f32 %v4833_v30  ;;  %v2476_v49 = vld [vmem:[%s8039_s6] sm:$0xff] }
 0x294   :  { %3562 = vadd.xlane.f32.xlu1 %v3561_v23  ;;  %3573 = vadd.xlane.f32.xlu0 %v3572_v42  ;;  %v2562_v37 = vsub.f32 1.0, %v2561_v50 }
 0x296   :  { %v2563_v51 = vmul.f32 %v4833_v30, %v2562_v37 }
 0x298   :  { %v2564_v1 = vadd.f32 %v4833_v30, %v2563_v51 }
 0x29a   :  { %v2566_v54 = vsel %vm2565_vm0, %v4833_v30, %v2564_v1 }
 0x29c   :  { %3586 = vmax.xlane.f32.xlu0 %v3585_v13  ;;  %v2477_v13 = vld [vmem:[%s8039_s6 + $0x8] sm:$0xff]  ;;  %s4942_s6 = smov 64  }
 0x2da   :  { %v2910_v26 = vpop.xlane.xlu2 %2909  ;;  %v2559_v59 = vpop.xlane.xlu0 %2558 }
 0x2db   :  { %v2568_v53 = vmul.f32 %v2566_v54, %v2559_v59  ;;  %v2912_v23 = vmul.f32 %v2910_v26, %v2566_v54 }
 0x2dd   :  { %v2590_v63 = vpop.xlane.xlu1 %2589  ;;  %2641 = vmatpush.msrb.mxu1 %v2568_v53 }
 0x2de   :  { %2612 = vmatpush.msrb.mxu0 %v2590_v63 }
 0x2e2   :  { %v2899_v56 = vpop.xlane.xlu2 %2898 }
 0x2e3   :  { %v2911_v42 = vmul.f32 %v2899_v56, %v2566_v54 }
 0x2e5   :  { %v2548_v6 = vpop.xlane.xlu0 %2547 }
 0x2e6   :  { %v2579_v15 = vpop.xlane.xlu1 %2578  ;;  %v2567_v5 = vmul.f32 %v2566_v54, %v2548_v6 }
 0x2e7   :  { %2613 = vmatpush.msrb.mxu0 %v2579_v15 }
 0x2e8   :  { %2642 = vmatpush.msrb.mxu1 %v2567_v5  ;;  %4721 = vmatmul.msk.f32.vlgmr.msrb.gmra.mxu0 %vm2591_vm9, %v2476_v49 }
 0x2e9   :  { %4723 = vmatmul.msk.f32.vlgmr.msrb.gmra.mxu1 %vm2591_vm9, %v2474_v11 }
 0x2ea   :  { %2972 = vmatpush.msra.mxu1 %v2912_v23  ;;  %v3242_v31 = vpop.xlane.xlu2 %3241 }
 0x2eb   :  { %v3244_v24 = vmul.f32 %v3242_v31, %v2566_v54 }
 0x2ec   :  { %2973 = vmatpush.msra.mxu1 %v2911_v42 }
 0x2ed   :  { %v2934_v20 = vpop.xlane.xlu0 %2933  ;;  %3304 = vmatpush.msrb.mxu3 %v3244_v24 }
 0x2ee   :  { %v2923_v8 = vpop.xlane.xlu1 %2922  ;;  %2949 = vmatpush.msra.mxu0 %v2934_v20 }
 0x2f0   :  { %2950 = vmatpush.msra.mxu0 %v2923_v8 }
 0x2f1   :  { %4722 = vmatmul.msk.f32.gmra.mxu0 %vm2591_vm9, %v2477_v13  ;;  %4724 = vmatmul.msk.f32.gmra.mxu1 %vm2591_vm9, %v2475_v41 }
 0x2f4   :  { %v3255_v30 = vpop.xlane.xlu2 %3254 }
 0x2f5   :  { %v3231_v50 = vpop.xlane.xlu0 %3230 }
 0x2f6   :  { %v3266_v37 = vpop.xlane.xlu1 %3265  ;;  %v3243_v51 = vmul.f32 %v3231_v50, %v2566_v54 }
 0x2f7   :  { %3281 = vmatpush.msrb.mxu2 %v3266_v37 }
 0x2f8   :  { %3305 = vmatpush.msrb.mxu3 %v3243_v51 }
 0x2f9   :  { %3282 = vmatpush.msrb.mxu2 %v3255_v30  ;;  %4735 = vmatmul.msk.f32.vlgmr.msra.gmra.mxu0 %vm2591_vm9, %v2476_v49 }
 0x2fa   :  { %4737 = vmatmul.msk.f32.vlgmr.msra.gmra.mxu1 %vm2591_vm9, %v2474_v11  ;;  %4749 = vmatmul.msk.f32.vlgmr.msrb.gmra.mxu2 %vm2591_vm9, %v2476_v49 }
 0x2fb   :  { %4751 = vmatmul.msk.f32.vlgmr.msrb.gmra.mxu3 %vm2591_vm9, %v2474_v11 }
 0x2fc   :  { %v3598_v1 = vpop.xlane.xlu2 %3597 }
 0x2fd   :  { %3613 = vmatpush.msrb.mxu0 %v3598_v1 }
 0x301   :  { %4736 = vmatmul.msk.f32.gmra.mxu0 %vm2591_vm9, %v2477_v13 }
 0x302   :  { %4738 = vmatmul.msk.f32.gmra.mxu1 %vm2591_vm9, %v2475_v41  ;;  %4750 = vmatmul.msk.f32.gmra.mxu2 %vm2591_vm9, %v2477_v13 }
 0x303   :  { %4752 = vmatmul.msk.f32.gmra.mxu3 %vm2591_vm9, %v2475_v41 }
 0x307   :  { %v3563_v26 = vpop.xlane.xlu1 %3562  ;;  %v3574_v59 = vpop.xlane.xlu0 %3573 }
 0x308   :  { %v3576_v63 = vmul.f32 %v3574_v59, %v2566_v54  ;;  %v3575_v53 = vmul.f32 %v3563_v26, %v2566_v54 }
 0x30a   :  { %3636 = vmatpush.msrb.mxu1 %v3576_v63 }
 0x30c   :  { %3637 = vmatpush.msrb.mxu1 %v3575_v53 }
 0x30d   :  { %4765 = vmatmul.msk.f32.vlgmr.msrb.gmra.mxu1 %vm2591_vm9, %v2474_v11 }
 0x30f   :  { %v3587_v56 = vpop.xlane.xlu0 %3586 }
 0x310   :  { %3614 = vmatpush.msrb.mxu0 %v3587_v56 }
 0x311   :  { %4763 = vmatmul.msk.f32.vlgmr.msrb.gmra.mxu0 %vm2591_vm9, %v2476_v49 }
 0x315   :  { %4766 = vmatmul.msk.f32.gmra.mxu1 %vm2591_vm9, %v2475_v41  ;;  %v4940_v41 = vmov 0  }
 0x316   :  { %4774 = vset.pattern.permute.xlu1 %v4940_v41  ;;  %4775 = vset.pattern.permute.xlu2 %v4940_v41 }
 0x317   :  { %4776 = vset.pattern.permute.xlu0 %v4940_v41 }
 0x319   :  { %4764 = vmatmul.msk.f32.gmra.mxu0 %vm2591_vm9, %v2477_v13 }
 0x365   :  { %v2615_v6 = vpop.f32.mrf.mxu0 }
 0x366   :  { %v2644_v15 = vpop.f32.mrf.mxu1 }
 0x367   :  { %v2645_v5 = vadd.f32 %v2644_v15, %v2615_v6 }
 0x369   :  { %v2650_v23 = vsub.f32 0.0, %v2645_v5 }
 0x36b   :  { %v2652_v42 = vmul.f32 1.442695, %v2650_v23 }
 0x36d   :  { %4834 = vpow2.f32 %v2652_v42 }
 0x36e   :  { %v2618_v31 = vpop.f32.mrf.mxu0  ;;  %v2647_v54 = vpop.f32.mrf.mxu1 }
 0x36f   :  { %v2648_v20 = vadd.f32 %v2647_v54, %v2618_v31 }
 0x371   :  { %v2651_v24 = vsub.f32 0.0, %v2648_v20 }
 0x373   :  { %v4835_v8 = vpop.eup %4834  ;;  %v2654_v11 = vmul.f32 1.442695, %v2651_v24 }
 0x374   :  { %v2656_v30 = vadd.f32 1.0, %v4835_v8 }
 0x375   :  { %4836 = vpow2.f32 %v2654_v11 }
 0x376   :  { %4838 = vrcp.f32 %v2656_v30  ;;  %v2952_v49 = vpop.f32.mrf.mxu0  ;;  %v2669_v31 = vand.u32 2147483648, %v2656_v30  ;;  %v2667_v24 = vand.u32 2147483647, %v2656_v30  ;;  %vm2663_vm10 = vweird.f32 %v2656_v30 }
 0x377   :  { %v2975_v50 = vpop.f32.mrf.mxu1 }
 0x378   :  { %v2976_v13 = vadd.f32 %v2975_v50, %v2952_v49  ;;  %vm2668_vm5 = vcmp.eq.f32.partialorder %v2667_v24, 8.507059e+37 }
 0x37a   :  { %v2981_v37 = vsub.f32 0.0, %v2976_v13  ;;  %v2670_v13 = vor.u32 1.1754944e-38, %v2669_v31 }
 0x37b   :  { %v4837_v51 = vpop.eup %4836 }
 0x37c   :  { %v4839_v1 = vpop.eup %4838  ;;  %v2657_v26 = vadd.f32 1.0, %v4837_v51  ;;  %v2983_v59 = vmul.f32 1.442695, %v2981_v37 }
 0x37d   :  { %v3284_v63 = vpop.f32.mrf.mxu2  ;;  %v2659_v53 = vmul.f32 %v4839_v1, %v2656_v30  ;;  %vm2664_vm4 = vweird.f32 %v4839_v1 }
 0x37e   :  { %4840 = vrcp.f32 %v2657_v26  ;;  %v3307_v56 = vpop.f32.mrf.mxu3  ;;  %v2955_v6 = vpop.f32.mrf.mxu0  ;;  %vm2665_vm2 = vmor %vm2663_vm10, %vm2664_vm4  ;;  %vm2678_vm11 = vweird.f32 %v2657_v26 }
 0x37f   :  { %4842 = vpow2.f32 %v2983_v59  ;;  %v3308_v15 = vadd.f32 %v3307_v56, %v3284_v63  ;;  %v2978_v5 = vpop.f32.mrf.mxu1  ;;  %v2660_v23 = vsub.f32 1.0, %v2659_v53 }
 0x380   :  { %v2979_v42 = vadd.f32 %v2978_v5, %v2955_v6 }
 0x381   :  { %v3313_v54 = vsub.f32 0.0, %v3308_v15  ;;  %v2661_v20 = vmul.f32 %v4839_v1, %v2660_v23  ;;  %v2684_v23 = vand.u32 2147483648, %v2657_v26 }
 0x382   :  { %v2982_v8 = vsub.f32 0.0, %v2979_v42 }
 0x383   :  { %v3315_v11 = vmul.f32 1.442695, %v3313_v54  ;;  %v2662_v49 = vadd.f32 %v4839_v1, %v2661_v20  ;;  %v2682_v54 = vand.u32 2147483647, %v2657_v26 }
 0x384   :  { %v4841_v50 = vpop.eup %4840  ;;  %v2985_v41 = vmul.f32 1.442695, %v2982_v8 }
 0x385   :  { %v4843_v37 = vpop.eup %4842  ;;  %4844 = vpow2.f32 %v3315_v11  ;;  %v3287_v51 = vpop.f32.mrf.mxu2  ;;  %v2666_v59 = vsel %vm2665_vm2, %v4839_v1, %v2662_v49  ;;  %v2674_v63 = vmul.f32 %v4841_v50, %v2657_v26  ;;  %vm2679_vm3 = vweird.f32 %v4841_v50 }
 0x386   :  { %v2987_v53 = vadd.f32 1.0, %v4843_v37  ;;  %4846 = vpow2.f32 %v2985_v41  ;;  %v3310_v56 = vpop.f32.mrf.mxu3  ;;  %v2671_v6 = vsel %vm2668_vm5, %v2670_v13, %v2666_v59  ;;  %vm2680_vm7 = vmor %vm2678_vm11, %vm2679_vm3  ;;  %v2685_v49 = vor.u32 1.1754944e-38, %v2684_v23 }
 0x387   :  { %v3311_v15 = vadd.f32 %v3310_v56, %v3287_v51  ;;  %2690 = vperm.xlu1 %4774, %v2671_v6   ;;  %v2675_v5 = vsub.f32 1.0, %v2674_v63  ;;  %vm2683_vm6 = vcmp.eq.f32.partialorder %v2682_v54, 8.507059e+37 }
 0x388   :  { %4848 = vrcp.f32 %v2987_v53  ;;  %vm2994_vm13 = vweird.f32 %v2987_v53 }
 0x389   :  { %v3314_v30 = vsub.f32 0.0, %v3311_v15  ;;  %v2676_v42 = vmul.f32 %v4841_v50, %v2675_v5  ;;  %v3000_v5 = vand.u32 2147483648, %v2987_v53 }
 0x38a   :  { %v3639_v8 = vpop.f32.mrf.mxu1 }
 0x38b   :  { %v4845_v31 = vpop.eup %4844  ;;  %v3317_v20 = vmul.f32 1.442695, %v3314_v30  ;;  %v2677_v11 = vadd.f32 %v4841_v50, %v2676_v42 }
 0x38c   :  { %v4847_v1 = vpop.eup %4846  ;;  %v3319_v24 = vadd.f32 1.0, %v4845_v31  ;;  %v2998_v31 = vand.u32 2147483647, %v2987_v53 }
 0x38d   :  { %v7671_v41 = vadd.f32 1.0, %v4847_v1  ;;  %4850 = vpow2.f32 %v3317_v20  ;;  %v2681_v37 = vsel %vm2680_vm7, %v4841_v50, %v2677_v11 }
 0x38e   :  { %v3616_v13 = vpop.f32.mrf.mxu0  ;;  %v4849_v51 = vpop.eup %4848  ;;  %4852 = vrcp.f32 %v3319_v24  ;;  %v2686_v63 = vsel %vm2683_vm6, %v2685_v49, %v2681_v37  ;;  %v3001_v49 = vor.u32 1.1754944e-38, %v3000_v5  ;;  %vm2999_vm15 = vcmp.eq.f32.partialorder %v2998_v31, 8.507059e+37 }
 0x38f   :  { %v3640_v59 = vadd.f32 %v3639_v8, %v3616_v13  ;;  %2695 = vperm.xlu2 %4775, %v2686_v63   ;;  %v2990_v56 = vmul.f32 %v4849_v51, %v2987_v53  ;;  %4854 = vrcp.f32 %v7671_v41  ;;  %vm2995_vm12 = vweird.f32 %v4849_v51 }
 0x390   :  { %vm2996_vm14 = vmor %vm2994_vm13, %vm2995_vm12  ;;  %vm3326_vm9 = vweird.f32 %v3319_v24  ;;  %vm3009_vm6 = vweird.f32 %v7671_v41 }
 0x391   :  { %v3645_v6 = vsub.f32 0.0, %v3640_v59  ;;  %v2991_v26 = vsub.f32 1.0, %v2990_v56 }
 0x392   :  { %v3642_v23 = vpop.f32.mrf.mxu1 }
 0x393   :  { %v3647_v15 = vmul.f32 1.442695, %v3645_v6  ;;  %v4851_v30 = vpop.eup %4850  ;;  %v2992_v42 = vmul.f32 %v4849_v51, %v2991_v26  ;;  %v3332_v6 = vand.u32 2147483648, %v3319_v24 }
 0x394   :  { %v4853_v20 = vpop.eup %4852  ;;  %v3320_v50 = vadd.f32 1.0, %v4851_v30 }
 0x395   :  { %4856 = vpow2.f32 %v3647_v15  ;;  %v2993_v11 = vadd.f32 %v4849_v51, %v2992_v42  ;;  %v3322_v8 = vmul.f32 %v4853_v20, %v3319_v24  ;;  %v7674_v13 = vpop.eup %4854  ;;  %vm3327_vm0 = vweird.f32 %v4853_v20 }
 0x396   :  { %v3619_v54 = vpop.f32.mrf.mxu0  ;;  %4858 = vrcp.f32 %v3320_v50  ;;  %v3330_v15 = vand.u32 2147483647, %v3319_v24  ;;  %v3005_v53 = vmul.f32 %v7674_v13, %v7671_v41  ;;  %vm3328_vm4 = vmor %vm3326_vm9, %vm3327_vm0  ;;  %vm3341_vm2 = vweird.f32 %v3320_v50 }
 0x397   :  { %v3643_v1 = vadd.f32 %v3642_v23, %v3619_v54  ;;  %v2997_v37 = vsel %vm2996_vm14, %v4849_v51, %v2993_v11  ;;  %v3323_v59 = vsub.f32 1.0, %v3322_v8  ;;  %v3333_v51 = vor.u32 1.1754944e-38, %v3332_v6 }
 0x398   :  { %v3002_v56 = vsel %vm2999_vm15, %v3001_v49, %v2997_v37  ;;  %vm3331_vm10 = vcmp.eq.f32.partialorder %v3330_v15, 8.507059e+37  ;;  %v3347_v37 = vand.u32 2147483648, %v3320_v50  ;;  %vm3010_vm7 = vweird.f32 %v7674_v13 }
 0x399   :  { %v3646_v63 = vsub.f32 0.0, %v3643_v1  ;;  %3021 = vperm.xlu0 %4776, %v3002_v56   ;;  %v3324_v26 = vmul.f32 %v4853_v20, %v3323_v59  ;;  %v3006_v1 = vsub.f32 1.0, %v3005_v53  ;;  %vm3011_vm13 = vmor %vm3009_vm6, %vm3010_vm7  ;;  %vm8271_vm7 = vcmask 1044484  }
 0x39a   :  { %v3348_v6 = vor.u32 1.1754944e-38, %v3347_v37  ;;  %vm8272_vm6 = vcmask 1046534  }
 0x39b   :  { %v4857_v30 = vpop.eup %4856  ;;  %v3649_v42 = vmul.f32 1.442695, %v3646_v63  ;;  %v3325_v54 = vadd.f32 %v4853_v20, %v3324_v26  ;;  %v3345_v63 = vand.u32 2147483647, %v3320_v50  ;;  %v3007_v24 = vmul.f32 %v7674_v13, %v3006_v1 }
 0x39c   :  { %v3651_v23 = vadd.f32 1.0, %v4857_v30  ;;  %v4859_v5 = vpop.eup %4858  ;;  %v3013_v1 = vand.u32 2147483647, %v7671_v41 }
 0x39d   :  { %4860 = vpow2.f32 %v3649_v42  ;;  %v3329_v31 = vsel %vm3328_vm4, %v4853_v20, %v3325_v54  ;;  %v3337_v11 = vmul.f32 %v4859_v5, %v3320_v50  ;;  %vm3342_vm5 = vweird.f32 %v4859_v5 }
 0x39e   :  { %4862 = vrcp.f32 %v3651_v23  ;;  %v3334_v8 = vsel %vm3331_vm10, %v3333_v51, %v3329_v31  ;;  %vm3343_vm3 = vmor %vm3341_vm2, %vm3342_vm5  ;;  %vm3346_vm11 = vcmp.eq.f32.partialorder %v3345_v63, 8.507059e+37  ;;  %v3008_v51 = vadd.f32 %v7674_v13, %v3007_v24 }
 0x39f   :  { %3353 = vperm.xlu1 %4774, %v3334_v8   ;;  %v3338_v49 = vsub.f32 1.0, %v3337_v11  ;;  %v3664_v50 = vand.u32 2147483648, %v3651_v23  ;;  %v3015_v31 = vand.u32 2147483648, %v7671_v41  ;;  %v3662_v8 = vand.u32 2147483647, %v3651_v23 }
 0x3a0   :  { %vm3658_vm14 = vweird.f32 %v3651_v23  ;;  %vm3014_vm9 = vcmp.eq.f32.partialorder %v3013_v1, 8.507059e+37  ;;  %v8258_v1 = vld [vmem:[#allocation19_spill] sm:$0xff] }
 0x3a1   :  { %v3339_v59 = vmul.f32 %v4859_v5, %v3338_v49  ;;  %v3012_v49 = vsel %vm3011_vm13, %v7674_v13, %v3008_v51  ;;  %v3016_v63 = vor.u32 1.1754944e-38, %v3015_v31  ;;  %vm3663_vm0 = vcmp.eq.f32.partialorder %v3662_v8, 8.507059e+37 }
 0x3a2   :  { %vm8274_vm13 = vcmask 1043456  }
 0x3a3   :  { %v4861_v56 = vpop.eup %4860  ;;  %v3340_v42 = vadd.f32 %v4859_v5, %v3339_v59  ;;  %v3665_v59 = vor.u32 1.1754944e-38, %v3664_v50  ;;  %v8256_v50 = vld [vmem:[#allocation16_spill] sm:$0xff] }
 0x3a4   :  { %v4863_v26 = vpop.eup %4862  ;;  %v3652_v30 = vadd.f32 1.0, %v4861_v56 }
 0x3a5   :  { %v3654_v20 = vmul.f32 %v4863_v26, %v3651_v23  ;;  %v3344_v15 = vsel %vm3343_vm3, %v4859_v5, %v3340_v42  ;;  %vm3659_vm12 = vweird.f32 %v4863_v26  ;;  %vm8269_vm3 = vcmask 1042434  }
 0x3a6   :  { %4864 = vrcp.f32 %v3652_v30  ;;  %v3349_v53 = vsel %vm3346_vm11, %v3348_v6, %v3344_v15  ;;  %vm3660_vm15 = vmor %vm3658_vm14, %vm3659_vm12  ;;  %v3017_v6 = vsel %vm3014_vm9, %v3016_v63, %v3012_v49  ;;  %vm3673_vm4 = vweird.f32 %v3652_v30  ;;  %v8259_v49 = vld [vmem:[#allocation21_spill] sm:$0xff]  ;;  %v8260_v63 = vld [vmem:[#allocation20_spill] sm:$0xff] }
 0x3a7   :  { %v3655_v54 = vsub.f32 1.0, %v3654_v20  ;;  %3358 = vperm.xlu2 %4775, %v3349_v53   ;;  %v3679_v41 = vand.u32 2147483648, %v3652_v30  ;;  %v3677_v15 = vand.u32 2147483647, %v3652_v30  ;;  %vm8270_vm11 = vcmask 1041408   ;;  %vm8295_vm14 = vmmov %vm8269_vm3 }
 0x3a8   :  { %vm8273_vm12 = vcmask 1045508   ;;  %vm8299_vm9 = vmmov %vm8272_vm6 }
 0x3a9   :  { %v3656_v11 = vmul.f32 %v4863_v26, %v3655_v54  ;;  %v3680_v53 = vor.u32 1.1754944e-38, %v3679_v41  ;;  %vm3678_vm5 = vcmp.eq.f32.partialorder %v3677_v15, 8.507059e+37  ;;  %v8262_v15 = vld [vmem:[#allocation30_spill] sm:$0xff] }
 0x3ab   :  { %v3657_v5 = vadd.f32 %v4863_v26, %v3656_v11  ;;  %v8257_v11 = vld [vmem:[#allocation17_spill] sm:$0xff] }
 0x3ac   :  { %v4865_v37 = vpop.eup %4864 }
 0x3ad   :  { %v3661_v56 = vsel %vm3660_vm15, %v4863_v26, %v3657_v5  ;;  %v3669_v24 = vmul.f32 %v4865_v37, %v3652_v30  ;;  %vm3674_vm10 = vweird.f32 %v4865_v37  ;;  %v8261_v30 = vld [vmem:[#allocation22_spill] sm:$0xff]  ;;  %vm8296_vm15 = vmmov %vm8270_vm11 }
 0x3ae   :  { %v3666_v42 = vsel %vm3663_vm0, %v3665_v59, %v3661_v56  ;;  %vm3675_vm2 = vmor %vm3673_vm4, %vm3674_vm10 }
 0x3af   :  { %3685 = vperm.xlu1 %4774, %v3666_v42   ;;  %v3670_v20 = vsub.f32 1.0, %v3669_v24  ;;  %3026 = vperm.xlu2 %4775, %v3017_v6   ;;  %vm8297_vm0 = vmmov %vm8271_vm7 }
 0x3b0   :  { %vm8302_vm4 = vmmov %vm8273_vm12 }
 0x3b1   :  { %v3671_v23 = vmul.f32 %v4865_v37, %v3670_v20  ;;  %vm8305_vm10 = vmmov %vm8274_vm13 }
 0x3b3   :  { %v3672_v13 = vadd.f32 %v4865_v37, %v3671_v23 }
 0x3b5   :  { %v3676_v54 = vsel %vm3675_vm2, %v4865_v37, %v3672_v13  ;;  %v8263_v13 = vld [vmem:[#allocation31_spill] sm:$0xff]  ;;  %vm8310_vm2 = vmmov %vm8269_vm3 }
 0x3b6   :  { %v3681_v51 = vsel %vm3678_vm5, %v3680_v53, %v3676_v54  ;;  %v8264_v54 = vld [vmem:[#allocation33_spill] sm:$0xff]  ;;  %vm8311_vm5 = vmmov %vm8270_vm11 }
 0x3b7   :  { %3690 = vperm.xlu2 %4775, %v3681_v51  }
 0x3e9   :  { %v2696_v26 = vpop.permute.xlu2 %2695 }
 0x3ea   :  { %v2708_v31 = vmul.f32 %v2696_v26, %v8256_v50  ;;  %v2709_v8 = vmul.f32 %v2696_v26, %v8257_v11  ;;  %v2710_v5 = vmul.f32 %v2696_v26, %v8258_v1  ;;  %v2711_v59 = vmul.f32 %v2696_v26, %v8259_v49  ;;  %v8265_v50 = vld [vmem:[#allocation34_spill] sm:$0xff]  ;;  %v8266_v1 = vld [vmem:[#allocation35_spill] sm:$0xff] }
 0x3eb   :  { %v2712_v56 = vmul.f32 %v2696_v26, %v8260_v63  ;;  %v2713_v24 = vmul.f32 %v2696_v26, %v8261_v30  ;;  %v2714_v42 = vmul.f32 %v2696_v26, %v7035_v34  ;;  %v2715_v6 = vmul.f32 %v2696_v26, %v7039_v29  ;;  %v8267_v34 = vld [vmem:[#allocation36_spill] sm:$0xff] }
 0x3ec   :  { %v7694_v37 = vmul.f32 %v2696_v26, %v7358_v14  ;;  %v7697_v20 = vmul.f32 %v2696_v26, %v7371_v39 }
 0x3f9   :  { %v2691_v41 = vpop.permute.xlu1 %2690 }
 0x3fa   :  { %v2698_v23 = vmul.f32 %v2691_v41, %v8262_v15  ;;  %v2699_v53 = vmul.f32 %v2691_v41, %v8263_v13  ;;  %v2700_v51 = vmul.f32 %v2691_v41, %v8264_v54  ;;  %v2701_v11 = vmul.f32 %v2691_v41, %v8265_v50 }
 0x3fb   :  { %v2702_v49 = vmul.f32 %v2691_v41, %v8266_v1  ;;  %v2703_v63 = vmul.f32 %v2691_v41, %v8267_v34  ;;  %v2704_v29 = vmul.f32 %v2691_v41, %v7160_v32  ;;  %v2705_v14 = vmul.f32 %v2691_v41, %v7164_v21 }
 0x3fc   :  { %v2706_v39 = vmul.f32 %v2691_v41, %v7375_v61  ;;  %v2707_v26 = vmul.f32 %v2691_v41, %v7388_v22  ;;  %v2718_v30 = vadd.f32 %v2708_v31, %v2698_v23  ;;  %v2725_v15 = vadd.f32 %v2709_v8, %v2699_v53 }
 0x3fd   :  { %v2732_v52 = vadd.f32 %v2710_v5, %v2700_v51  ;;  %v2739_v13 = vadd.f32 %v2711_v59, %v2701_v11  ;;  %v2746_v19 = vadd.f32 %v2712_v56, %v2702_v49  ;;  %v2753_v54 = vadd.f32 %v2713_v24, %v2703_v63 }
 0x3fe   :  { %v2719_v9 = vrot.slane %v2718_v30, 4  ;;  %v2726_v50 = vrot.slane %v2725_v15, 4  ;;  %v2760_v46 = vadd.f32 %v2714_v42, %v2704_v29  ;;  %v2767_v1 = vadd.f32 %v2715_v6, %v2705_v14 }
 0x3ff   :  { %v2733_v4 = vrot.slane %v2732_v52, 4  ;;  %v2740_v34 = vrot.slane %v2739_v13, 4  ;;  %v2747_v33 = vrot.slane %v2746_v19, 4  ;;  %v2754_v32 = vrot.slane %v2753_v54, 4 }
 0x400   :  { %v2720_v57 = vadd.f32 %v2719_v9, %v2718_v30  ;;  %v2727_v21 = vadd.f32 %v2726_v50, %v2725_v15  ;;  %v2761_v2 = vrot.slane %v2760_v46, 4  ;;  %v2768_v61 = vrot.slane %v2767_v1, 4 }
 0x401   :  { %v2734_v12 = vadd.f32 %v2733_v4, %v2732_v52  ;;  %v2741_v22 = vadd.f32 %v2740_v34, %v2739_v13  ;;  %v2748_v31 = vadd.f32 %v2747_v33, %v2746_v19  ;;  %v2755_v8 = vadd.f32 %v2754_v32, %v2753_v54 }
 0x402   :  { %v2721_v5 = vrot.slane %v2720_v57, 2  ;;  %v2728_v59 = vrot.slane %v2727_v21, 2  ;;  %v2762_v56 = vadd.f32 %v2761_v2, %v2760_v46  ;;  %v2769_v24 = vadd.f32 %v2768_v61, %v2767_v1 }
 0x403   :  { %v2735_v41 = vrot.slane %v2734_v12, 2  ;;  %v2742_v23 = vrot.slane %v2741_v22, 2  ;;  %v2749_v42 = vrot.slane %v2748_v31, 2  ;;  %v2756_v6 = vrot.slane %v2755_v8, 2 }
 0x404   :  { %v2722_v53 = vadd.f32 %v2721_v5, %v2720_v57  ;;  %v2729_v51 = vadd.f32 %v2728_v59, %v2727_v21  ;;  %v2763_v11 = vrot.slane %v2762_v56, 2  ;;  %v2770_v49 = vrot.slane %v2769_v24, 2  ;;  %v3359_v57 = vpop.permute.xlu2 %3358  ;;  %v8268_v5 = vld [vmem:[#allocation10_spill] sm:$0xff] }
 0x405   :  { %v2736_v9 = vadd.f32 %v2735_v41, %v2734_v12  ;;  %v2743_v63 = vadd.f32 %v2742_v23, %v2741_v22  ;;  %v2750_v29 = vadd.f32 %v2749_v42, %v2748_v31  ;;  %v2757_v14 = vadd.f32 %v2756_v6, %v2755_v8 }
 0x406   :  { %v2723_v4 = vrot.slane %v2722_v53, 1  ;;  %v2730_v52 = vrot.slane %v2729_v51, 1  ;;  %v2764_v33 = vadd.f32 %v2763_v11, %v2762_v56  ;;  %v2771_v19 = vadd.f32 %v2770_v49, %v2769_v24 }
 0x407   :  { %v2737_v30 = vrot.slane %v2736_v9, 1  ;;  %v2744_v15 = vrot.slane %v2743_v63, 1  ;;  %v2751_v2 = vrot.slane %v2750_v29, 1  ;;  %v2758_v46 = vrot.slane %v2757_v14, 1 }
 0x408   :  { %v2724_v13 = vadd.f32 %v2723_v4, %v2722_v53  ;;  %v2731_v54 = vadd.f32 %v2730_v52, %v2729_v51  ;;  %v2765_v50 = vrot.slane %v2764_v33, 1  ;;  %v2772_v1 = vrot.slane %v2771_v19, 1 }
 0x409   :  { %v2738_v34 = vadd.f32 %v2737_v30, %v2736_v9  ;;  %v2745_v32 = vadd.f32 %v2744_v15, %v2743_v63  ;;  %v2752_v21 = vadd.f32 %v2751_v2, %v2750_v29  ;;  %v2759_v12 = vadd.f32 %v2758_v46, %v2757_v14 }
 0x40a   :  { %v2766_v61 = vadd.f32 %v2765_v50, %v2764_v33  ;;  %v2773_v22 = vadd.f32 %v2772_v1, %v2771_v19  ;;  %v2774_v31 = vadd.f32 %v7694_v37, %v2706_v39  ;;  %v2781_v8 = vadd.f32 %v7697_v20, %v2707_v26 }
 0x40b   :  { %v2788_v59 = vmul.f32 %v2724_v13, %v8268_v5  ;;  %v2789_v56 = vmul.f32 %v2731_v54, %v8268_v5  ;;  %v2790_v24 = vmul.f32 %v2738_v34, %v8268_v5  ;;  %v2791_v41 = vmul.f32 %v2745_v32, %v8268_v5 }
 0x40c   :  { %v2775_v23 = vrot.slane %v2774_v31, 4  ;;  %v2782_v42 = vrot.slane %v2781_v8, 4  ;;  %v2792_v6 = vmul.f32 %v2752_v21, %v8268_v5  ;;  %v2793_v53 = vmul.f32 %v2759_v12, %v8268_v5  ;;  %v3027_v32 = vpop.permute.xlu2 %3026 }
 0x40d   :  { %v2794_v51 = vmul.f32 %v2766_v61, %v8268_v5  ;;  %v2795_v37 = vmul.f32 %v2773_v22, %v8268_v5  ;;  %v2808_v39 = vrot.slane %v2789_v56, 7  ;;  %v2809_v20 = vrot.slane %v2790_v24, 6  ;;  %v8276_v56 = vld [vmem:[#allocation13_spill] sm:$0xff] }
 0x40e   :  { %v2776_v26 = vadd.f32 %v2775_v23, %v2774_v31  ;;  %v2783_v11 = vadd.f32 %v2782_v42, %v2781_v8  ;;  %v2810_v49 = vrot.slane %v2791_v41, 5  ;;  %v2811_v9 = vrot.slane %v2792_v6, 4  ;;  %v8277_v23 = vld [vmem:[#allocation14_spill] sm:$0xff]  ;;  %v8278_v6 = vld [vmem:[#allocation15_spill] sm:$0xff] }
 0x40f   :  { %v2812_v63 = vrot.slane %v2793_v53, 3  ;;  %v2813_v29 = vrot.slane %v2794_v51, 2  ;;  %v2814_v14 = vrot.slane %v2795_v37, 1  ;;  %v2816_v4 = vsel %vm184_vm1, %v2788_v59, %v2808_v39  ;;  %v3022_v53 = vpop.permute.xlu0 %3021  ;;  %v8279_v51 = vld [vmem:[#allocation18_spill] sm:$0xff]  ;;  %v8280_v37 = vld [vmem:[#allocation23_spill] sm:$0xff] }
 0x410   :  { %v2777_v52 = vrot.slane %v2776_v26, 2  ;;  %v2784_v33 = vrot.slane %v2783_v11, 2  ;;  %v2817_v19 = vsel %vm8269_vm3, %v2809_v20, %v2810_v49  ;;  %v7722_v30 = vmul.f32 %v3359_v57, %v8241_v43  ;;  %v8281_v20 = vld [vmem:[#allocation26_spill] sm:$0xff]  ;;  %vm8312_vm3 = vmmov %vm8297_vm0 }
 0x411   :  { %v2818_v15 = vsel %vm8270_vm11, %v2816_v4, %v2817_v19  ;;  %v2819_v2 = vsel %vm8271_vm7, %v2811_v9, %v2812_v63  ;;  %v2820_v46 = vsel %vm8272_vm6, %v2813_v29, %v2814_v14  ;;  %v7728_v13 = vmul.f32 %v3359_v57, %v8242_v35  ;;  %v8283_v9 = vld [vmem:[#allocation46_spill] sm:$0xff]  ;;  %v8284_v29 = vld [vmem:[#allocation24_spill] sm:$0xff]  ;;  %v8285_v4 = vld [vmem:[#allocation25_spill] sm:$0xff] }
 0x412   :  { %v2778_v54 = vadd.f32 %v2777_v52, %v2776_v26  ;;  %v2785_v50 = vadd.f32 %v2784_v33, %v2783_v11  ;;  %v2821_v1 = vsel %vm8273_vm12, %v2819_v2, %v2820_v46  ;;  %v7732_v34 = vmul.f32 %v3359_v57, %v8240_v48  ;;  %v8282_v11 = vld [vmem:[#allocation44_spill] sm:$0xff]  ;;  %v8286_v33 = vld [vmem:[#allocation27_spill] sm:$0xff]  ;;  %v8288_v46 = vld [vmem:[#allocation29_spill] sm:$0xff] }
 0x413   :  { %v2822_v43 = vsel %vm8274_vm13, %v2818_v15, %v2821_v1  ;;  %v7736_v21 = vmul.f32 %v3359_v57, %v7245_v7  ;;  %v7739_v12 = vmul.f32 %v3359_v57, %v7249_v40  ;;  %v7742_v61 = vmul.f32 %v3359_v57, %v7253_v44  ;;  %v8275_v40 = vld [vmem:[#allocation12_spill] sm:$0xff]  ;;  %vm8315_vm11 = vmmov %vm8272_vm6 }
 0x414   :  { %v2779_v35 = vrot.slane %v2778_v54, 1  ;;  %v2786_v22 = vrot.slane %v2785_v50, 1  ;;  %2826 = vst [vmem:[#allocation3] ss:$4 sm:$0xff] %v2822_v43  ;;  %v7745_v31 = vmul.f32 %v3359_v57, %v7300_v36  ;;  %v7748_v48 = vmul.f32 %v3359_v57, %v7307_v16  ;;  %v8287_v15 = vld [vmem:[#allocation28_spill] sm:$0xff]  ;;  %v8290_v43 = vld [vmem:[#allocation37_spill] sm:$0xff]  ;;  %vm8319_vm7 = vmmov %vm8302_vm4 }
 0x415   :  { %v7751_v8 = vmul.f32 %v3359_v57, %v7412_v10  ;;  %v7754_v7 = vmul.f32 %v3359_v57, %v7481_v62  ;;  %v3039_v59 = vmul.f32 %v3027_v32, %v8275_v40  ;;  %v3040_v44 = vmul.f32 %v3027_v32, %v8276_v56  ;;  %v8292_v56 = vld [vmem:[#allocation45_spill] sm:$0xff]  ;;  %vm8321_vm6 = vmmov %vm8305_vm10 }
 0x416   :  { %v2780_v24 = vadd.f32 %v2779_v35, %v2778_v54  ;;  %v2787_v41 = vadd.f32 %v2786_v22, %v2785_v50  ;;  %v3041_v42 = vmul.f32 %v3027_v32, %v8277_v23  ;;  %v3042_v36 = vmul.f32 %v3027_v32, %v8278_v6  ;;  %v8289_v50 = vld [vmem:[#allocation32_spill] sm:$0xff]  ;;  %v8291_v22 = vld [vmem:[#allocation39_spill] sm:$0xff]  ;;  %vm8325_vm12 = vmmov %vm8310_vm2 }
 0x417   :  { %v3043_v16 = vmul.f32 %v3027_v32, %v8279_v51  ;;  %v3044_v39 = vmul.f32 %v3027_v32, %v8280_v37  ;;  %v3045_v10 = vmul.f32 %v3027_v32, %v6982_v3  ;;  %v3046_v62 = vmul.f32 %v3027_v32, %v8281_v20  ;;  %vm8326_vm13 = vmmov %vm8311_vm5 }
 0x418   :  { %v2796_v57 = vmul.f32 %v2780_v24, %v8268_v5  ;;  %v2797_v26 = vmul.f32 %v2787_v41, %v8268_v5  ;;  %v7767_v49 = vmul.f32 %v3027_v32, %v8282_v11  ;;  %v7770_v63 = vmul.f32 %v3027_v32, %v8283_v9  ;;  %v8293_v24 = vld [vmem:[#allocation50_spill] sm:$0xff]  ;;  %v3838_v11 = vld [vmem:[%s8040_s7 + $0x40] sm:$0xff] }
 0x419   :  { %v3029_v14 = vmul.f32 %v3022_v53, %v8284_v29  ;;  %v3030_v52 = vmul.f32 %v3022_v53, %v8285_v4  ;;  %v3031_v19 = vmul.f32 %v3022_v53, %v8286_v33  ;;  %v3032_v3 = vmul.f32 %v3022_v53, %v8287_v15 }
 0x41a   :  { %v2815_v2 = vrot.slane %v2797_v26, 7  ;;  %v3033_v54 = vmul.f32 %v3022_v53, %v8288_v46  ;;  %v3034_v1 = vmul.f32 %v3022_v53, %v8289_v50  ;;  %v3035_v35 = vmul.f32 %v3022_v53, %v8290_v43 }
 0x41b   :  { %v3036_v40 = vmul.f32 %v3022_v53, %v8291_v22  ;;  %v3037_v32 = vmul.f32 %v3022_v53, %v8292_v56  ;;  %v3038_v41 = vmul.f32 %v3022_v53, %v8293_v24  ;;  %v3049_v23 = vadd.f32 %v3039_v59, %v3029_v14 }
 0x41c   :  { %v2823_v6 = vsel %vm184_vm1, %v2796_v57, %v2815_v2  ;;  %v3056_v51 = vadd.f32 %v3040_v44, %v3030_v52  ;;  %v3063_v37 = vadd.f32 %v3041_v42, %v3031_v19  ;;  %v3070_v20 = vadd.f32 %v3042_v36, %v3032_v3 }
 0x41d   :  { %2828 = vst.msk [vmem:[#allocation3 + $0x20] ss:$4 sm:$0x3] %vm5875_vm8, %v2823_v6  ;;  %v3050_v26 = vrot.slane %v3049_v23, 4  ;;  %v3077_v9 = vadd.f32 %v3043_v16, %v3033_v54  ;;  %v3084_v29 = vadd.f32 %v3044_v39, %v3034_v1  ;;  %v3091_v4 = vadd.f32 %v3045_v10, %v3035_v35 }
 0x41e   :  { %v3057_v33 = vrot.slane %v3056_v51, 4  ;;  %v3064_v15 = vrot.slane %v3063_v37, 4  ;;  %v3071_v46 = vrot.slane %v3070_v20, 4  ;;  %v3098_v50 = vadd.f32 %v3046_v62, %v3036_v40 }
 0x41f   :  { %v3051_v43 = vadd.f32 %v3050_v26, %v3049_v23  ;;  %v3078_v22 = vrot.slane %v3077_v9, 4  ;;  %v3085_v53 = vrot.slane %v3084_v29, 4  ;;  %v3092_v59 = vrot.slane %v3091_v4, 4 }
 0x420   :  { %v3058_v14 = vadd.f32 %v3057_v33, %v3056_v51  ;;  %v3065_v57 = vadd.f32 %v3064_v15, %v3063_v37  ;;  %v3072_v44 = vadd.f32 %v3071_v46, %v3070_v20  ;;  %v3099_v42 = vrot.slane %v3098_v50, 4 }
 0x421   :  { %v3052_v36 = vrot.slane %v3051_v43, 2  ;;  %v3079_v52 = vadd.f32 %v3078_v22, %v3077_v9  ;;  %v3086_v19 = vadd.f32 %v3085_v53, %v3084_v29  ;;  %v3093_v3 = vadd.f32 %v3092_v59, %v3091_v4 }
 0x422   :  { %v3059_v2 = vrot.slane %v3058_v14, 2  ;;  %v3066_v16 = vrot.slane %v3065_v57, 2  ;;  %v3073_v39 = vrot.slane %v3072_v44, 2  ;;  %v3100_v10 = vadd.f32 %v3099_v42, %v3098_v50 }
 0x423   :  { %v3053_v54 = vadd.f32 %v3052_v36, %v3051_v43  ;;  %v3080_v1 = vrot.slane %v3079_v52, 2  ;;  %v3087_v35 = vrot.slane %v3086_v19, 2  ;;  %v3094_v62 = vrot.slane %v3093_v3, 2 }
 0x424   :  { %v3060_v40 = vadd.f32 %v3059_v2, %v3058_v14  ;;  %v3067_v56 = vadd.f32 %v3066_v16, %v3065_v57  ;;  %v3074_v24 = vadd.f32 %v3073_v39, %v3072_v44  ;;  %v3101_v23 = vrot.slane %v3100_v10, 2 }
 0x425   :  { %v3054_v6 = vrot.slane %v3053_v54, 1  ;;  %v3081_v51 = vadd.f32 %v3080_v1, %v3079_v52  ;;  %v3088_v37 = vadd.f32 %v3087_v35, %v3086_v19  ;;  %v3095_v20 = vadd.f32 %v3094_v62, %v3093_v3 }
 0x426   :  { %v3061_v26 = vrot.slane %v3060_v40, 1  ;;  %v3068_v9 = vrot.slane %v3067_v56, 1  ;;  %v3075_v29 = vrot.slane %v3074_v24, 1  ;;  %v3102_v4 = vadd.f32 %v3101_v23, %v3100_v10 }
 0x427   :  { %v3055_v33 = vadd.f32 %v3054_v6, %v3053_v54  ;;  %v3082_v15 = vrot.slane %v3081_v51, 1  ;;  %v3089_v46 = vrot.slane %v3088_v37, 1  ;;  %v3096_v50 = vrot.slane %v3095_v20, 1 }
 0x428   :  { %v3062_v43 = vadd.f32 %v3061_v26, %v3060_v40  ;;  %v3069_v22 = vadd.f32 %v3068_v9, %v3067_v56  ;;  %v3076_v53 = vadd.f32 %v3075_v29, %v3074_v24  ;;  %v3103_v59 = vrot.slane %v3102_v4, 1  ;;  %v3354_v40 = vpop.permute.xlu1 %3353 }
 0x429   :  { %v3083_v14 = vadd.f32 %v3082_v15, %v3081_v51  ;;  %v3090_v57 = vadd.f32 %v3089_v46, %v3088_v37  ;;  %v3097_v44 = vadd.f32 %v3096_v50, %v3095_v20  ;;  %v3105_v42 = vadd.f32 %v7767_v49, %v3037_v32 }
 0x42a   :  { %v3104_v36 = vadd.f32 %v3103_v59, %v3102_v4  ;;  %v3112_v52 = vadd.f32 %v7770_v63, %v3038_v41  ;;  %v3119_v19 = vmul.f32 %v3055_v33, %v8268_v5  ;;  %v3120_v3 = vmul.f32 %v3062_v43, %v8268_v5  ;;  %v8298_v33 = vld [vmem:[#allocation47_spill] sm:$0xff]  ;;  %v8300_v43 = vld [vmem:[#allocation48_spill] sm:$0xff] }
 0x42b   :  { %v3106_v2 = vrot.slane %v3105_v42, 4  ;;  %v3121_v16 = vmul.f32 %v3069_v22, %v8268_v5  ;;  %v3122_v39 = vmul.f32 %v3076_v53, %v8268_v5  ;;  %v3123_v10 = vmul.f32 %v3083_v14, %v8268_v5  ;;  %v8301_v53 = vld [vmem:[#allocation49_spill] sm:$0xff] }
 0x42c   :  { %v3113_v54 = vrot.slane %v3112_v52, 4  ;;  %v3124_v1 = vmul.f32 %v3090_v57, %v8268_v5  ;;  %v3125_v35 = vmul.f32 %v3097_v44, %v8268_v5  ;;  %v3126_v49 = vmul.f32 %v3104_v36, %v8268_v5  ;;  %v8303_v44 = vld [vmem:[#allocation51_spill] sm:$0xff]  ;;  %v8304_v36 = vld [vmem:[#allocation38_spill] sm:$0xff] }
 0x42d   :  { %v3107_v32 = vadd.f32 %v3106_v2, %v3105_v42  ;;  %v3139_v63 = vrot.slane %v3120_v3, 7  ;;  %v3140_v41 = vrot.slane %v3121_v16, 6  ;;  %v3141_v62 = vrot.slane %v3122_v39, 5  ;;  %v8306_v2 = vld [vmem:[#allocation52_spill] sm:$0xff]  ;;  %v8307_v39 = vld [vmem:[#allocation53_spill] sm:$0xff] }
 0x42e   :  { %v3114_v56 = vadd.f32 %v3113_v54, %v3112_v52  ;;  %v3142_v24 = vrot.slane %v3123_v10, 4  ;;  %v3143_v23 = vrot.slane %v3124_v1, 3  ;;  %v3144_v6 = vrot.slane %v3125_v35, 2  ;;  %v8308_v1 = vld [vmem:[#allocation54_spill] sm:$0xff] }
 0x42f   :  { %v3108_v51 = vrot.slane %v3107_v32, 2  ;;  %v3145_v37 = vrot.slane %v3126_v49, 1  ;;  %v3147_v20 = vsel %vm184_vm1, %v3119_v19, %v3139_v63  ;;  %v3148_v26 = vsel %vm8295_vm14, %v3140_v41, %v3141_v62  ;;  %v8309_v49 = vld [vmem:[#allocation55_spill] sm:$0xff]  ;;  %vm8327_vm14 = vmmov %vm8297_vm0 }
 0x430   :  { %v3115_v9 = vrot.slane %v3114_v56, 2  ;;  %v3149_v29 = vsel %vm8296_vm15, %v3147_v20, %v3148_v26  ;;  %v3150_v4 = vsel %vm8297_vm0, %v3142_v24, %v3143_v23  ;;  %v3361_v15 = vmul.f32 %v3354_v40, %v8298_v33  ;;  %vm8328_vm15 = vmmov %vm8299_vm9 }
 0x431   :  { %v3109_v46 = vadd.f32 %v3108_v51, %v3107_v32  ;;  %v3151_v50 = vsel %vm8299_vm9, %v3144_v6, %v3145_v37  ;;  %v3362_v22 = vmul.f32 %v3354_v40, %v8300_v43  ;;  %v3363_v59 = vmul.f32 %v3354_v40, %v8301_v53  ;;  %vm8329_vm0 = vmmov %vm8302_vm4 }
 0x432   :  { %v3116_v14 = vadd.f32 %v3115_v9, %v3114_v56  ;;  %v3152_v57 = vsel %vm8302_vm4, %v3150_v4, %v3151_v50  ;;  %v3364_v42 = vmul.f32 %v3354_v40, %v8303_v44  ;;  %v3365_v52 = vmul.f32 %v3354_v40, %v8304_v36  ;;  %vm8330_vm9 = vmmov %vm8321_vm6 }
 0x433   :  { %v3110_v19 = vrot.slane %v3109_v46, 1  ;;  %v3153_v3 = vsel %vm8305_vm10, %v3149_v29, %v3152_v57  ;;  %v3366_v16 = vmul.f32 %v3354_v40, %v8306_v2  ;;  %v3367_v10 = vmul.f32 %v3354_v40, %v8307_v39 }
 0x434   :  { %v3117_v54 = vrot.slane %v3116_v14, 1  ;;  %3158 = vst [vmem:[#allocation3 + $0x1] ss:$4 sm:$0xff] %v3153_v3  ;;  %v3368_v35 = vmul.f32 %v3354_v40, %v8308_v1  ;;  %v3369_v32 = vmul.f32 %v3354_v40, %v8309_v49  ;;  %v3370_v63 = vmul.f32 %v3354_v40, %v7499_v0 }
 0x435   :  { %v3111_v41 = vadd.f32 %v3110_v19, %v3109_v46  ;;  %v3381_v62 = vadd.f32 %v7722_v30, %v3361_v15  ;;  %v3388_v56 = vadd.f32 %v7728_v13, %v3362_v22  ;;  %v3395_v24 = vadd.f32 %v7732_v34, %v3363_v59 }
 0x436   :  { %v3118_v23 = vadd.f32 %v3117_v54, %v3116_v14  ;;  %v3402_v6 = vadd.f32 %v7736_v21, %v3364_v42  ;;  %v3409_v51 = vadd.f32 %v7739_v12, %v3365_v52  ;;  %v3416_v37 = vadd.f32 %v7742_v61, %v3366_v16 }
 0x437   :  { %v3127_v20 = vmul.f32 %v3111_v41, %v8268_v5  ;;  %v3382_v26 = vrot.slane %v3381_v62, 4  ;;  %v3389_v9 = vrot.slane %v3388_v56, 4  ;;  %v3396_v29 = vrot.slane %v3395_v24, 4 }
 0x438   :  { %v3128_v0 = vmul.f32 %v3118_v23, %v8268_v5  ;;  %v3403_v40 = vrot.slane %v3402_v6, 4  ;;  %v3410_v30 = vrot.slane %v3409_v51, 4  ;;  %v3417_v4 = vrot.slane %v3416_v37, 4 }
 0x439   :  { %v3383_v13 = vadd.f32 %v3382_v26, %v3381_v62  ;;  %v3390_v33 = vadd.f32 %v3389_v9, %v3388_v56  ;;  %v3397_v34 = vadd.f32 %v3396_v29, %v3395_v24  ;;  %v3423_v15 = vadd.f32 %v7745_v31, %v3367_v10 }
 0x43a   :  { %v3146_v21 = vrot.slane %v3128_v0, 7  ;;  %v3404_v46 = vadd.f32 %v3403_v40, %v3402_v6  ;;  %v3411_v12 = vadd.f32 %v3410_v30, %v3409_v51  ;;  %v3418_v50 = vadd.f32 %v3417_v4, %v3416_v37 }
 0x43b   :  { %v3384_v61 = vrot.slane %v3383_v13, 2  ;;  %v3391_v43 = vrot.slane %v3390_v33, 2  ;;  %v3398_v22 = vrot.slane %v3397_v34, 2  ;;  %v3424_v53 = vrot.slane %v3423_v15, 4 }
 0x43c   :  { %v3154_v59 = vsel %vm184_vm1, %v3127_v20, %v3146_v21  ;;  %v3405_v14 = vrot.slane %v3404_v46, 2  ;;  %v3412_v57 = vrot.slane %v3411_v12, 2  ;;  %v3419_v44 = vrot.slane %v3418_v50, 2 }
 0x43d   :  { %3160 = vst.msk [vmem:[#allocation3 + $0x21] ss:$4 sm:$0x3] %vm5875_vm8, %v3154_v59  ;;  %v3385_v42 = vadd.f32 %v3384_v61, %v3383_v13  ;;  %v3392_v36 = vadd.f32 %v3391_v43, %v3390_v33  ;;  %v3399_v52 = vadd.f32 %v3398_v22, %v3397_v34  ;;  %v3425_v31 = vadd.f32 %v3424_v53, %v3423_v15  ;;  %v3691_v43 = vpop.permute.xlu2 %3690 }
 0x43e   :  { %v3406_v19 = vadd.f32 %v3405_v14, %v3404_v46  ;;  %v3413_v3 = vadd.f32 %v3412_v57, %v3411_v12  ;;  %v3420_v2 = vadd.f32 %v3419_v44, %v3418_v50  ;;  %v3430_v16 = vadd.f32 %v7748_v48, %v3368_v35 }
 0x43f   :  { %v3386_v39 = vrot.slane %v3385_v42, 1  ;;  %v3393_v10 = vrot.slane %v3392_v36, 1  ;;  %v3400_v54 = vrot.slane %v3399_v52, 1  ;;  %v3426_v1 = vrot.slane %v3425_v31, 2 }
 0x440   :  { %v3407_v49 = vrot.slane %v3406_v19, 1  ;;  %v3414_v41 = vrot.slane %v3413_v3, 1  ;;  %v3421_v62 = vrot.slane %v3420_v2, 1  ;;  %v3431_v56 = vrot.slane %v3430_v16, 4 }
 0x441   :  { %v3387_v24 = vadd.f32 %v3386_v39, %v3385_v42  ;;  %v3394_v23 = vadd.f32 %v3393_v10, %v3392_v36  ;;  %v3401_v6 = vadd.f32 %v3400_v54, %v3399_v52  ;;  %v3427_v51 = vadd.f32 %v3426_v1, %v3425_v31  ;;  %v3686_v54 = vpop.permute.xlu1 %3685 }
 0x442   :  { %v3408_v37 = vadd.f32 %v3407_v49, %v3406_v19  ;;  %v3415_v20 = vadd.f32 %v3414_v41, %v3413_v3  ;;  %v3422_v26 = vadd.f32 %v3421_v62, %v3420_v2  ;;  %v3432_v9 = vadd.f32 %v3431_v56, %v3430_v16 }
 0x443   :  { %v3428_v29 = vrot.slane %v3427_v51, 1  ;;  %v3437_v0 = vadd.f32 %v7751_v8, %v3369_v32  ;;  %v3444_v48 = vadd.f32 %v7754_v7, %v3370_v63  ;;  %v3451_v35 = vmul.f32 %v3387_v24, %v8268_v5 }
 0x444   :  { %v3433_v40 = vrot.slane %v3432_v9, 2  ;;  %v3452_v30 = vmul.f32 %v3394_v23, %v8268_v5  ;;  %v3453_v4 = vmul.f32 %v3401_v6, %v8268_v5  ;;  %v3454_v13 = vmul.f32 %v3408_v37, %v8268_v5 }
 0x445   :  { %v3429_v33 = vadd.f32 %v3428_v29, %v3427_v51  ;;  %v3438_v34 = vrot.slane %v3437_v0, 4  ;;  %v3445_v15 = vrot.slane %v3444_v48, 4  ;;  %v3455_v21 = vmul.f32 %v3415_v20, %v8268_v5 }
 0x446   :  { %v3434_v46 = vadd.f32 %v3433_v40, %v3432_v9  ;;  %v3456_v12 = vmul.f32 %v3422_v26, %v8268_v5  ;;  %v3471_v8 = vrot.slane %v3452_v30, 7  ;;  %v3472_v32 = vrot.slane %v3453_v4, 6  ;;  %v8320_v40 = vld [vmem:[#allocation57_spill] sm:$0xff] }
 0x447   :  { %v3439_v7 = vadd.f32 %v3438_v34, %v3437_v0  ;;  %v3446_v63 = vadd.f32 %v3445_v15, %v3444_v48  ;;  %v3457_v50 = vmul.f32 %v3429_v33, %v8268_v5  ;;  %v3473_v61 = vrot.slane %v3454_v13, 5  ;;  %v8318_v48 = vld [vmem:[#allocation56_spill] sm:$0xff]  ;;  %v8322_v13 = vld [vmem:[#allocation58_spill] sm:$0xff]  ;;  %v8323_v34 = vld [vmem:[#allocation59_spill] sm:$0xff] }
 0x448   :  { %v3435_v22 = vrot.slane %v3434_v46, 1  ;;  %v3474_v53 = vrot.slane %v3455_v21, 4  ;;  %v3475_v59 = vrot.slane %v3456_v12, 3  ;;  %v3479_v14 = vsel %vm184_vm1, %v3451_v35, %v3471_v8  ;;  %v8324_v21 = vld [vmem:[#allocation60_spill] sm:$0xff] }
 0x449   :  { %v3440_v57 = vrot.slane %v3439_v7, 2  ;;  %v3447_v44 = vrot.slane %v3446_v63, 2  ;;  %v3476_v42 = vrot.slane %v3457_v50, 2  ;;  %v3480_v36 = vsel %vm8310_vm2, %v3472_v32, %v3473_v61 }
 0x44a   :  { %v3436_v52 = vadd.f32 %v3435_v22, %v3434_v46  ;;  %v3481_v31 = vsel %vm8311_vm5, %v3479_v14, %v3480_v36  ;;  %v3482_v19 = vsel %vm8312_vm3, %v3474_v53, %v3475_v59  ;;  %v3703_v3 = vmul.f32 %v3691_v43, %v7539_v38  ;;  %v3840_v22 = vld [vmem:[%s8040_s7 + $0x50] sm:$0x1]  ;;  %v3841_v53 = vld [vmem:[%s8040_s7 + $0x58] sm:$0x1]  ;;  %v3842_v59 = vld [vmem:[%s8040_s7 + $0x60] sm:$0x1] }
 0x44b   :  { %v3441_v2 = vadd.f32 %v3440_v57, %v3439_v7  ;;  %v3448_v16 = vadd.f32 %v3447_v44, %v3446_v63  ;;  %v3704_v39 = vmul.f32 %v3691_v43, %v7541_v18  ;;  %v3705_v10 = vmul.f32 %v3691_v43, %v7543_v58  ;;  %3901 = vmatpush.xpose.msra.mxu2 %v3840_v22  ;;  %v3843_v36 = vld [vmem:[%s8040_s7 + $0x68] sm:$0x1] }
 0x44c   :  { %v3458_v1 = vmul.f32 %v3436_v52, %v8268_v5  ;;  %v3706_v49 = vmul.f32 %v3691_v43, %v7545_v28  ;;  %v3707_v41 = vmul.f32 %v3691_v43, %v7547_v17  ;;  %v3708_v62 = vmul.f32 %v3691_v43, %v7551_v45  ;;  %v8313_v17 = vld [vmem:[#allocation42_spill] sm:$0xff]  ;;  %v8314_v45 = vld [vmem:[#allocation40_spill] sm:$0xff]  ;;  %3921 = vmatpush.xpose.msra.mxu3 %v3841_v53  ;;  %v3830_v52 = vld [vmem:[%s8040_s7] sm:$0xff] }
 0x44d   :  { %v3442_v56 = vrot.slane %v3441_v2, 1  ;;  %v3449_v24 = vrot.slane %v3448_v16, 1  ;;  %v3709_v23 = vmul.f32 %v3691_v43, %v7575_v60  ;;  %v3710_v38 = vmul.f32 %v3691_v43, %v7579_v25  ;;  %v8316_v60 = vld [vmem:[#allocation41_spill] sm:$0xff]  ;;  %v8317_v25 = vld [vmem:[#allocation43_spill] sm:$0xff]  ;;  %3941 = vmatpush.xpose.msra.mxu0 %v3842_v59  ;;  %3961 = vmatpush.xpose.msra.mxu1 %v3843_v36 }
 0x44e   :  { %v3477_v6 = vrot.slane %v3458_v1, 1  ;;  %v7848_v18 = vmul.f32 %v3691_v43, %v7581_v27  ;;  %v7851_v58 = vmul.f32 %v3691_v43, %v7583_v55  ;;  %v3693_v51 = vmul.f32 %v3686_v54, %v7569_v47  ;;  %v3831_v1 = vld [vmem:[%s8040_s7 + $0x8] sm:$0xff] }
 0x44f   :  { %v3443_v28 = vadd.f32 %v3442_v56, %v3441_v2  ;;  %v3450_v37 = vadd.f32 %v3449_v24, %v3448_v16  ;;  %v3694_v20 = vmul.f32 %v3686_v54, %v8313_v17  ;;  %v3695_v26 = vmul.f32 %v3686_v54, %v8314_v45  ;;  %3902 = vmatpush.xpose.msra.mxu2 %v3830_v52 }
 0x450   :  { %v3483_v9 = vsel %vm8315_vm11, %v3476_v42, %v3477_v6  ;;  %v3696_v29 = vmul.f32 %v3686_v54, %v8316_v60  ;;  %v3697_v0 = vmul.f32 %v3686_v54, %v8317_v25  ;;  %v3698_v27 = vmul.f32 %v3686_v54, %v8318_v48  ;;  %3922 = vmatpush.xpose.msra.mxu3 %v3831_v1 }
 0x451   :  { %v3459_v35 = vmul.f32 %v3443_v28, %v8268_v5  ;;  %v3460_v55 = vmul.f32 %v3450_v37, %v8268_v5  ;;  %v3484_v47 = vsel %vm8319_vm7, %v3482_v19, %v3483_v9  ;;  %v3699_v30 = vmul.f32 %v3686_v54, %v8320_v40 }
 0x452   :  { %v3485_v4 = vsel %vm8321_vm6, %v3481_v31, %v3484_v47  ;;  %v3700_v33 = vmul.f32 %v3686_v54, %v8322_v13  ;;  %v7867_v15 = vmul.f32 %v3686_v54, %v8323_v34  ;;  %v7870_v46 = vmul.f32 %v3686_v54, %v8324_v21 }
 0x453   :  { %v3478_v12 = vrot.slane %v3460_v55, 7  ;;  %3490 = vst [vmem:[#allocation3 + $0x2] ss:$4 sm:$0xff] %v3485_v4  ;;  %v3713_v8 = vadd.f32 %v3703_v3, %v3693_v51  ;;  %v3720_v32 = vadd.f32 %v3704_v39, %v3694_v20  ;;  %v3727_v7 = vadd.f32 %v3705_v10, %v3695_v26 }
 0x454   :  { %v3734_v63 = vadd.f32 %v3706_v49, %v3696_v29  ;;  %v3741_v50 = vadd.f32 %v3707_v41, %v3697_v0  ;;  %v3748_v61 = vadd.f32 %v3708_v62, %v3698_v27  ;;  %v3755_v43 = vadd.f32 %v3709_v23, %v3699_v30  ;;  %v3832_v49 = vld [vmem:[%s8040_s7 + $0x10] sm:$0xff]  ;;  %v3833_v41 = vld [vmem:[%s8040_s7 + $0x18] sm:$0xff] }
 0x455   :  { %v3486_v14 = vsel %vm184_vm1, %v3459_v35, %v3478_v12  ;;  %v3714_v57 = vrot.slane %v3713_v8, 4  ;;  %v3721_v44 = vrot.slane %v3720_v32, 4  ;;  %v3728_v42 = vrot.slane %v3727_v7, 4  ;;  %3942 = vmatpush.xpose.msra.mxu0 %v3832_v49  ;;  %3962 = vmatpush.xpose.msra.mxu1 %v3833_v41 }
 0x456   :  { %3492 = vst.msk [vmem:[#allocation3 + $0x22] ss:$4 sm:$0x3] %vm5875_vm8, %v3486_v14  ;;  %v3735_v31 = vrot.slane %v3734_v63, 4  ;;  %v3742_v19 = vrot.slane %v3741_v50, 4  ;;  %v3749_v3 = vrot.slane %v3748_v61, 4  ;;  %v3762_v2 = vadd.f32 %v3710_v38, %v3700_v33 }
 0x457   :  { %v3715_v16 = vadd.f32 %v3714_v57, %v3713_v8  ;;  %v3722_v39 = vadd.f32 %v3721_v44, %v3720_v32  ;;  %v3729_v10 = vadd.f32 %v3728_v42, %v3727_v7  ;;  %v3756_v54 = vrot.slane %v3755_v43, 4 }
 0x458   :  { %v3736_v62 = vadd.f32 %v3735_v31, %v3734_v63  ;;  %v3743_v56 = vadd.f32 %v3742_v19, %v3741_v50  ;;  %v3750_v24 = vadd.f32 %v3749_v3, %v3748_v61  ;;  %v3763_v23 = vrot.slane %v3762_v2, 4 }
 0x459   :  { %v3716_v38 = vrot.slane %v3715_v16, 2  ;;  %v3723_v6 = vrot.slane %v3722_v39, 2  ;;  %v3730_v51 = vrot.slane %v3729_v10, 2  ;;  %v3757_v28 = vadd.f32 %v3756_v54, %v3755_v43 }
 0x45a   :  { %v3737_v37 = vrot.slane %v3736_v62, 2  ;;  %v3744_v17 = vrot.slane %v3743_v56, 2  ;;  %v3751_v20 = vrot.slane %v3750_v24, 2  ;;  %v3764_v45 = vadd.f32 %v3763_v23, %v3762_v2 }
 0x45b   :  { %v3717_v26 = vadd.f32 %v3716_v38, %v3715_v16  ;;  %v3724_v9 = vadd.f32 %v3723_v6, %v3722_v39  ;;  %v3731_v60 = vadd.f32 %v3730_v51, %v3729_v10  ;;  %v3758_v29 = vrot.slane %v3757_v28, 2  ;;  %v3844_v39 = vld [vmem:[%s8040_s7 + $0x70] sm:$0x1]  ;;  %v3845_v10 = vld [vmem:[%s8040_s7 + $0x78] sm:$0x1]  ;;  %v3834_v6 = vld [vmem:[%s8040_s7 + $0x20] sm:$0xff] }
 0x45c   :  { %v3738_v25 = vadd.f32 %v3737_v37, %v3736_v62  ;;  %v3745_v0 = vadd.f32 %v3744_v17, %v3743_v56  ;;  %v3752_v48 = vadd.f32 %v3751_v20, %v3750_v24  ;;  %v3765_v27 = vrot.slane %v3764_v45, 2  ;;  %3981 = vmatpush.xpose.msrb.mxu2 %v3844_v39  ;;  %4001 = vmatpush.xpose.msrb.mxu3 %v3845_v10  ;;  %v3846_v62 = vld [vmem:[%s8040_s7 + $0x80] sm:$0x1]  ;;  %v3847_v38 = vld [vmem:[%s8040_s7 + $0x88] sm:$0x1]  ;;  %v3836_v20 = vld [vmem:[%s8040_s7 + $0x30] sm:$0xff] }
 0x45d   :  { %v3718_v35 = vrot.slane %v3717_v26, 1  ;;  %v3725_v55 = vrot.slane %v3724_v9, 1  ;;  %v3732_v47 = vrot.slane %v3731_v60, 1  ;;  %v3759_v40 = vadd.f32 %v3758_v29, %v3757_v28  ;;  %4021 = vmatpush.xpose.msrb.mxu0 %v3846_v62  ;;  %v3835_v51 = vld [vmem:[%s8040_s7 + $0x28] sm:$0xff]  ;;  %4041 = vmatpush.xpose.msrb.mxu1 %v3847_v38 }
 0x45e   :  { %v3739_v30 = vrot.slane %v3738_v25, 1  ;;  %v3746_v4 = vrot.slane %v3745_v0, 1  ;;  %v3753_v13 = vrot.slane %v3752_v48, 1  ;;  %v3766_v33 = vadd.f32 %v3765_v27, %v3764_v45 }
 0x45f   :  { %v3719_v34 = vadd.f32 %v3718_v35, %v3717_v26  ;;  %v3726_v21 = vadd.f32 %v3725_v55, %v3724_v9  ;;  %v3733_v12 = vadd.f32 %v3732_v47, %v3731_v60  ;;  %v3760_v8 = vrot.slane %v3759_v40, 1  ;;  %v3837_v60 = vld [vmem:[%s8040_s7 + $0x38] sm:$0xff] }
 0x460   :  { %v3740_v32 = vadd.f32 %v3739_v30, %v3738_v25  ;;  %v3747_v7 = vadd.f32 %v3746_v4, %v3745_v0  ;;  %v3754_v63 = vadd.f32 %v3753_v13, %v3752_v48  ;;  %v3767_v50 = vrot.slane %v3766_v33, 1  ;;  %3982 = vmatpush.xpose.msrb.mxu2 %v3834_v6  ;;  %4002 = vmatpush.xpose.msrb.mxu3 %v3835_v51 }
 0x461   :  { %v3761_v61 = vadd.f32 %v3760_v8, %v3759_v40  ;;  %v3769_v43 = vadd.f32 %v7848_v18, %v7867_v15  ;;  %v3776_v22 = vadd.f32 %v7851_v58, %v7870_v46  ;;  %v3783_v53 = vmul.f32 %v3719_v34, %v8268_v5  ;;  %4022 = vmatpush.xpose.msrb.mxu0 %v3836_v20  ;;  %v3848_v34 = vld [vmem:[%s8040_s7 + $0x90] sm:$0x1] }
 0x462   :  { %v3768_v59 = vadd.f32 %v3767_v50, %v3766_v33  ;;  %v3784_v14 = vmul.f32 %v3726_v21, %v8268_v5  ;;  %v3785_v57 = vmul.f32 %v3733_v12, %v8268_v5  ;;  %v3786_v44 = vmul.f32 %v3740_v32, %v8268_v5  ;;  %4042 = vmatpush.xpose.msrb.mxu1 %v3837_v60 }
 0x463   :  { %v3770_v42 = vrot.slane %v3769_v43, 4  ;;  %v3777_v36 = vrot.slane %v3776_v22, 4  ;;  %v3787_v52 = vmul.f32 %v3747_v7, %v8268_v5  ;;  %v3788_v31 = vmul.f32 %v3754_v63, %v8268_v5  ;;  %v3839_v7 = vld [vmem:[%s8040_s7 + $0x48] sm:$0xff] }
 0x464   :  { %v3789_v18 = vmul.f32 %v3761_v61, %v8268_v5  ;;  %v3790_v15 = vmul.f32 %v3768_v59, %v8268_v5  ;;  %v3803_v58 = vrot.slane %v3784_v14, 7  ;;  %v3804_v46 = vrot.slane %v3785_v57, 6  ;;  %v4088_v14 = vld [vmem:[%s8042_s9 + $0x8] sm:$0xff] }
 0x465   :  { %v3771_v19 = vadd.f32 %v3770_v42, %v3769_v43  ;;  %v3778_v3 = vadd.f32 %v3777_v36, %v3776_v22  ;;  %v3805_v2 = vrot.slane %v3786_v44, 5  ;;  %v3806_v16 = vrot.slane %v3787_v52, 4 }
 0x466   :  { %v3807_v54 = vrot.slane %v3788_v31, 3  ;;  %v3808_v1 = vrot.slane %v3789_v18, 2  ;;  %v3809_v49 = vrot.slane %v3790_v15, 1  ;;  %v3811_v41 = vsel %vm184_vm1, %v3783_v53, %v3803_v58  ;;  %v4087_v18 = vld [vmem:[%s8042_s9] sm:$0xff] }
 0x467   :  { %v3772_v56 = vrot.slane %v3771_v19, 2  ;;  %v3779_v24 = vrot.slane %v3778_v3, 2  ;;  %v3812_v23 = vsel %vm8325_vm12, %v3804_v46, %v3805_v2 }
 0x468   :  { %v3813_v28 = vsel %vm8326_vm13, %v3811_v41, %v3812_v23  ;;  %v3814_v37 = vsel %vm8327_vm14, %v3806_v16, %v3807_v54  ;;  %v3815_v17 = vsel %vm8328_vm15, %v3808_v1, %v3809_v49 }
 0x469   :  { %v3773_v45 = vadd.f32 %v3772_v56, %v3771_v19  ;;  %v3780_v26 = vadd.f32 %v3779_v24, %v3778_v3  ;;  %v3816_v9 = vsel %vm8329_vm0, %v3814_v37, %v3815_v17  ;;  %v4089_v3 = vld [vmem:[%s8042_s9 + $0x10] sm:$0xf]  ;;  %v4778_v24 = vld [vmem:[%s8041_s8] ss:$0 sm:$0xff]  ;;  %s4500_s9 = sshll.u32 %s8047_s14, 4  ;;  %s4944_s8 = smov [#allocation4]   ;;  %s4501_s9 = int_to_ptr.hbm [resolvable:$true] %s4500_s9 }
 0x46a   :  { %v3817_v29 = vsel %vm8330_vm9, %v3813_v28, %v3816_v9  ;;  %s4488_s14 = sshll.u32 %s4944_s8, 4  ;;  %s4489_s14 = int_to_ptr.vmem [resolvable:$true] %s4488_s14 }
 0x46b   :  { %v3774_v25 = vrot.slane %v3773_v45, 1  ;;  %v3781_v0 = vrot.slane %v3780_v26, 1  ;;  %3822 = vst [vmem:[#allocation3 + $0x3] ss:$4 sm:$0xff] %v3817_v29 }
 0x46d   :  { %v3775_v48 = vadd.f32 %v3774_v25, %v3773_v45  ;;  %v3782_v27 = vadd.f32 %v3781_v0, %v3780_v26 }
 0x46f   :  { %v3792_v35 = vmul.f32 %v3782_v27, %v8268_v5  ;;  %v3791_v55 = vmul.f32 %v3775_v48, %v8268_v5  ;;  %v3849_v5 = vld [vmem:[%s8040_s7 + $0x98] sm:$0x1] }
 0x471   :  { %v3810_v47 = vrot.slane %v3792_v35, 7 }
 0x472   :  { %v3825_v40 = vld [vmem:[#allocation3] sm:$0xff]  ;;  %v3826_v30 = vld [vmem:[#allocation3 + $0x8] sm:$0xff]  ;;  %v3827_v13 = vld [vmem:[#allocation3 + $0x10] sm:$0xff] }
 0x473   :  { %v3818_v4 = vsel %vm184_vm1, %v3791_v55, %v3810_v47  ;;  %3859 = vst [vmem:[#allocation1] ss:$2 sm:$0xff] %v3825_v40  ;;  %v3828_v33 = vld [vmem:[#allocation3 + $0x18] sm:$0xff]  ;;  %v4779_v55 = vld [vmem:[%s8044_s11] ss:$0 sm:$0xff]  ;;  %vm4349_vm1 = vcmask 68608  }
 0x474   :  { %3824 = vst.msk [vmem:[#allocation3 + $0x23] ss:$4 sm:$0x3] %vm5875_vm8, %v3818_v4  ;;  %v4781_v47 = vld [vmem:[%s8044_s11 + $0x1] ss:$0 sm:$0xff]  ;;  %vm4375_vm8 = vcmask 11264  }
 0x475   :  { %3861 = vst [vmem:[#allocation1 + $0x10] ss:$2 sm:$0xff] %v3826_v30 }
 0x476   :  { %3863 = vst [vmem:[#allocation1 + $0x20] ss:$2 sm:$0xff] %v3827_v13 }
 0x477   :  { %3865 = vst [vmem:[#allocation1 + $0x30] ss:$2 sm:$0xff] %v3828_v33 }
 0x47a   :  { %v3866_v21 = vld.sshfl [vmem:[#allocation1] sm:$0xff pattern:$0x75316420]  ;;  %v3867_v12 = vld.sshfl [vmem:[#allocation1 + $0x8] sm:$0xff pattern:$0x75316420] }
 0x47b   :  { %3903 = vmatmul.f32.vlgmr.msra.gmra.mxu2 %v3866_v21  ;;  %v3829_v8 = vld [vmem:[#allocation3 + $0x20] sm:$0xff]  ;;  %3923 = vmatmul.f32.vlgmr.msra.gmra.mxu3 %v3867_v12 }
 0x47c   :  { %3874 = vst [vmem:[#allocation1] ss:$2 sm:$0xff] %v3829_v8  ;;  %v3868_v32 = vld.sshfl [vmem:[#allocation1 + $0x10] sm:$0xff pattern:$0x75316420]  ;;  %4061 = vmatpush.xpose.msra.mxu2 %v3848_v34  ;;  %4081 = vmatpush.xpose.msra.mxu3 %v3849_v5 }
 0x47d   :  { %3943 = vmatmul.f32.vlgmr.msra.gmra.mxu0 %v3868_v32  ;;  %v3869_v63 = vld.sshfl [vmem:[#allocation1 + $0x18] sm:$0xff pattern:$0x75316420]  ;;  %v3870_v50 = vld.sshfl [vmem:[#allocation1 + $0x20] sm:$0xff pattern:$0x75316420] }
 0x47e   :  { %3963 = vmatmul.f32.vlgmr.msra.gmra.mxu1 %v3869_v63  ;;  %4096 = vst [vmem:[#allocation1 + $0x10] ss:$2 sm:$0xff] %v3826_v30  ;;  %v3871_v61 = vld.sshfl [vmem:[#allocation1 + $0x28] sm:$0xff pattern:$0x75316420] }
 0x47f   :  { %4098 = vst [vmem:[#allocation1 + $0x20] ss:$2 sm:$0xff] %v3827_v13  ;;  %v3872_v43 = vld.sshfl [vmem:[#allocation1 + $0x30] sm:$0xff pattern:$0x75316420] }
 0x480   :  { %v3873_v22 = vld.sshfl [vmem:[#allocation1 + $0x38] sm:$0xff pattern:$0x75316420]  ;;  %4062 = vmatpush.xpose.msra.mxu2 %v3838_v11  ;;  %4082 = vmatpush.xpose.msra.mxu3 %v3839_v7  ;;  %v4780_v13 = vld [vmem:[%s8045_s12] ss:$0 sm:$0xff] }
 0x481   :  { %4100 = vst [vmem:[#allocation1 + $0x30] ss:$2 sm:$0xff] %v3828_v33  ;;  %v4782_v33 = vld [vmem:[%s8045_s12 + $0x1] ss:$0 sm:$0xff]  ;;  %v4785_v34 = vld [vmem:[%s8044_s11 + $0x3] ss:$0 sm:$0xff] }
 0x482   :  { %v4787_v11 = vld [vmem:[%s8044_s11 + $0x4] ss:$0 sm:$0xff] }
 0x483   :  { %3983 = vmatmul.f32.vlgmr.msrb.gmra.mxu2 %v3870_v50  ;;  %4003 = vmatmul.f32.vlgmr.msrb.gmra.mxu3 %v3871_v61  ;;  %v3875_v53 = vld.sshfl [vmem:[#allocation1] sm:$0xff pattern:$0x75316420]  ;;  %v3876_v59 = vld.sshfl [vmem:[#allocation1 + $0x8] sm:$0xff pattern:$0x75316420] }
 0x484   :  { %4094 = vst [vmem:[#allocation1] ss:$2 sm:$0xff] %v3825_v40  ;;  %v4783_v40 = vld [vmem:[%s8044_s11 + $0x2] ss:$0 sm:$0xff]  ;;  %v4786_v50 = vld [vmem:[%s8045_s12 + $0x3] ss:$0 sm:$0xff] }
 0x485   :  { %4023 = vmatmul.f32.vlgmr.msrb.gmra.mxu0 %v3872_v43  ;;  %v4103_v15 = vld.sshfl [vmem:[#allocation1 + $0x10] sm:$0xff pattern:$0x75316420]  ;;  %v4104_v58 = vld.sshfl [vmem:[#allocation1 + $0x18] sm:$0xff pattern:$0x75316420] }
 0x486   :  { %v4105_v57 = vld.sshfl [vmem:[#allocation1 + $0x20] sm:$0xff pattern:$0x75316420]  ;;  %v4106_v44 = vld.sshfl [vmem:[#allocation1 + $0x28] sm:$0xff pattern:$0x75316420]  ;;  %4043 = vmatmul.f32.vlgmr.msrb.gmra.mxu1 %v3873_v22 }
 0x488   :  { %v4107_v42 = vld.sshfl [vmem:[#allocation1 + $0x30] sm:$0xff pattern:$0x75316420]  ;;  %v4108_v36 = vld.sshfl [vmem:[#allocation1 + $0x38] sm:$0xff pattern:$0x75316420] }
 0x489   :  { %4127 = vst [vmem:[#allocation1 + $0x20] ss:$4 sm:$0xff] %v4088_v14 }
 0x48b   :  { %4063 = vmatmul.f32.vlgmr.msra.gmra.mxu2 %v3875_v53  ;;  %4083 = vmatmul.f32.vlgmr.msra.gmra.mxu3 %v3876_v59  ;;  %v4101_v52 = vld.sshfl [vmem:[#allocation1] sm:$0xff pattern:$0x75316420]  ;;  %v4102_v31 = vld.sshfl [vmem:[#allocation1 + $0x8] sm:$0xff pattern:$0x75316420] }
 0x48c   :  { %4109 = vst [vmem:[#allocation1] ss:$2 sm:$0xff] %v3829_v8  ;;  %v4784_v8 = vld [vmem:[%s8045_s12 + $0x2] ss:$0 sm:$0xff]  ;;  %v4788_v53 = vld [vmem:[%s8045_s12 + $0x4] ss:$0 sm:$0xff] }
 0x490   :  { %v4132_v39 = vld.sshfl [vmem:[#allocation1 + $0x20] sm:$0xff pattern:$0x73625140]  ;;  %v4133_v1 = vld.sshfl [vmem:[#allocation1 + $0x28] sm:$0xff pattern:$0x73625140] }
 0x491   :  { %v4134_v49 = vld.sshfl [vmem:[#allocation1 + $0x30] sm:$0xff pattern:$0x73625140]  ;;  %v4135_v41 = vld.sshfl [vmem:[#allocation1 + $0x38] sm:$0xff pattern:$0x73625140] }
 0x493   :  { %v4110_v46 = vld.sshfl [vmem:[#allocation1] sm:$0xff pattern:$0x75316420]  ;;  %v4111_v19 = vld.sshfl [vmem:[#allocation1 + $0x8] sm:$0xff pattern:$0x75316420] }
 0x494   :  { %4125 = vst [vmem:[#allocation1] ss:$4 sm:$0xff] %v4087_v18 }
 0x49b   :  { %v4128_v2 = vld.sshfl [vmem:[#allocation1] sm:$0xff pattern:$0x73625140]  ;;  %v4129_v16 = vld.sshfl [vmem:[#allocation1 + $0x8] sm:$0xff pattern:$0x73625140] }
 0x49c   :  { %4164 = vmatpush.xpose.msra.mxu0 %v4128_v2  ;;  %4184 = vmatpush.xpose.msra.mxu1 %v4129_v16  ;;  %v4130_v10 = vld.sshfl [vmem:[#allocation1 + $0x10] sm:$0xff pattern:$0x73625140]  ;;  %v4131_v54 = vld.sshfl [vmem:[#allocation1 + $0x18] sm:$0xff pattern:$0x73625140] }
 0x49d   :  { %4204 = vmatpush.xpose.msrb.mxu2 %v4130_v10  ;;  %4224 = vmatpush.xpose.msrb.mxu3 %v4131_v54  ;;  %4136 = vst [vmem:[#allocation1] ss:$4 sm:$0xff] %v4089_v3 }
 0x49f   :  { %4165 = vmatmul.f32.vlgmr.msra.gmra.mxu0 %v4101_v52  ;;  %4185 = vmatmul.f32.vlgmr.msra.gmra.mxu1 %v4102_v31 }
 0x4a0   :  { %4244 = vmatpush.xpose.msrb.mxu0 %v4132_v39  ;;  %4264 = vmatpush.xpose.msrb.mxu1 %v4133_v1 }
 0x4a1   :  { %4284 = vmatpush.xpose.msra.mxu2 %v4134_v49  ;;  %4304 = vmatpush.xpose.msra.mxu3 %v4135_v41 }
 0x4a2   :  { %4205 = vmatmul.f32.vlgmr.msrb.gmra.mxu2 %v4103_v15  ;;  %4225 = vmatmul.f32.vlgmr.msrb.gmra.mxu3 %v4104_v58 }
 0x4a4   :  { %v4137_v62 = vld.sshfl [vmem:[#allocation1] sm:$0xff pattern:$0x73625140]  ;;  %v4138_v56 = vld.sshfl [vmem:[#allocation1 + $0x8] sm:$0xff pattern:$0x73625140] }
 0x4a5   :  { %4324 = vmatpush.xpose.msra.mxu0 %v4137_v62  ;;  %4344 = vmatpush.xpose.msra.mxu1 %v4138_v56 }
 0x4a7   :  { %4245 = vmatmul.f32.vlgmr.msrb.gmra.mxu0 %v4105_v57  ;;  %4265 = vmatmul.f32.vlgmr.msrb.gmra.mxu1 %v4106_v44 }
 0x4aa   :  { %4285 = vmatmul.f32.vlgmr.msra.gmra.mxu2 %v4107_v42  ;;  %4305 = vmatmul.f32.vlgmr.msra.gmra.mxu3 %v4108_v36  ;;  %v4789_v36 = vld [vmem:[%s8043_s10] ss:$0 sm:$0xff]  ;;  %s4941_s10 = smov [#allocation6]  }
 0x4ab   :  { %s4498_s12 = sshll.u32 %s4941_s10, 4  ;;  %s4499_s12 = int_to_ptr.vmem [resolvable:$true] %s4498_s12 }
 0x4af   :  { %4325 = vmatmul.f32.vlgmr.msra.gmra.mxu0 %v4110_v46  ;;  %4345 = vmatmul.f32.vlgmr.msra.gmra.mxu1 %v4111_v19 }
 0x4fa   :  { %v3944_v51 = vpop.f32.mrf.mxu0 }
 0x4fb   :  { %v3964_v37 = vpop.f32.mrf.mxu1 }
 0x4fe   :  { %v3904_v23 = vpop.f32.mrf.mxu2  ;;  %v3924_v38 = vpop.f32.mrf.mxu3 }
 0x4ff   :  { %v3905_v6 = vadd.f32 %v4778_v24, %v3904_v23 }
 0x501   :  { %v3925_v28 = vadd.f32 %v3924_v38, %v3905_v6 }
 0x502   :  { %v4024_v29 = vpop.f32.mrf.mxu0 }
 0x503   :  { %v3945_v17 = vadd.f32 %v3944_v51, %v3925_v28  ;;  %v4044_v0 = vpop.f32.mrf.mxu1 }
 0x505   :  { %v3965_v20 = vadd.f32 %v3964_v37, %v3945_v17 }
 0x506   :  { %v3984_v45 = vpop.f32.mrf.mxu2  ;;  %v4004_v26 = vpop.f32.mrf.mxu3 }
 0x507   :  { %v3985_v9 = vadd.f32 %v3984_v45, %v3965_v20 }
 0x509   :  { %v4005_v60 = vadd.f32 %v4004_v26, %v3985_v9 }
 0x50b   :  { %v4025_v25 = vadd.f32 %v4024_v29, %v4005_v60 }
 0x50d   :  { %v4045_v48 = vadd.f32 %v4044_v0, %v4025_v25 }
 0x50e   :  { %v4064_v27 = vpop.f32.mrf.mxu2  ;;  %v4084_v30 = vpop.f32.mrf.mxu3 }
 0x50f   :  { %v4065_v35 = vadd.f32 %v4064_v27, %v4045_v48 }
 0x511   :  { %v7980_v4 = vadd.f32 %v4084_v30, %v4065_v35 }
 0x513   :  { %v4404_v5 = vmul.f32 %v4779_v55, %v7980_v4  ;;  %v4410_v21 = vmul.f32 %v4781_v47, %v7980_v4  ;;  %v4416_v12 = vmul.f32 %v4783_v40, %v7980_v4  ;;  %v4422_v63 = vmul.f32 %v4785_v34, %v7980_v4 }
 0x514   :  { %v4350_v61 = vsel %vm4349_vm1, %v7980_v4, -inf  ;;  %v4428_v22 = vmul.f32 %v4787_v11, %v7980_v4 }
 0x515   :  { %v4406_v32 = vadd.f32 %v4780_v13, %v4404_v5  ;;  %v4412_v7 = vadd.f32 %v4782_v33, %v4410_v21  ;;  %v4418_v43 = vadd.f32 %v4784_v8, %v4416_v12  ;;  %4351 = vmax.xlane.f32.xlu1 %v4350_v61  ;;  %v4424_v14 = vadd.f32 %v4786_v50, %v4422_v63 }
 0x516   :  { %v4430_v44 = vadd.f32 %v4788_v53, %v4428_v22 }
 0x517   :  { %v4431_v59 = vmax.f32 %v4406_v32, %v4412_v7 }
 0x519   :  { %v4432_v57 = vmax.f32 %v4431_v59, %v4418_v43 }
 0x51b   :  { %v4433_v42 = vmax.f32 %v4432_v57, %v4424_v14 }
 0x51c   :  { %v4166_v31 = vpop.f32.mrf.mxu0  ;;  %v4186_v18 = vpop.f32.mrf.mxu1 }
 0x51d   :  { %v4434_v52 = vmax.f32 %v4433_v42, %v4430_v44  ;;  %v4167_v19 = vadd.f32 %v4789_v36, %v4166_v31 }
 0x51f   :  { %v4435_v15 = vsub.f32 %v4406_v32, %v4434_v52  ;;  %v4438_v58 = vsub.f32 %v4412_v7, %v4434_v52  ;;  %v4441_v46 = vsub.f32 %v4418_v43, %v4434_v52  ;;  %v4444_v3 = vsub.f32 %v4424_v14, %v4434_v52 }
 0x520   :  { %v4447_v10 = vsub.f32 %v4430_v44, %v4434_v52  ;;  %v4187_v54 = vadd.f32 %v4186_v18, %v4167_v19 }
 0x521   :  { %v4436_v2 = vmul.f32 1.442695, %v4435_v15  ;;  %v4439_v16 = vmul.f32 1.442695, %v4438_v58  ;;  %v4442_v39 = vmul.f32 1.442695, %v4441_v46 }
 0x522   :  { %v4445_v1 = vmul.f32 1.442695, %v4444_v3  ;;  %v4448_v24 = vmul.f32 1.442695, %v4447_v10 }
 0x523   :  { %4866 = vpow2.f32 %v4436_v2 }
 0x524   :  { %4868 = vpow2.f32 %v4439_v16  ;;  %v4246_v56 = vpop.f32.mrf.mxu0  ;;  %v4266_v38 = vpop.f32.mrf.mxu1 }
 0x525   :  { %v4206_v49 = vpop.f32.mrf.mxu2  ;;  %v4226_v41 = vpop.f32.mrf.mxu3  ;;  %4870 = vpow2.f32 %v4442_v39 }
 0x526   :  { %v4207_v62 = vadd.f32 %v4206_v49, %v4187_v54  ;;  %4872 = vpow2.f32 %v4445_v1 }
 0x527   :  { %4874 = vpow2.f32 %v4448_v24 }
 0x528   :  { %v4227_v23 = vadd.f32 %v4226_v41, %v4207_v62 }
 0x529   :  { %v4867_v6 = vpop.eup %4866 }
 0x52a   :  { %v4247_v51 = vadd.f32 %v4246_v56, %v4227_v23  ;;  %v4869_v28 = vpop.eup %4868 }
 0x52b   :  { %v4450_v37 = vadd.f32 %v4869_v28, %v4867_v6  ;;  %v4871_v20 = vpop.eup %4870 }
 0x52c   :  { %v4267_v17 = vadd.f32 %v4266_v38, %v4247_v51  ;;  %v4873_v60 = vpop.eup %4872  ;;  %v4326_v48 = vpop.f32.mrf.mxu0 }
 0x52d   :  { %v4286_v45 = vpop.f32.mrf.mxu2  ;;  %v4451_v26 = vadd.f32 %v4871_v20, %v4450_v37  ;;  %v4306_v29 = vpop.f32.mrf.mxu3 }
 0x52e   :  { %v4287_v9 = vadd.f32 %v4286_v45, %v4267_v17  ;;  %v4875_v27 = vpop.eup %4874  ;;  %v4346_v47 = vpop.f32.mrf.mxu1 }
 0x52f   :  { %v4452_v25 = vadd.f32 %v4873_v60, %v4451_v26 }
 0x530   :  { %v4307_v0 = vadd.f32 %v4306_v29, %v4287_v9 }
 0x531   :  { %v4453_v55 = vadd.f32 %v4875_v27, %v4452_v25 }
 0x532   :  { %v4327_v35 = vadd.f32 %v4326_v48, %v4307_v0 }
 0x533   :  { %4876 = vrcp.f32 %v4453_v55  ;;  %v4465_v5 = vand.u32 2147483648, %v4453_v55  ;;  %v4463_v12 = vand.u32 2147483647, %v4453_v55  ;;  %vm4459_vm10 = vweird.f32 %v4453_v55 }
 0x534   :  { %v4347_v40 = vadd.f32 %v4346_v47, %v4327_v35 }
 0x535   :  { %v4466_v11 = vor.u32 1.1754944e-38, %v4465_v5  ;;  %vm4464_vm5 = vcmp.eq.f32.partialorder %v4463_v12, 8.507059e+37 }
 0x536   :  { %v4376_v30 = vsel %vm4375_vm8, %v4347_v40, -inf }
 0x537   :  { %4377 = vmax.xlane.f32.xlu0 %v4376_v30 }
 0x539   :  { %v4877_v13 = vpop.eup %4876 }
 0x53a   :  { %v4455_v33 = vmul.f32 %v4877_v13, %v4453_v55  ;;  %vm4460_vm4 = vweird.f32 %v4877_v13 }
 0x53b   :  { %vm4461_vm2 = vmor %vm4459_vm10, %vm4460_vm4 }
 0x53c   :  { %v4456_v34 = vsub.f32 1.0, %v4455_v33 }
 0x53e   :  { %v4457_v21 = vmul.f32 %v4877_v13, %v4456_v34 }
 0x540   :  { %v4458_v8 = vadd.f32 %v4877_v13, %v4457_v21 }
 0x542   :  { %v4462_v32 = vsel %vm4461_vm2, %v4877_v13, %v4458_v8 }
 0x543   :  { %v4467_v7 = vsel %vm4464_vm5, %v4466_v11, %v4462_v32 }
 0x544   :  { %v4469_v63 = vmul.f32 %v4867_v6, %v4467_v7  ;;  %v4471_v50 = vmul.f32 %v4869_v28, %v4467_v7  ;;  %v4474_v61 = vmul.f32 %v4871_v20, %v4467_v7  ;;  %v4477_v43 = vmul.f32 %v4873_v60, %v4467_v7 }
 0x545   :  { %v4480_v22 = vmul.f32 %v4875_v27, %v4467_v7 }
 0x546   :  { %4470 = vst.msk [vmem:[#allocation6] sm:$0xf] %vm4349_vm1, %v4469_v63 }
 0x547   :  { %4473 = vst.msk [vmem:[#allocation6 + $0x4] sm:$0xf] %vm4349_vm1, %v4471_v50 }
 0x548   :  { %4476 = vst.msk [vmem:[#allocation6 + $0x8] sm:$0xf] %vm4349_vm1, %v4474_v61 }
 0x549   :  { %4479 = vst.msk [vmem:[#allocation6 + $0xc] sm:$0xf] %vm4349_vm1, %v4477_v43 }
 0x54a   :  { %4482 = vst.msk [vmem:[#allocation6 + $0x10] sm:$0xf] %vm4349_vm1, %v4480_v22 }
 0x54b   :  { %4506 = dma.vmem_to_hbm [thread:$0]  %s4499_s12, 320, %s4501_s9, [#allocation7], %s4942_s6, %s4942_s6, %s4943_s22  }
 0x588   :  { %v4352_v53 = vpop.xlane.xlu1 %4351 }
 0x589   :  { %v4353_v59 = vsub.f32 %v7980_v4, %v4352_v53 }
 0x58b   :  { %v4354_v14 = vmul.f32 1.442695, %v4353_v59 }
 0x58d   :  { %4878 = vpow2.f32 %v4354_v14 }
 0x593   :  { %v4879_v57 = vpop.eup %4878 }
 0x594   :  { %v4356_v44 = vsel %vm4349_vm1, %v4879_v57, 0.0 }
 0x595   :  { %4357 = vadd.xlane.f32.xlu2 %v4356_v44 }
 0x5aa   :  { %v4378_v42 = vpop.xlane.xlu0 %4377 }
 0x5ab   :  { %v4379_v36 = vsub.f32 %v4347_v40, %v4378_v42 }
 0x5ad   :  { %v4380_v52 = vmul.f32 1.442695, %v4379_v36 }
 0x5af   :  { %4880 = vpow2.f32 %v4380_v52 }
 0x5b5   :  { %v4881_v31 = vpop.eup %4880 }
 0x5b6   :  { %v4382_v18 = vsel %vm4375_vm8, %v4881_v31, 0.0 }
 0x5b7   :  { %4383 = vadd.xlane.f32.xlu1 %v4382_v18 }
 0x608   :  { %v4358_v4 = vpop.xlane.xlu2 %4357 }
 0x609   :  { %4882 = vrcp.f32 %v4358_v4  ;;  %v4370_v3 = vand.u32 2147483648, %v4358_v4  ;;  %v4368_v16 = vand.u32 2147483647, %v4358_v4  ;;  %vm4364_vm11 = vweird.f32 %v4358_v4 }
 0x60b   :  { %v4371_v39 = vor.u32 1.1754944e-38, %v4370_v3  ;;  %vm4369_vm6 = vcmp.eq.f32.partialorder %v4368_v16, 8.507059e+37 }
 0x60f   :  { %v4883_v15 = vpop.eup %4882 }
 0x610   :  { %v4360_v58 = vmul.f32 %v4883_v15, %v4358_v4  ;;  %vm4365_vm3 = vweird.f32 %v4883_v15 }
 0x611   :  { %vm4366_vm7 = vmor %vm4364_vm11, %vm4365_vm3 }
 0x612   :  { %v4361_v46 = vsub.f32 1.0, %v4360_v58 }
 0x614   :  { %v4362_v19 = vmul.f32 %v4883_v15, %v4361_v46 }
 0x616   :  { %v4363_v2 = vadd.f32 %v4883_v15, %v4362_v19 }
 0x618   :  { %v4367_v10 = vsel %vm4366_vm7, %v4883_v15, %v4363_v2 }
 0x619   :  { %v4372_v54 = vsel %vm4369_vm6, %v4371_v39, %v4367_v10 }
 0x61a   :  { %v4373_v1 = vmul.f32 %v4879_v57, %v4372_v54 }
 0x61c   :  { %4374 = vst.msk [vmem:[#allocation4] sm:$0xf] %vm4349_vm1, %v4373_v1 }
 0x61d   :  { %4493 = dma.vmem_to_hbm [thread:$0]  %s4489_s14, 64, %s4491_s25, [#allocation5]  }
 0x62a   :  { %v4384_v49 = vpop.xlane.xlu1 %4383 }
 0x62b   :  { %4884 = vrcp.f32 %v4384_v49  ;;  %v4396_v24 = vand.u32 2147483648, %v4384_v49  ;;  %v4394_v38 = vand.u32 2147483647, %v4384_v49  ;;  %vm4390_vm13 = vweird.f32 %v4384_v49 }
 0x62d   :  { %v4397_v51 = vor.u32 1.1754944e-38, %v4396_v24  ;;  %vm4395_vm15 = vcmp.eq.f32.partialorder %v4394_v38, 8.507059e+37 }
 0x631   :  { %v4885_v41 = vpop.eup %4884 }
 0x632   :  { %v4386_v62 = vmul.f32 %v4885_v41, %v4384_v49  ;;  %vm4391_vm12 = vweird.f32 %v4885_v41 }
 0x633   :  { %vm4392_vm14 = vmor %vm4390_vm13, %vm4391_vm12 }
 0x634   :  { %v4387_v56 = vsub.f32 1.0, %v4386_v62 }
 0x636   :  { %v4388_v23 = vmul.f32 %v4885_v41, %v4387_v56 }
 0x638   :  { %v4389_v6 = vadd.f32 %v4885_v41, %v4388_v23 }
 0x63a   :  { %v4393_v28 = vsel %vm4392_vm14, %v4885_v41, %v4389_v6 }
 0x63b   :  { %v4398_v37 = vsel %vm4395_vm15, %v4397_v51, %v4393_v28 }
 0x63c   :  { %v4399_v17 = vmul.f32 %v4881_v31, %v4398_v37 }
 0x63e   :  { %4400 = vst.msk [vmem:[%s8048_s15] sm:$0xf] %vm4375_vm8, %v4399_v17 }
 0x63f   :  { %4934 = dma.done.wait [#allocation5], 64  }
 0x640   :  { %4935 = vsyncadd [#allocation5], 4294967232 }
 0x641   :  { %4936 = dma.done.wait [#allocation7], 320  }
 0x642   :  { %4937 = vsyncadd [#allocation7], 4294966976 }
 0x643   :  { %4519 = vsyncpa [#allocation5], 1 }
 0x644   :  { %4520 = vsyncpa [#allocation7], 1 }

</bundles_post_ra>
